<compile_context>
chip_gen: v6e
topology: v6e:2x2x1
jax: 0.10.0
libtpu: 0.0.40
codegen_flags: <defaults>
</compile_context>

<pallas_src>
import functools

import jax
import jax.numpy as jnp
import numpy as np
from jax import lax
from jax.experimental import pallas as pl
from jax.experimental.pallas import tpu as pltpu


def act_kernel(xproj_ref, wflag_ref, whh_ref, bp_ref,
               allhx_ref, pc_ref, pt_ref, hx_scr,
               *, max_ponder, epsilon, tt):
    """Grid = (batch_block [parallel], time_chunk [arbitrary])."""
    c = pl.program_id(1)                      # time-chunk index

    @pl.when(c == 0)
    def _():                                  # new batch block: reset carried state
        hx_scr[...] = jnp.zeros_like(hx_scr)
        pc_ref[...] = jnp.zeros_like(pc_ref)

    w_flag = wflag_ref[...]                   # (1, Hp) ACT "step>0" flag column (padded)
    bp = bp_ref[...]                          # (1, Hp) ponder_linear bias, lane-broadcast

    Bb, Hp = hx_scr.shape
    threshold = 1.0 - epsilon

    def fused_mm(h):
        # whh_ref = [W_hh.T | w_p broadcast]: one matmul -> next pre-activation (left
        # Hp lanes) + halting logit broadcast over lanes (right Hp lanes).
        f = jnp.dot(h, whh_ref[...], preferred_element_type=jnp.float32,
                    precision=lax.Precision.HIGHEST)
        return f[:, :Hp], f[:, Hp:]

    @pl.loop(0, tt)
    def _time_step(lt):
        x_proj = xproj_ref[lt]                # (Bb, Hp) = x_t @ W_ih[:, :D].T + b
        x_proj_flag = x_proj + w_flag         # flag == 1 variant (steps >= 1), hoisted

        rec, _ = fused_mm(hx_scr[...])        # pre-activation input for step 0

        # ---- peeled ponder step 0: flag = 0, every batch element active ----
        hx = jnp.tanh(x_proj + rec)
        rec, logit = fused_mm(hx)
        h = jax.nn.sigmoid(logit + bp)        # (Bb, Hp) lane-broadcast halting prob
        accum_h = h
        p = h - jnp.maximum(h - 1.0, 0.0)
        accum_hx = hx + p * hx
        step_count = jnp.ones((Bb, Hp), jnp.float32)
        step_pc = jnp.zeros((Bb, Hp), jnp.float32)   # -accum_h before step 0 == 0

        # ---- remaining ponder steps (flag = 1), 2x-unrolled early-exit loop ----
        def one_step(hx, rec, accum_h, accum_hx, step_count, step_pc, ok):
            sel = jnp.logical_and(accum_h < threshold, ok)   # still pondering
            step_pc = jnp.where(sel, -accum_h, step_pc)
            hx = jnp.where(sel, jnp.tanh(x_proj_flag + rec), hx)
            accum_hx = jnp.where(sel, accum_hx + hx, accum_hx)
            rec, logit = fused_mm(hx)
            h = jax.nn.sigmoid(logit + bp)
            accum_h_new = accum_h + h
            p = h - jnp.maximum(accum_h_new - 1.0, 0.0)
            accum_hx = jnp.where(sel, accum_hx + p * hx, accum_hx)
            accum_h = jnp.where(sel, accum_h_new, accum_h)
            step_count = jnp.where(sel, step_count + 1.0, step_count)
            return hx, rec, accum_h, accum_hx, step_count, step_pc

        def cond(carry):
            i, _hx, _rec, accum_h_c, *_ = carry
            return jnp.logical_and(i < max_ponder, jnp.min(accum_h_c) < threshold)

        def body(carry):
            i, hx, rec, accum_h, accum_hx, step_count, step_pc = carry
            st = one_step(hx, rec, accum_h, accum_hx, step_count, step_pc, True)
            st = one_step(*st, i + 1 < max_ponder)   # 2nd step of the pair, gated
            return (i + 2,) + st

        carry0 = (jnp.array(1, jnp.int32), hx, rec, accum_h, accum_hx,
                  step_count, step_pc)
        (_, _, _, _, accum_hx, step_count, step_pc) = lax.while_loop(cond, body, carry0)

        hx_final = accum_hx * pl.reciprocal(step_count, approx=False)
        allhx_ref[lt] = hx_final
        hx_scr[...] = hx_final                # carry hidden state across time / chunks
        pc_ref[...] += step_pc[:, :128]       # resident per-batch-block ponder_cost
        pt_ref[lt] = step_count[:, :128]      # ponder_times[t], lane-broadcast slab


def _batch_block(B):
    """Split the batch over a leading 'parallel' grid axis (v7x megacore) when it
    divides into two sublane-aligned halves; otherwise keep a single block."""
    if B >= 16 and B % 16 == 0:
        return B // 2
    return B


def _time_chunk_and_vmem(T, Bb, Hp):
    """VMEM-aware time-chunk size + explicit vmem limit for CompilerParams."""
    try:
        info = pltpu.get_tpu_info()
        vmem_cap = int(getattr(info, "vmem_capacity_bytes", 64 * 2 ** 20))
    except Exception:   # API unavailable: assume the smallest (v7x) per-TC VMEM
        vmem_cap = 64 * 2 ** 20
    budget = vmem_cap // 8                          # streamed-slab budget w/ headroom
    per_step = 4 * Bb * Hp * 4 + 2 * Bb * 128 * 4   # dbl-buffered x_proj + all_hx + pt
    cap = int(max(1, min(16, T, budget // per_step)))
    tt = 1
    for cand in range(cap, 0, -1):
        if T % cand == 0:
            tt = cand
            break
    est = (2 * Hp * (2 * Hp) * 4        # whh_ext (double-buffered by default)
           + 4 * Hp * 4                 # flag column + bias row
           + tt * per_step              # streamed slabs
           + Bb * Hp * 4                # hx scratch
           + (2 << 20))                 # compiler temporaries
    vmem_limit = int(min(64 * 2 ** 20, max(16 * 2 ** 20, 2 * est)))
    return tt, vmem_limit


def act_forward(x, w_ih, b_ih, w_hh, b_hh, w_p, b_p, *, max_ponder=12, epsilon=0.01):
    """ACTFromCell.forward for a tanh RNNCell.  x: (T, B, D), time-major."""
    T, B, D = x.shape
    H = w_hh.shape[0]
    assert w_ih.shape == (H, D + 1)
    f32 = jnp.float32
    Hp = ((H + 127) // 128) * 128                  # lane-dense hidden width

    # --- lane-padded parameters --------------------------------------------------
    whh_t = jnp.zeros((Hp, Hp), f32).at[:H, :H].set(w_hh.T.astype(f32))
    wp_col = jnp.zeros((Hp,), f32).at[:H].set(w_p.reshape(-1).astype(f32))
    # Fused recurrent weight [W_hh.T | w_p bcast] -> one matmul per ponder step.
    whh_ext = jnp.concatenate(
        [whh_t, jnp.broadcast_to(wp_col[:, None], (Hp, Hp))], axis=1)   # (Hp, 2*Hp)
    w_flag = jnp.zeros((1, Hp), f32).at[0, :H].set(w_ih[:, D].astype(f32))
    bp_row = jnp.zeros((1, Hp), f32) + jnp.reshape(b_p.astype(f32), (1, 1))
    wih_xT = jnp.zeros((D, Hp), f32).at[:, :H].set(w_ih[:, :D].T.astype(f32))
    bias = jnp.zeros((Hp,), f32).at[:H].set((b_ih + b_hh).astype(f32))

    # Hoisted ponder-invariant input projection: one lane-dense (T*B, D) @ (D, Hp).
    x_proj = (jnp.reshape(x.astype(f32), (T * B, D)) @ wih_xT + bias)
    x_proj = jnp.reshape(x_proj, (T, B, Hp))

    Bb = _batch_block(B)
    nb = B // Bb
    tt, vmem_limit = _time_chunk_and_vmem(T, Bb, Hp)
    nc = T // tt

    kernel = functools.partial(act_kernel, max_ponder=max_ponder,
                               epsilon=epsilon, tt=tt)

    all_hx_p, pc_p, pt_p = pl.pallas_call(
        kernel,
        out_shape=(
            jax.ShapeDtypeStruct((T, B, Hp), f32),
            jax.ShapeDtypeStruct((B, 128), f32),
            jax.ShapeDtypeStruct((T, B, 128), f32),
        ),
        grid_spec=pltpu.PrefetchScalarGridSpec(
            num_scalar_prefetch=0,
            grid=(nb, nc),
            in_specs=[
                pl.BlockSpec((tt, Bb, Hp), lambda b, c: (c, b, 0)),    # x_proj chunk
                pl.BlockSpec((1, Hp), lambda b, c: (0, 0)),            # flag column
                pl.BlockSpec((Hp, 2 * Hp), lambda b, c: (0, 0)),       # [W_hh.T | w_p]
                pl.BlockSpec((1, Hp), lambda b, c: (0, 0)),            # ponder bias row
            ],
            out_specs=(
                pl.BlockSpec((tt, Bb, Hp), lambda b, c: (c, b, 0)),    # all_hx chunk
                pl.BlockSpec((Bb, 128), lambda b, c: (b, 0)),          # ponder_cost
                pl.BlockSpec((tt, Bb, 128), lambda b, c: (c, b, 0)),   # ponder_times
            ),
            scratch_shapes=[pltpu.VMEM((Bb, Hp), f32)],                # carried hx
        ),
        compiler_params=pltpu.CompilerParams(
            dimension_semantics=("parallel", "arbitrary"),
            vmem_limit_bytes=vmem_limit),
    )(x_proj, w_flag, whh_ext, bp_row)

    all_hx = all_hx_p[..., :H]                        # drop lane padding
    hx_last = all_hx[-1:]                             # (1, B, H) == hx.unsqueeze(0)
    return all_hx, hx_last, pc_p[:, 0], pt_p[..., 0]


def act_reference(x, w_ih, b_ih, w_hh, b_hh, w_p, b_p, *, max_ponder, epsilon):
    """Pure-JAX reference mirroring the PyTorch ACTFromCell semantics."""
    T, B, D = x.shape
    H = w_hh.shape[0]
    hx = jnp.zeros((B, H), jnp.float32)
    ponder_cost = jnp.zeros((B,), jnp.float32)
    all_hx, ponder_times = [], []
    for t in range(T):
        x_flag = jnp.concatenate([x[t], jnp.zeros((B, 1), jnp.float32)], axis=1)
        accum_h = jnp.zeros((B,), jnp.float32)
        accum_hx = jnp.zeros((B, H), jnp.float32)
        step_count = jnp.zeros((B,), jnp.float32)
        step_pc = jnp.zeros((B,), jnp.float32)
        selector = jnp.ones((B,), bool)
        for _ in range(max_ponder):
            step_pc = jnp.where(selector, -accum_h, step_pc)
            hx_new = jnp.tanh(x_flag @ w_ih.T + b_ih + hx @ w_hh.T + b_hh)
            hx = jnp.where(selector[:, None], hx_new, hx)
            accum_hx = jnp.where(selector[:, None], accum_hx + hx, accum_hx)
            h = jax.nn.sigmoid(hx @ w_p.T + b_p)[:, 0]
            accum_h_new = accum_h + h
            p = h - jnp.maximum(accum_h_new - 1.0, 0.0)
            accum_hx = jnp.where(selector[:, None], accum_hx + p[:, None] * hx, accum_hx)
            accum_h = jnp.where(selector, accum_h_new, accum_h)
            step_count = jnp.where(selector, step_count + 1.0, step_count)
            selector = accum_h < (1.0 - epsilon)
            x_flag = x_flag.at[:, D].set(1.0)
        ponder_cost = ponder_cost + step_pc
        hx = accum_hx / step_count[:, None]
        all_hx.append(hx)
        ponder_times.append(step_count)
    return jnp.stack(all_hx), hx[None], ponder_cost, jnp.stack(ponder_times)


if __name__ == "__main__":
    # Exact f32 matmuls everywhere (wrapper projection, reference, in-kernel dot) so the
    # integer ponder_times comparison is meaningful.
    jax.config.update("jax_default_matmul_precision", "highest")

    T, B, D, H = 6, 16, 16, 32
    max_ponder, epsilon = 12, 0.01

    key = jax.random.PRNGKey(0)
    k = jax.random.split(key, 6)
    scale = 1.0 / float(np.sqrt(H))
    # RNNCell(input_size=D+1, hidden_size=H) parameters, deterministic init.
    w_ih = jax.random.uniform(k[0], (H, D + 1), jnp.float32, -scale, scale)
    w_hh = jax.random.uniform(k[1], (H, H), jnp.float32, -scale, scale)
    b_ih = jax.random.uniform(k[2], (H,), jnp.float32, -scale, scale)
    b_hh = jax.random.uniform(k[3], (H,), jnp.float32, -scale, scale)
    # ponder_linear, bias filled with 1 (as in reset_parameters()).
    w_p = jax.random.uniform(k[4], (1, H), jnp.float32, -scale, scale)
    b_p = jnp.ones((1,), jnp.float32)

    x = jax.random.normal(k[5], (T, B, D), jnp.float32)

    outs = act_forward(x, w_ih, b_ih, w_hh, b_hh, w_p, b_p,
                       max_ponder=max_ponder, epsilon=epsilon)
    outs = jax.block_until_ready(outs)
    all_hx, hx_last, ponder_cost, ponder_times = outs

    ref_all_hx, ref_hx_last, ref_pc, ref_pt = act_reference(
        x, w_ih, b_ih, w_hh, b_hh, w_p, b_p,
        max_ponder=max_ponder, epsilon=epsilon)

    np.testing.assert_allclose(np.asarray(all_hx), np.asarray(ref_all_hx),
                               rtol=1e-4, atol=1e-4)
    np.testing.assert_allclose(np.asarray(hx_last), np.asarray(ref_hx_last),
                               rtol=1e-4, atol=1e-4)
    np.testing.assert_allclose(np.asarray(ponder_cost), np.asarray(ref_pc),
                               rtol=1e-4, atol=1e-4)
    np.testing.assert_allclose(np.asarray(ponder_times), np.asarray(ref_pt),
                               rtol=0, atol=0)

    print("KERNEL_OK")
</pallas_src>

<mosaic_0001>
module attributes {stable_mosaic.version = 11 : i64} {
  func.func @act_kernel(%arg0: i32, %arg1: i32, %arg2: memref<6x8x128xf32, #tpu.memory_space<vmem>>, %arg3: memref<1x128xf32, #tpu.memory_space<vmem>>, %arg4: memref<128x256xf32, #tpu.memory_space<vmem>>, %arg5: memref<1x128xf32, #tpu.memory_space<vmem>>, %arg6: memref<6x8x128xf32, #tpu.memory_space<vmem>>, %arg7: memref<8x128xf32, #tpu.memory_space<vmem>>, %arg8: memref<6x8x128xf32, #tpu.memory_space<vmem>>, %arg9: memref<8x128xf32, #tpu.memory_space<vmem>>) attributes {dimension_semantics = [#tpu.dimension_semantics<parallel>, #tpu.dimension_semantics<arbitrary>], iteration_bounds = array<i64: 2, 1>, scalar_prefetch = 0 : i64, scratch_operands = 1 : i64, tpu.core_type = #tpu.core_type<tc>, window_params = [{transform_indices = @transform_0, window_bounds = array<i64: 6, 8, 128>}, {pipeline_mode = #tpu.pipeline_mode<synchronous>, transform_indices = @transform_1, window_bounds = array<i64: 1, 128>}, {pipeline_mode = #tpu.pipeline_mode<synchronous>, transform_indices = @transform_2, window_bounds = array<i64: 128, 256>}, {pipeline_mode = #tpu.pipeline_mode<synchronous>, transform_indices = @transform_3, window_bounds = array<i64: 1, 128>}, {transform_indices = @transform_4, window_bounds = array<i64: 6, 8, 128>}, {transform_indices = @transform_5, window_bounds = array<i64: 8, 128>}, {transform_indices = @transform_6, window_bounds = array<i64: 6, 8, 128>}]} {
    %c0_i32 = arith.constant 0 : i32
    %0 = arith.cmpi eq, %arg1, %c0_i32 : i32
    %1 = arith.extui %0 : i1 to i32
    %c0_i32_0 = arith.constant 0 : i32
    %2 = arith.cmpi ne, %1, %c0_i32_0 : i32
    scf.if %2 {
      %cst = arith.constant 0.000000e+00 : f32
      %6 = vector.broadcast %cst : f32 to vector<8x128xf32>
      %c0_6 = arith.constant 0 : index
      %c0_7 = arith.constant 0 : index
      %7 = vector.load %arg9[%c0_6, %c0_7] : memref<8x128xf32, #tpu.memory_space<vmem>>, vector<8x128xf32>
      tpu.vector_store %arg9[%c0_6, %c0_7], %6 {strides = array<i32>} : memref<8x128xf32, #tpu.memory_space<vmem>>, vector<8x128xf32>,
      %cst_8 = arith.constant 0.000000e+00 : f32
      %8 = vector.broadcast %cst_8 : f32 to vector<8x128xf32>
      %c0_9 = arith.constant 0 : index
      %c0_10 = arith.constant 0 : index
      %9 = vector.load %arg7[%c0_9, %c0_10] : memref<8x128xf32, #tpu.memory_space<vmem>>, vector<8x128xf32>
      tpu.vector_store %arg7[%c0_9, %c0_10], %8 {strides = array<i32>} : memref<8x128xf32, #tpu.memory_space<vmem>>, vector<8x128xf32>,
    } else {
    }
    %c0 = arith.constant 0 : index
    %c0_1 = arith.constant 0 : index
    %3 = vector.load %arg3[%c0, %c0_1] : memref<1x128xf32, #tpu.memory_space<vmem>>, vector<1x128xf32>
    %c0_2 = arith.constant 0 : index
    %c0_3 = arith.constant 0 : index
    %4 = vector.load %arg5[%c0_2, %c0_3] : memref<1x128xf32, #tpu.memory_space<vmem>>, vector<1x128xf32>
    %c0_i32_4 = arith.constant 0 : i32
    %c6_i32 = arith.constant 6 : i32
    %5 = arith.addi %c0_i32_4, %c6_i32 : i32
    %c1_i32 = arith.constant 1 : i32
    scf.for %arg10 = %c0_i32_4 to %5 step %c1_i32  : i32 {
      %c1_i32_6 = arith.constant 1 : i32
      %6 = arith.muli %arg10, %c1_i32_6 : i32
      %c0_i32_7 = arith.constant 0 : i32
      %7 = arith.addi %c0_i32_7, %6 : i32
      %8 = arith.index_cast %7 : i32 to index
      %c0_8 = arith.constant 0 : index
      %c0_9 = arith.constant 0 : index
      %9 = vector.load %arg2[%8, %c0_8, %c0_9] : memref<6x8x128xf32, #tpu.memory_space<vmem>>, vector<1x8x128xf32>
      %10 = vector.shape_cast %9 : vector<1x8x128xf32> to vector<8x128xf32>
      %11 = vector.broadcast %3 : vector<1x128xf32> to vector<8x128xf32>
      %12 = arith.addf %10, %11 : vector<8x128xf32>
      %c0_10 = arith.constant 0 : index
      %c0_11 = arith.constant 0 : index
      %13 = vector.load %arg9[%c0_10, %c0_11] : memref<8x128xf32, #tpu.memory_space<vmem>>, vector<8x128xf32>
      %c0_12 = arith.constant 0 : index
      %c0_13 = arith.constant 0 : index
      %14 = vector.load %arg4[%c0_12, %c0_13] : memref<128x256xf32, #tpu.memory_space<vmem>>, vector<128x256xf32>
      %cst = arith.constant dense<0.000000e+00> : vector<8x256xf32>
      %15 = tpu.matmul %13, %14, %cst {dimension_numbers = #tpu.dot_dimension_numbers<[1], [0], [0], [1], [0, 0, 1, 1], [], []>, precision = #tpu.contract_precision<fp32>} : vector<8x128xf32>, vector<128x256xf32>, vector<8x256xf32> -> vector<8x256xf32>
      %16 = vector.extract_strided_slice %15 {offsets = [0, 0], sizes = [8, 128], strides = [1, 1]} : vector<8x256xf32> to vector<8x128xf32>
      %17 = arith.addf %10, %16 : vector<8x128xf32>
      %18 = math.tanh %17 : vector<8x128xf32>
      %c0_14 = arith.constant 0 : index
      %c0_15 = arith.constant 0 : index
      %19 = vector.load %arg4[%c0_14, %c0_15] : memref<128x256xf32, #tpu.memory_space<vmem>>, vector<128x256xf32>
      %cst_16 = arith.constant dense<0.000000e+00> : vector<8x256xf32>
      %20 = tpu.matmul %18, %19, %cst_16 {dimension_numbers = #tpu.dot_dimension_numbers<[1], [0], [0], [1], [0, 0, 1, 1], [], []>, precision = #tpu.contract_precision<fp32>} : vector<8x128xf32>, vector<128x256xf32>, vector<8x256xf32> -> vector<8x256xf32>
      %21 = vector.extract_strided_slice %20 {offsets = [0, 0], sizes = [8, 128], strides = [1, 1]} : vector<8x256xf32> to vector<8x128xf32>
      %22 = vector.extract_strided_slice %20 {offsets = [0, 128], sizes = [8, 128], strides = [1, 1]} : vector<8x256xf32> to vector<8x128xf32>
      %23 = vector.broadcast %4 : vector<1x128xf32> to vector<8x128xf32>
      %24 = arith.addf %22, %23 : vector<8x128xf32>
      %25 = arith.negf %24 : vector<8x128xf32>
      %26 = math.exp %25 : vector<8x128xf32>
      %cst_17 = arith.constant 1.000000e+00 : f32
      %27 = vector.broadcast %cst_17 : f32 to vector<8x128xf32>
      %28 = arith.addf %27, %26 : vector<8x128xf32>
      %29 = arith.divf %27, %28 : vector<8x128xf32>
      %cst_18 = arith.constant 1.000000e+00 : f32
      %30 = vector.broadcast %cst_18 : f32 to vector<8x128xf32>
      %31 = arith.subf %29, %30 : vector<8x128xf32>
      %cst_19 = arith.constant 0.000000e+00 : f32
      %32 = vector.broadcast %cst_19 : f32 to vector<8x128xf32>
      %33 = arith.maximumf %31, %32 : vector<8x128xf32>
      %34 = arith.subf %29, %33 : vector<8x128xf32>
      %35 = arith.mulf %34, %18 : vector<8x128xf32>
      %36 = arith.addf %18, %35 : vector<8x128xf32>
      %cst_20 = arith.constant 1.000000e+00 : f32
      %37 = vector.broadcast %cst_20 : f32 to vector<8x128xf32>
      %cst_21 = arith.constant 0.000000e+00 : f32
      %38 = vector.broadcast %cst_21 : f32 to vector<8x128xf32>
      %c1_i32_22 = arith.constant 1 : i32
      %39:7 = scf.while (%arg11 = %c1_i32_22, %arg12 = %18, %arg13 = %21, %arg14 = %29, %arg15 = %36, %arg16 = %37, %arg17 = %38) : (i32, vector<8x128xf32>, vector<8x128xf32>, vector<8x128xf32>, vector<8x128xf32>, vector<8x128xf32>, vector<8x128xf32>) -> (i32, vector<8x128xf32>, vector<8x128xf32>, vector<8x128xf32>, vector<8x128xf32>, vector<8x128xf32>, vector<8x128xf32>) {
        %c12_i32 = arith.constant 12 : i32
        %54 = arith.cmpi slt, %arg11, %c12_i32 : i32
        %55 = vector.shape_cast %arg14 : vector<8x128xf32> to vector<1x8x128xf32>
        %cst_33 = arith.constant dense<0x7F800000> : vector<1xf32>
        %56 = vector.multi_reduction <minimumf>, %55, %cst_33 [1, 2] : vector<1x8x128xf32> to vector<1xf32>
        %57 = vector.shape_cast %56 : vector<1xf32> to vector<1x1x1xf32>
        %58 = vector.extract %57[0, 0, 0] : f32 from vector<1x1x1xf32>
        %cst_34 = arith.constant 9.900000e-01 : f32
        %59 = arith.cmpf olt, %58, %cst_34 : f32
        %60 = arith.andi %54, %59 : i1
        scf.condition(%60) %arg11, %arg12, %arg13, %arg14, %arg15, %arg16, %arg17 : i32, vector<8x128xf32>, vector<8x128xf32>, vector<8x128xf32>, vector<8x128xf32>, vector<8x128xf32>, vector<8x128xf32>
      } do {
      ^bb0(%arg11: i32, %arg12: vector<8x128xf32>, %arg13: vector<8x128xf32>, %arg14: vector<8x128xf32>, %arg15: vector<8x128xf32>, %arg16: vector<8x128xf32>, %arg17: vector<8x128xf32>):
        %cst_33 = arith.constant 9.900000e-01 : f32
        %54 = vector.broadcast %cst_33 : f32 to vector<8x128xf32>
        %55 = arith.cmpf olt, %arg14, %54 : vector<8x128xf32>
        %true = arith.constant true
        %56 = vector.broadcast %true : i1 to vector<8x128xi1>
        %57 = arith.andi %55, %56 : vector<8x128xi1>
        %cst_34 = arith.constant 0.000000e+00 : f32
        %58 = vector.broadcast %cst_34 : f32 to vector<8x128xf32>
        %59 = arith.subf %58, %arg14 : vector<8x128xf32>
        %60 = arith.select %57, %59, %arg17 : vector<8x128xi1>, vector<8x128xf32>
        %61 = arith.addf %12, %arg13 : vector<8x128xf32>
        %62 = math.tanh %61 : vector<8x128xf32>
        %63 = arith.select %57, %62, %arg12 : vector<8x128xi1>, vector<8x128xf32>
        %64 = arith.addf %arg15, %63 : vector<8x128xf32>
        %65 = arith.select %57, %64, %arg15 : vector<8x128xi1>, vector<8x128xf32>
        %c0_35 = arith.constant 0 : index
        %c0_36 = arith.constant 0 : index
        %66 = vector.load %arg4[%c0_35, %c0_36] : memref<128x256xf32, #tpu.memory_space<vmem>>, vector<128x256xf32>
        %cst_37 = arith.constant dense<0.000000e+00> : vector<8x256xf32>
        %67 = tpu.matmul %63, %66, %cst_37 {dimension_numbers = #tpu.dot_dimension_numbers<[1], [0], [0], [1], [0, 0, 1, 1], [], []>, precision = #tpu.contract_precision<fp32>} : vector<8x128xf32>, vector<128x256xf32>, vector<8x256xf32> -> vector<8x256xf32>
        %68 = vector.extract_strided_slice %67 {offsets = [0, 0], sizes = [8, 128], strides = [1, 1]} : vector<8x256xf32> to vector<8x128xf32>
        %69 = vector.extract_strided_slice %67 {offsets = [0, 128], sizes = [8, 128], strides = [1, 1]} : vector<8x256xf32> to vector<8x128xf32>
        %70 = vector.broadcast %4 : vector<1x128xf32> to vector<8x128xf32>
        %71 = arith.addf %69, %70 : vector<8x128xf32>
        %72 = arith.negf %71 : vector<8x128xf32>
        %73 = math.exp %72 : vector<8x128xf32>
        %cst_38 = arith.constant 1.000000e+00 : f32
        %74 = vector.broadcast %cst_38 : f32 to vector<8x128xf32>
        %75 = arith.addf %74, %73 : vector<8x128xf32>
        %76 = arith.divf %74, %75 : vector<8x128xf32>
        %77 = arith.addf %arg14, %76 : vector<8x128xf32>
        %cst_39 = arith.constant 1.000000e+00 : f32
        %78 = vector.broadcast %cst_39 : f32 to vector<8x128xf32>
        %79 = arith.subf %77, %78 : vector<8x128xf32>
        %cst_40 = arith.constant 0.000000e+00 : f32
        %80 = vector.broadcast %cst_40 : f32 to vector<8x128xf32>
        %81 = arith.maximumf %79, %80 : vector<8x128xf32>
        %82 = arith.subf %76, %81 : vector<8x128xf32>
        %83 = arith.mulf %82, %63 : vector<8x128xf32>
        %84 = arith.addf %65, %83 : vector<8x128xf32>
        %85 = arith.select %57, %84, %65 : vector<8x128xi1>, vector<8x128xf32>
        %86 = arith.select %57, %77, %arg14 : vector<8x128xi1>, vector<8x128xf32>
        %cst_41 = arith.constant 1.000000e+00 : f32
        %87 = vector.broadcast %cst_41 : f32 to vector<8x128xf32>
        %88 = arith.addf %arg16, %87 : vector<8x128xf32>
        %89 = arith.select %57, %88, %arg16 : vector<8x128xi1>, vector<8x128xf32>
        %c1_i32_42 = arith.constant 1 : i32
        %90 = arith.addi %arg11, %c1_i32_42 : i32
        %c12_i32 = arith.constant 12 : i32
        %91 = arith.cmpi slt, %90, %c12_i32 : i32
        %cst_43 = arith.constant 9.900000e-01 : f32
        %92 = vector.broadcast %cst_43 : f32 to vector<8x128xf32>
        %93 = arith.cmpf olt, %86, %92 : vector<8x128xf32>
        %94 = vector.broadcast %91 : i1 to vector<8x128xi1>
        %95 = arith.andi %93, %94 : vector<8x128xi1>
        %cst_44 = arith.constant 0.000000e+00 : f32
        %96 = vector.broadcast %cst_44 : f32 to vector<8x128xf32>
        %97 = arith.subf %96, %86 : vector<8x128xf32>
        %98 = arith.select %95, %97, %60 : vector<8x128xi1>, vector<8x128xf32>
        %99 = arith.addf %12, %68 : vector<8x128xf32>
        %100 = math.tanh %99 : vector<8x128xf32>
        %101 = arith.select %95, %100, %63 : vector<8x128xi1>, vector<8x128xf32>
        %102 = arith.addf %85, %101 : vector<8x128xf32>
        %103 = arith.select %95, %102, %85 : vector<8x128xi1>, vector<8x128xf32>
        %c0_45 = arith.constant 0 : index
        %c0_46 = arith.constant 0 : index
        %104 = vector.load %arg4[%c0_45, %c0_46] : memref<128x256xf32, #tpu.memory_space<vmem>>, vector<128x256xf32>
        %cst_47 = arith.constant dense<0.000000e+00> : vector<8x256xf32>
        %105 = tpu.matmul %101, %104, %cst_47 {dimension_numbers = #tpu.dot_dimension_numbers<[1], [0], [0], [1], [0, 0, 1, 1], [], []>, precision = #tpu.contract_precision<fp32>} : vector<8x128xf32>, vector<128x256xf32>, vector<8x256xf32> -> vector<8x256xf32>
        %106 = vector.extract_strided_slice %105 {offsets = [0, 0], sizes = [8, 128], strides = [1, 1]} : vector<8x256xf32> to vector<8x128xf32>
        %107 = vector.extract_strided_slice %105 {offsets = [0, 128], sizes = [8, 128], strides = [1, 1]} : vector<8x256xf32> to vector<8x128xf32>
        %108 = vector.broadcast %4 : vector<1x128xf32> to vector<8x128xf32>
        %109 = arith.addf %107, %108 : vector<8x128xf32>
        %110 = arith.negf %109 : vector<8x128xf32>
        %111 = math.exp %110 : vector<8x128xf32>
        %cst_48 = arith.constant 1.000000e+00 : f32
        %112 = vector.broadcast %cst_48 : f32 to vector<8x128xf32>
        %113 = arith.addf %112, %111 : vector<8x128xf32>
        %114 = arith.divf %112, %113 : vector<8x128xf32>
        %115 = arith.addf %86, %114 : vector<8x128xf32>
        %cst_49 = arith.constant 1.000000e+00 : f32
        %116 = vector.broadcast %cst_49 : f32 to vector<8x128xf32>
        %117 = arith.subf %115, %116 : vector<8x128xf32>
        %cst_50 = arith.constant 0.000000e+00 : f32
        %118 = vector.broadcast %cst_50 : f32 to vector<8x128xf32>
        %119 = arith.maximumf %117, %118 : vector<8x128xf32>
        %120 = arith.subf %114, %119 : vector<8x128xf32>
        %121 = arith.mulf %120, %101 : vector<8x128xf32>
        %122 = arith.addf %103, %121 : vector<8x128xf32>
        %123 = arith.select %95, %122, %103 : vector<8x128xi1>, vector<8x128xf32>
        %124 = arith.select %95, %115, %86 : vector<8x128xi1>, vector<8x128xf32>
        %cst_51 = arith.constant 1.000000e+00 : f32
        %125 = vector.broadcast %cst_51 : f32 to vector<8x128xf32>
        %126 = arith.addf %89, %125 : vector<8x128xf32>
        %127 = arith.select %95, %126, %89 : vector<8x128xi1>, vector<8x128xf32>
        %c2_i32 = arith.constant 2 : i32
        %128 = arith.addi %arg11, %c2_i32 : i32
        scf.yield %128, %101, %106, %124, %123, %127, %98 : i32, vector<8x128xf32>, vector<8x128xf32>, vector<8x128xf32>, vector<8x128xf32>, vector<8x128xf32>, vector<8x128xf32>
      }
      %40 = tpu.reciprocal %39#5 : vector<8x128xf32> -> vector<8x128xf32>
      %41 = arith.mulf %39#4, %40 : vector<8x128xf32>
      %42 = arith.index_cast %7 : i32 to index
      %c0_23 = arith.constant 0 : index
      %c0_24 = arith.constant 0 : index
      %43 = vector.load %arg6[%42, %c0_23, %c0_24] : memref<6x8x128xf32, #tpu.memory_space<vmem>>, vector<1x8x128xf32>
      %44 = vector.shape_cast %43 : vector<1x8x128xf32> to vector<8x128xf32>
      %45 = vector.shape_cast %41 : vector<8x128xf32> to vector<1x8x128xf32>
      tpu.vector_store %arg6[%42, %c0_23, %c0_24], %45 {strides = array<i32>} : memref<6x8x128xf32, #tpu.memory_space<vmem>>, vector<1x8x128xf32>,
      %c0_25 = arith.constant 0 : index
      %c0_26 = arith.constant 0 : index
      %46 = vector.load %arg9[%c0_25, %c0_26] : memref<8x128xf32, #tpu.memory_space<vmem>>, vector<8x128xf32>
      tpu.vector_store %arg9[%c0_25, %c0_26], %41 {strides = array<i32>} : memref<8x128xf32, #tpu.memory_space<vmem>>, vector<8x128xf32>,
      %c0_27 = arith.constant 0 : index
      %c0_28 = arith.constant 0 : index
      %47 = vector.load %arg7[%c0_27, %c0_28] : memref<8x128xf32, #tpu.memory_space<vmem>>, vector<8x128xf32>
      %48 = arith.addf %47, %39#6 : vector<8x128xf32>
      %c0_29 = arith.constant 0 : index
      %c0_30 = arith.constant 0 : index
      %49 = vector.load %arg7[%c0_29, %c0_30] : memref<8x128xf32, #tpu.memory_space<vmem>>, vector<8x128xf32>
      tpu.vector_store %arg7[%c0_29, %c0_30], %48 {strides = array<i32>} : memref<8x128xf32, #tpu.memory_space<vmem>>, vector<8x128xf32>,
      %50 = arith.index_cast %7 : i32 to index
      %c0_31 = arith.constant 0 : index
      %c0_32 = arith.constant 0 : index
      %51 = vector.load %arg8[%50, %c0_31, %c0_32] : memref<6x8x128xf32, #tpu.memory_space<vmem>>, vector<1x8x128xf32>
      %52 = vector.shape_cast %51 : vector<1x8x128xf32> to vector<8x128xf32>
      %53 = vector.shape_cast %39#5 : vector<8x128xf32> to vector<1x8x128xf32>
      tpu.vector_store %arg8[%50, %c0_31, %c0_32], %53 {strides = array<i32>} : memref<6x8x128xf32, #tpu.memory_space<vmem>>, vector<1x8x128xf32>,
    }
    %c6_i32_5 = arith.constant 6 : i32
    return
  }
  func.func @transform_0(%arg0: i32, %arg1: i32) -> (i32, i32, i32) {
    %c0_i32 = arith.constant 0 : i32
    %c0_i32_0 = arith.constant 0 : i32
    return %arg1, %arg0, %c0_i32 : i32, i32, i32
  }
  func.func @transform_1(%arg0: i32, %arg1: i32) -> (i32, i32) {
    %c0_i32 = arith.constant 0 : i32
    %c0_i32_0 = arith.constant 0 : i32
    %c0_i32_1 = arith.constant 0 : i32
    return %c0_i32, %c0_i32_0 : i32, i32
  }
  func.func @transform_2(%arg0: i32, %arg1: i32) -> (i32, i32) {
    %c0_i32 = arith.constant 0 : i32
    %c0_i32_0 = arith.constant 0 : i32
    %c0_i32_1 = arith.constant 0 : i32
    return %c0_i32, %c0_i32_0 : i32, i32
  }
  func.func @transform_3(%arg0: i32, %arg1: i32) -> (i32, i32) {
    %c0_i32 = arith.constant 0 : i32
    %c0_i32_0 = arith.constant 0 : i32
    %c0_i32_1 = arith.constant 0 : i32
    return %c0_i32, %c0_i32_0 : i32, i32
  }
  func.func @transform_4(%arg0: i32, %arg1: i32) -> (i32, i32, i32) {
    %c0_i32 = arith.constant 0 : i32
    %c0_i32_0 = arith.constant 0 : i32
    return %arg1, %arg0, %c0_i32 : i32, i32, i32
  }
  func.func @transform_5(%arg0: i32, %arg1: i32) -> (i32, i32) {
    %c0_i32 = arith.constant 0 : i32
    %c0_i32_0 = arith.constant 0 : i32
    return %arg0, %c0_i32 : i32, i32
  }
  func.func @transform_6(%arg0: i32, %arg1: i32) -> (i32, i32, i32) {
    %c0_i32 = arith.constant 0 : i32
    %c0_i32_0 = arith.constant 0 : i32
    return %arg1, %arg0, %c0_i32 : i32, i32, i32
  }
}

</mosaic_0001>

<bundles_post_ra>
// kernel: tpu_custom_call.1
= control target key start
LH: loop header
LB: loop body
LE: loop exit
PB: predicated region body
PF: predicated region fallthrough
CT: control target
= control target key end

     0   :  { %s6990_s0 = inlined_call_operand.hbm [shape: f32[6,16,128], index: 0, kind: input, shape index: {}]   ;;  %s6991_s1 = inlined_call_operand.vmem [shape: f32[1,128], index: 1, kind: input, shape index: {}]   ;;  %s6992_s2 = inlined_call_operand.hbm [shape: f32[128,256], index: 2, kind: input, shape index: {}]   ;;  %s6993_s3 = inlined_call_operand.vmem [shape: f32[1,128], index: 3, kind: input, shape index: {}]   ;;  %s6994_s4 = inlined_call_operand.hbm [shape: f32[6,16,128], index: 4, kind: output, shape index: {0}]   ;;  %s6995_s5 = inlined_call_operand.hbm [shape: f32[16,128], index: 5, kind: output, shape index: {1}]   ;;  %s6996_s6 = inlined_call_operand.hbm [shape: f32[6,16,128], index: 6, kind: output, shape index: {2}]  }
   0x1   :  { %7301 = sst [smem:[#allocation214_spill]] %s6995_s5 }
   0x2   :  { %7302 = sst [smem:[#allocation215_spill]] %s6996_s6 }
   0x3   :  { %12 = vsyncpa [#allocation4], 0 }
   0x4   :  { %14 = vsyncpa [#allocation4 + $0x1], 0 }
   0x5   :  { %15 = vsyncpa [#allocation7], 0 }
   0x6   :  { %16 = vsyncpa [#allocation5], 0 }
   0x7   :  { %18 = vsyncpa [#allocation5 + $0x1], 0 }
   0x8   :  { %19 = vsyncpa [#allocation10], 0 }
   0x9   :  { %21 = vsyncpa [#allocation10 + $0x1], 0  ;;  %s4765_s21 = smov 0   ;;  %s4767_s22 = smov 0  }
   0xa   :  { %s4769_s23 = smov 0   ;;  %s4771_s24 = smov 0  }
   0xb   :  { %s4773_s25 = smov 0   ;;  %s4775_s26 = smov 0  }
   0xc LB: > { %7303 = sst [smem:[#allocation16_spill]] %s4649_s21  ;;  %s4796_s27 = sadd.s32 4294967295, %s4669_s26   ;;  %s4669_s26 = sphi %s4775_s26, %s27_s26   ;;  %s4665_s25 = sphi %s4773_s25, %s7802_s25   ;;  %s4661_s24 = sphi %s4771_s24, %s7801_s24   ;;  %s4657_s23 = sphi %s4769_s23, %s7800_s23   ;;  %s4653_s22 = sphi %s4767_s22, %s7799_s22   ;;  %s4649_s21 = sphi %s4765_s21, %s7798_s21  }
   0xd   : > { %7304 = sst [smem:[#allocation17_spill]] %s4669_s26  ;;  %s6999_s28 = sadd.s32 4294967294, %s4669_s26  }
   0xe   : > { %p55_p0 = scmp.ne.s32.totalorder %s4657_s23, %s4653_s22  ;;  %p56_p1 = scmp.eq.s32.totalorder %s4669_s26, 0 }
   0xf   : > { %p61_p2 = scmp.ne.s32.totalorder %s4653_s22, %s4649_s21  ;;  %p62_p3 = scmp.eq.s32.totalorder %s4796_s27, 0 }
  0x10   : > { %p4805_p4 = por %p56_p1, %p55_p0  ;;  %p150_p5 = scmp.eq.s32.totalorder %s4796_s27, 1 }
  0x11   : > { %p4812_p6 = por %p62_p3, %p61_p2  ;;  %p156_p7 = scmp.eq.s32.totalorder %s6999_s28, 1 }
  0x12   : > { %p4818_p8 = por %p150_p5, %p55_p0  ;;  %p4201_p9 = scmp.ge.s32.totalorder %s4669_s26, 1 }
  0x13   : > { %s7306_s30 = scalar_select %p4812_p6, 1, 0 }
  0x14   : > { %s7307_s7 = scalar_select %p4818_p8, 1, 0 }
  0x15   : > { %p4823_p10 = por %p156_p7, %p61_p2  ;;  %p217_p11 = scmp.lt.s32.totalorder %s4669_s26, 3 }
  0x16   : > { %s4715_s10 = smov [#allocation6]   ;;  %p4261_p1 = scmp.lt.s32.totalorder %s4669_s26, 2 }
  0x17   : > { %s7308_s8 = scalar_select %p4823_p10, 1, 0 }
  0x18   : > { %p4828_p12 = pnand %p4201_p9, %p217_p11  ;;  %s232_s11 = sshll.u32 %s4715_s10, 4  ;;  %s233_s11 = int_to_ptr.vmem [resolvable:$true] %s232_s11 }
  0x19   : > { %7309 = sst [smem:[#allocation18_spill]] %s7308_s8  ;;  %p4844_p2 = pnand %p4261_p1, %p4805_p4 }
  0x1a   : > { %p4242_p13 = pneg %p4828_p12  ;;  %s39_s14 = sadd.s32 1, %s4665_s25 }
  0x1b   : > { %s4442_s15 = scalar_lea.vmem %s233_s11, 4096  ;;  %p4450_p0 = scmp.lt.s32.totalorder %s233_s11, %s233_s11 }
  0x1c   : > { %p4838_p5 = pnand %p4242_p13, %p62_p3  ;;  %p4443_p9 = scmp.ne.s32.totalorder %s233_s11, %s4442_s15 }
  0x1d   : > { %p4451_p8 = scmp.lt.s32.totalorder %s4442_s15, %s4442_s15 }
  0x1e   : > { %p4433_p7 = pneg %p4838_p5 }
  0x1f   : > { %p4452_p6 = por %p4451_p8, %p4450_p0 }
  0x20   : > { %p4445_p11 = pnand %p4443_p9, %p4433_p7 }
  0x22   : > { %p4446_p10 = pneg %p4445_p11 }
  0x24   : > { %p4453_p13 = pnand %p4452_p6, %p4446_p10 }
  0x26   : > { %4456 = shalt.err (!%p4453_p13)
}
  0x27   : > { %s4716_s16 = smov 256   ;;  %s4717_s17 = smov 16  }
  0x28   : > { %4245 = dma.hbm_to_vmem [thread:$0]  (!%p4838_p5), %s6992_s2, 4096, %s233_s11, [#allocation7], %s4716_s16, %s4716_s16, %s4717_s17  }
  0x29   : > { %p41_p4 = scmp.ge.s32.totalorder %s39_s14, 2  ;;  %s48_s20 = sadd.s32 1, %s4657_s23 }
  0x2a   : > { %s249_s29 = sand.u32 1, %s4657_s23   ;;  %s4204_s28 = sshll.u32 %s4665_s25, 7 }
  0x2b   : > { %s7804_s14 = smov (%p41_p4, %s39_s14), 0  ;;  %s4224_s10 = smul.u32 48, %s249_s29 }
  0x2c   : > { %s44_s15 = ssub.s32 %s4665_s25, %s7804_s14  ;;  %s261_s12 = scalar_lea.hbm %s6990_s0, %s4204_s28 }
  0x2d   : > { %p46_p6 = scmp.eq.s32.totalorder %s44_s15, 0  ;;  %s253_s21 = scalar_lea.vmem [#allocation3], %s4224_s10 }
  0x2e   : > { %s262_s6 = sshll.u32 %s253_s21, 4  ;;  %s250_s11 = scalar_lea.sflag [#allocation4], %s249_s29  ;;  %s263_s6 = int_to_ptr.vmem [resolvable:$true] %s262_s6 }
  0x2f   : > { %s4869_s5 = scalar_select %p46_p6, %s4657_s23, %s48_s20  }
  0x30   : > { %p4459_p8 = pneg %p4844_p2  ;;  %s4470_s17 = scalar_lea.vmem %s263_s6, 768 }
  0x31   : > { %p4471_p10 = scmp.ne.s32.totalorder %s263_s6, %s4470_s17  ;;  %s4718_s18 = smov [#allocation3]  }
  0x32   : > { %s4475_s19 = sshll.u32 %s4718_s18, 4  ;;  %s4476_s19 = int_to_ptr.vmem [resolvable:$false] %s4475_s19 }
  0x33   : > { %p4473_p0 = pnand %p4471_p10, %p4459_p8  ;;  %s4477_s15 = scalar_lea.vmem %s4476_s19, 1536 }
  0x34   : > { %p4478_p5 = scmp.lt.s32.totalorder %s263_s6, %s4476_s19  ;;  %p4479_p7 = scmp.lt.s32.totalorder %s4477_s15, %s4470_s17 }
  0x35   : > { %p4474_p1 = pneg %p4473_p0 }
  0x36   : > { %p4480_p9 = por %p4479_p7, %p4478_p5 }
  0x38   : > { %p4481_p11 = pnand %p4480_p9, %p4474_p1 }
  0x3a   : > { %4484 = shalt.err (!%p4481_p11)
}
  0x3b   : > { %s4719_s21 = smov 128   ;;  %s4720_s26 = smov 8  }
  0x3c   : > { %4249 = dma.hbm_to_vmem [thread:$0]  (!%p4844_p2), %s261_s12, 768, %s263_s6, %s250_s11, %s4716_s16, %s4719_s21, %s4720_s26  }
  0x3d   : > { %274 = sbr.rel (%p4828_p12) target bundleno = 1892 (0x764), region = 36 }
  0x42   : > { %s4879_s28 = sand.u32 1, %s4653_s22   ;;  %p7313_p13 = scmp.ne.s32.totalorder %s7306_s30, 0 }
  0x43   : > { %s4882_s8 = smul.u32 48, %s4879_s28  ;;  %s277_s20 = scalar_lea.sflag [#allocation4], %s4879_s28 }
  0x45   : > { %s280_s29 = scalar_lea.vmem [#allocation3], %s4882_s8 }
  0x46   : > { %4632 = dma.done.wait (%p7313_p13), %s277_s20, 768  }
  0x47   : > { %4634 = vsyncadd (%p7313_p13), %s277_s20, 4294966528 }
  0x48   : > { %4636 = dma.done.wait (%p62_p3), [#allocation7], 4096  }
  0x49   : > { %4638 = vsyncadd (%p62_p3), [#allocation7], 4294963200  ;;  %v4721_v0 = vmov 0.0   ;;  %s4207_s6 = sshll.u32 %s4879_s28, 3  ;;  %v4901_v1 = vld [vmem:[%s6991_s1] ss:$0 sm:$0xff] }
  0x4a   : > { %330 = vst [vmem:[#allocation2] sm:$0xff] %v4721_v0  ;;  %s4895_s9 = scalar_lea.vmem [#allocation9], %s4207_s6  ;;  %7314 = vst [vmem:[#allocation19_spill] sm:$0xff] %v4901_v1  ;;  %v4906_v2 = vld [vmem:[%s6993_s3] ss:$0 sm:$0xff]  ;;  %s7300_s12 = scalar_lea.vmem [#allocation8], %s4882_s8 }
  0x4b   : > { %331 = vst [vmem:[%s4895_s9] sm:$0xff] %v4721_v0  ;;  %7315 = vst [vmem:[#allocation20_spill] sm:$0xff] %v4906_v2  ;;  %s7299_s11 = scalar_lea.vmem [#allocation11], %s4882_s8  ;;  %s4910_s17 = smov 0  }
  0x4c LB: >> { %v382_v3 = vld [vmem:[#allocation6 + $0xf8] sm:$0xff]  ;;  %v381_v4 = vld [vmem:[#allocation6 + $0xf0] sm:$0xff]  ;;  %v380_v5 = vld [vmem:[#allocation6 + $0xe8] sm:$0xff]  ;;  %v7006_v12 = vmov 0.0   ;;  %s5673_s18 = sshll.u32 %s4673_s17, 3  ;;  %s4673_s17 = sphi %s4910_s17, %s339_s17  }
  0x4d   : >> { %v4915_v6 = vand.u32 4294901760, %v382_v3  ;;  %v4917_v7 = vand.u32 4294901760, %v381_v4  ;;  %v4919_v8 = vand.u32 4294901760, %v380_v5  ;;  %v379_v9 = vld [vmem:[#allocation6 + $0xe0] sm:$0xff]  ;;  %v378_v10 = vld [vmem:[#allocation6 + $0xd8] sm:$0xff]  ;;  %v377_v11 = vld [vmem:[#allocation6 + $0xd0] sm:$0xff]  ;;  %479 = vmatprep.mubr.f32.mxu0 %v7006_v12  ;;  %714 = vmatprep.mubr.f32.mxu1 %v7006_v12  ;;  %s341_s19 = scalar_lea.vmem %s280_s29, %s5673_s18 [#allocation3] }
  0x4e   : >> { %v4923_v13 = vand.u32 4294901760, %v379_v9  ;;  %v4925_v14 = vand.u32 4294901760, %v378_v10  ;;  %v4927_v15 = vand.u32 4294901760, %v377_v11  ;;  %v376_v16 = vld [vmem:[#allocation6 + $0xc8] sm:$0xff]  ;;  %v375_v17 = vld [vmem:[#allocation6 + $0xc0] sm:$0xff]  ;;  %v374_v18 = vld [vmem:[#allocation6 + $0xb8] sm:$0xff] }
  0x4f   : >> { %7316 = vst [vmem:[#allocation21_spill] sm:$0xff] %v4915_v6  ;;  %384 = vmatprep.subr.mxu0 %v4915_v6  ;;  %v4930_v19 = vand.u32 4294901760, %v376_v16  ;;  %v4932_v20 = vand.u32 4294901760, %v375_v17  ;;  %v4934_v21 = vand.u32 4294901760, %v374_v18  ;;  %v4937_v22 = vsub.f32 %v382_v3, %v4915_v6  ;;  %v4939_v23 = vld [vmem:[#allocation6 + $0xb0] sm:$0xff]  ;;  %v4941_v24 = vld [vmem:[#allocation6 + $0xa8] sm:$0xff] }
  0x50   : >> { %v4943_v25 = vld [vmem:[#allocation6 + $0xa0] sm:$0xff]  ;;  %386 = vmatpush1.msra.mxu0 %v4917_v7  ;;  %v4947_v26 = vand.u32 4294901760, %v4939_v23  ;;  %v4950_v27 = vsub.f32 %v381_v4, %v4917_v7  ;;  %v4953_v28 = vand.u32 4294901760, %v4941_v24  ;;  %v4956_v29 = vsub.f32 %v380_v5, %v4919_v8  ;;  %v4958_v30 = vld [vmem:[#allocation6 + $0x98] sm:$0xff]  ;;  %v4960_v31 = vld [vmem:[#allocation6 + $0x90] sm:$0xff] }
  0x51   : >> { %7317 = vst [vmem:[#allocation22_spill] sm:$0xff] %v4937_v22  ;;  %v4962_v32 = vld [vmem:[#allocation6 + $0x88] sm:$0xff]  ;;  %388 = vmatprep.subr.mxu0 %v4919_v8  ;;  %v4966_v33 = vand.u32 4294901760, %v4937_v22  ;;  %v4969_v34 = vand.u32 4294901760, %v4943_v25  ;;  %v4972_v35 = vsub.f32 %v379_v9, %v4923_v13  ;;  %v4975_v36 = vand.u32 4294901760, %v4958_v30  ;;  %v4990_v41 = vld [vmem:[#allocation6 + $0x80] sm:$0xff] }
  0x52   : >> { %390 = vmatpush1.msra.mxu0 %v4923_v13  ;;  %v4979_v37 = vand.u32 4294901760, %v4950_v27  ;;  %v4982_v38 = vand.u32 4294901760, %v4956_v29  ;;  %v4985_v39 = vsub.f32 %v378_v10, %v4925_v14  ;;  %v4988_v40 = vand.u32 4294901760, %v4960_v31  ;;  %v5015_v50 = vld [vmem:[#allocation6 + $0x78] sm:$0xff]  ;;  %v5028_v55 = vld [vmem:[#allocation6 + $0x70] sm:$0xff]  ;;  %v5040_v60 = vld [vmem:[#allocation6 + $0x68] sm:$0xff] }
  0x53   : >> { %7318 = vst [vmem:[#allocation23_spill] sm:$0xff] %v4966_v33  ;;  %7319 = vst [vmem:[#allocation24_spill] sm:$0xff] %v4969_v34  ;;  %392 = vmatprep.subr.mxu0 %v4925_v14  ;;  %v493_v42 = vsub.f32 %v4937_v22, %v4966_v33  ;;  %v4996_v43 = vand.u32 4294901760, %v4972_v35  ;;  %v4999_v44 = vsub.f32 %v377_v11, %v4927_v15  ;;  %v5002_v45 = vand.u32 4294901760, %v4962_v32  ;;  %v5054_v3 = vld [vmem:[#allocation6 + $0x60] sm:$0xff]  ;;  %v5068_v11 = vld [vmem:[#allocation6 + $0x58] sm:$0xff] }
  0x54   : >> { %7320 = vst [vmem:[#allocation25_spill] sm:$0xff] %v4975_v36  ;;  %7321 = vst [vmem:[#allocation26_spill] sm:$0xff] %v4979_v37  ;;  %394 = vmatpush1.msra.mxu0 %v4927_v15  ;;  %v499_v46 = vsub.f32 %v4950_v27, %v4979_v37  ;;  %v505_v47 = vsub.f32 %v4956_v29, %v4982_v38  ;;  %v5010_v48 = vand.u32 4294901760, %v4985_v39  ;;  %v5026_v54 = vand.u32 4294901760, %v4990_v41  ;;  %v5114_v2 = vld [vmem:[#allocation6 + $0x48] sm:$0xff]  ;;  %v5216_v37 = vld [vmem:[#allocation6 + $0x18] sm:$0xff] }
  0x55   : >> { %7322 = vst [vmem:[#allocation27_spill] sm:$0xff] %v4982_v38  ;;  %7323 = vst [vmem:[#allocation28_spill] sm:$0xff] %v4988_v40  ;;  %v5013_v49 = vsub.f32 %v376_v16, %v4930_v19  ;;  %396 = vmatprep.subr.mxu0 %v4930_v19  ;;  %v5018_v51 = vand.u32 4294901760, %v493_v42  ;;  %v511_v52 = vsub.f32 %v4972_v35, %v4996_v43  ;;  %v5023_v53 = vand.u32 4294901760, %v4999_v44  ;;  %v5200_v38 = vld [vmem:[#allocation6 + $0x20] sm:$0xff] }
  0x56   : >> { %7324 = vst [vmem:[#allocation29_spill] sm:$0xff] %v4996_v43  ;;  %7325 = vst [vmem:[#allocation30_spill] sm:$0xff] %v5002_v45  ;;  %398 = vmatpush1.msra.mxu0 %v4932_v20  ;;  %v5031_v56 = vand.u32 4294901760, %v499_v46  ;;  %v5033_v57 = vand.u32 4294901760, %v505_v47  ;;  %v517_v58 = vsub.f32 %v4985_v39, %v5010_v48  ;;  %v5049_v63 = vsub.f32 %v375_v17, %v4932_v20  ;;  %v5084_v46 = vld [vmem:[#allocation6 + $0x50] sm:$0xff] }
  0x57   : >> { %7326 = vst [vmem:[#allocation31_spill] sm:$0xff] %v5010_v48  ;;  %7327 = vst [vmem:[#allocation32_spill] sm:$0xff] %v5018_v51  ;;  %v5038_v59 = vand.u32 4294901760, %v5013_v49  ;;  %400 = vmatprep.subr.mxu0 %v4934_v21  ;;  %495 = vmatprep.subr.mxu1 %v5018_v51  ;;  %v5044_v61 = vand.u32 4294901760, %v511_v52  ;;  %v523_v62 = vsub.f32 %v4999_v44, %v5023_v53  ;;  %v5052_v0 = vand.u32 4294901760, %v5015_v50 }
  0x58   : >> { %7328 = vst [vmem:[#allocation33_spill] sm:$0xff] %v5023_v53  ;;  %7329 = vst [vmem:[#allocation34_spill] sm:$0xff] %v5026_v54  ;;  %402 = vmatpush1.msra.mxu0 %v4947_v26  ;;  %501 = vmatpush1.msra.mxu1 %v5031_v56  ;;  %v5058_v4 = vand.u32 4294901760, %v517_v58  ;;  %v5063_v9 = vsub.f32 %v374_v18, %v4934_v21  ;;  %v5066_v10 = vand.u32 4294901760, %v5028_v55  ;;  %v5075_v17 = vand.u32 4294901760, %v5049_v63  ;;  %v5171_v53 = vld [vmem:[#allocation6 + $0x30] sm:$0xff] }
  0x59   : >> { %7330 = vst [vmem:[#allocation35_spill] sm:$0xff] %v5031_v56  ;;  %7331 = vst [vmem:[#allocation36_spill] sm:$0xff] %v5033_v57  ;;  %v529_v5 = vsub.f32 %v5013_v49, %v5038_v59  ;;  %404 = vmatprep.subr.mxu0 %v4953_v28  ;;  %507 = vmatprep.subr.mxu1 %v5033_v57  ;;  %v5072_v16 = vand.u32 4294901760, %v523_v62  ;;  %v5079_v42 = vsub.f32 %v4939_v23, %v4947_v26 }
  0x5a   : >> { %7332 = vst [vmem:[#allocation37_spill] sm:$0xff] %v5038_v59  ;;  %7333 = vst [vmem:[#allocation38_spill] sm:$0xff] %v5044_v61  ;;  %v5082_v18 = vand.u32 4294901760, %v5040_v60  ;;  %406 = vmatpush1.msra.mxu0 %v4969_v34  ;;  %513 = vmatpush1.msra.mxu1 %v5044_v61  ;;  %v5091_v52 = vand.u32 4294901760, %v5063_v9  ;;  %v5095_v58 = vsub.f32 %v4941_v24, %v4953_v28  ;;  %v5098_v23 = vand.u32 4294901760, %v5054_v3 }
  0x5b   : >> { %7334 = vst [vmem:[#allocation39_spill] sm:$0xff] %v5052_v0  ;;  %7335 = vst [vmem:[#allocation40_spill] sm:$0xff] %v5058_v4  ;;  %v5088_v47 = vand.u32 4294901760, %v529_v5  ;;  %408 = vmatprep.subr.mxu0 %v4975_v36  ;;  %519 = vmatprep.subr.mxu1 %v5058_v4  ;;  %v535_v62 = vsub.f32 %v5049_v63, %v5075_v17  ;;  %v5105_v5 = vand.u32 4294901760, %v5079_v42  ;;  %v5112_v24 = vand.u32 4294901760, %v5068_v11 }
  0x5c   : >> { %7336 = vst [vmem:[#allocation41_spill] sm:$0xff] %v5066_v10  ;;  %7337 = vst [vmem:[#allocation42_spill] sm:$0xff] %v5072_v16  ;;  %v5109_v12 = vsub.f32 %v4943_v25, %v4969_v34  ;;  %410 = vmatpush1.msra.mxu0 %v4988_v40  ;;  %525 = vmatpush1.msra.mxu1 %v5072_v16  ;;  %v541_v1 = vsub.f32 %v5063_v9, %v5091_v52  ;;  %v5121_v4 = vand.u32 4294901760, %v5095_v58 }
  0x5d   : >> { %7338 = vst [vmem:[#allocation43_spill] sm:$0xff] %v5075_v17  ;;  %7339 = vst [vmem:[#allocation44_spill] sm:$0xff] %v5082_v18  ;;  %v5125_v61 = vsub.f32 %v4958_v30, %v4975_v36  ;;  %v5128_v25 = vand.u32 4294901760, %v5084_v46  ;;  %412 = vmatprep.subr.mxu0 %v5002_v45  ;;  %531 = vmatprep.subr.mxu1 %v5088_v47  ;;  %v5132_v57 = vand.u32 4294901760, %v535_v62  ;;  %v5143_v30 = vld [vmem:[#allocation6 + $0x40] sm:$0xff]  ;;  %v5156_v17 = vld [vmem:[#allocation6 + $0x38] sm:$0xff] }
  0x5e   : >> { %7340 = vst [vmem:[#allocation45_spill] sm:$0xff] %v5088_v47  ;;  %7341 = vst [vmem:[#allocation46_spill] sm:$0xff] %v5091_v52  ;;  %v547_v16 = vsub.f32 %v5079_v42, %v5105_v5  ;;  %v5137_v56 = vand.u32 4294901760, %v5109_v12  ;;  %v5141_v51 = vsub.f32 %v4960_v31, %v4988_v40  ;;  %414 = vmatpush1.msra.mxu0 %v5026_v54  ;;  %v5146_v52 = vand.u32 4294901760, %v541_v1  ;;  %v5289_v40 = vld [vmem:[#allocation6] sm:$0xff] }
  0x5f   : >> { %7342 = vst [vmem:[#allocation47_spill] sm:$0xff] %v5098_v23  ;;  %7343 = vst [vmem:[#allocation48_spill] sm:$0xff] %v5105_v5  ;;  %v553_v62 = vsub.f32 %v5095_v58, %v5121_v4  ;;  %v5151_v47 = vand.u32 4294901760, %v5125_v61  ;;  %v5154_v5 = vand.u32 4294901760, %v5114_v2  ;;  %537 = vmatpush1.msra.mxu1 %v5132_v57  ;;  %416 = vmatprep.subr.mxu0 %v5052_v0  ;;  %v5198_v43 = vand.u32 4294901760, %v5156_v17 }
  0x60   : >> { %7344 = vst [vmem:[#allocation49_spill] sm:$0xff] %v5112_v24  ;;  %7345 = vst [vmem:[#allocation50_spill] sm:$0xff] %v5121_v4  ;;  %v5160_v31 = vand.u32 4294901760, %v547_v16  ;;  %v559_v1 = vsub.f32 %v5109_v12, %v5137_v56  ;;  %v5165_v59 = vand.u32 4294901760, %v5141_v51  ;;  %v5169_v4 = vsub.f32 %v4962_v32, %v5002_v45  ;;  %543 = vmatprep.subr.mxu1 %v5146_v52  ;;  %v5186_v32 = vld [vmem:[#allocation6 + $0x28] sm:$0xff] }
  0x61   : >> { %7346 = vst [vmem:[#allocation51_spill] sm:$0xff] %v5128_v25  ;;  %7347 = vst [vmem:[#allocation52_spill] sm:$0xff] %v5132_v57  ;;  %418 = vmatpush1.msra.mxu0 %v5066_v10  ;;  %v5175_v57 = vand.u32 4294901760, %v553_v62  ;;  %v565_v16 = vsub.f32 %v5125_v61, %v5151_v47  ;;  %v5184_v48 = vsub.f32 %v4990_v41, %v5026_v54  ;;  %v5322_v34 = vand.u32 4294901760, %v5289_v40 }
  0x62   : >> { %7348 = vst [vmem:[#allocation53_spill] sm:$0xff] %v5137_v56  ;;  %7349 = vst [vmem:[#allocation54_spill] sm:$0xff] %v5146_v52  ;;  %v5180_v56 = vand.u32 4294901760, %v5143_v30  ;;  %549 = vmatpush1.msra.mxu1 %v5160_v31  ;;  %420 = vmatprep.subr.mxu0 %v5082_v18  ;;  %v5190_v52 = vand.u32 4294901760, %v559_v1  ;;  %v571_v62 = vsub.f32 %v5141_v51, %v5165_v59 }
  0x63   : >> { %7350 = vst [vmem:[#allocation55_spill] sm:$0xff] %v5151_v47  ;;  %7351 = vst [vmem:[#allocation56_spill] sm:$0xff] %v5160_v31  ;;  %v5195_v47 = vand.u32 4294901760, %v5169_v4  ;;  %555 = vmatprep.subr.mxu1 %v5175_v57  ;;  %422 = vmatpush1.msra.mxu0 %v5098_v23  ;;  %v5204_v41 = vand.u32 4294901760, %v565_v16  ;;  %v5207_v1 = vand.u32 4294901760, %v5184_v48  ;;  %v5211_v31 = vsub.f32 %v5015_v50, %v5052_v0 }
  0x64   : >> { %7352 = vst [vmem:[#allocation57_spill] sm:$0xff] %v5165_v59  ;;  %7353 = vst [vmem:[#allocation58_spill] sm:$0xff] %v5175_v57  ;;  %v5214_v59 = vand.u32 4294901760, %v5171_v53  ;;  %561 = vmatpush1.msra.mxu1 %v5190_v52  ;;  %424 = vmatprep.subr.mxu0 %v5112_v24  ;;  %v5220_v57 = vand.u32 4294901760, %v571_v62  ;;  %v5226_v33 = vsub.f32 %v5028_v55, %v5066_v10  ;;  %v5229_v50 = vand.u32 4294901760, %v5186_v32  ;;  %v5245_v10 = vld [vmem:[#allocation6 + $0x10] sm:$0xff] }
  0x65   : >> { %7354 = vst [vmem:[#allocation59_spill] sm:$0xff] %v5180_v56  ;;  %7355 = vst [vmem:[#allocation60_spill] sm:$0xff] %v5184_v48  ;;  %v577_v16 = vsub.f32 %v5169_v4, %v5195_v47  ;;  %567 = vmatprep.subr.mxu1 %v5204_v41  ;;  %426 = vmatpush1.msra.mxu0 %v5128_v25  ;;  %v5236_v62 = vand.u32 4294901760, %v5211_v31  ;;  %v5243_v55 = vand.u32 4294901760, %v5200_v38 }
  0x66   : >> { %7356 = vst [vmem:[#allocation61_spill] sm:$0xff] %v5190_v52  ;;  %7357 = vst [vmem:[#allocation62_spill] sm:$0xff] %v5195_v47  ;;  %v583_v52 = vsub.f32 %v5184_v48, %v5207_v1  ;;  %v5240_v47 = vsub.f32 %v5040_v60, %v5082_v18  ;;  %573 = vmatpush1.msra.mxu1 %v5220_v57  ;;  %428 = vmatprep.subr.mxu0 %v5154_v5  ;;  %v5259_v60 = vand.u32 4294901760, %v5216_v37  ;;  %v5261_v18 = vld [vmem:[#allocation6 + $0x8] sm:$0xff] }
  0x67   : >> { %7358 = vst [vmem:[#allocation63_spill] sm:$0xff] %v5204_v41  ;;  %7359 = vst [vmem:[#allocation64_spill] sm:$0xff] %v5207_v1  ;;  %v5249_v41 = vand.u32 4294901760, %v577_v16  ;;  %v5252_v1 = vand.u32 4294901760, %v5226_v33  ;;  %v5256_v0 = vsub.f32 %v5054_v3, %v5098_v23  ;;  %430 = vmatpush1.msra.mxu0 %v5180_v56  ;;  %v589_v16 = vsub.f32 %v5211_v31, %v5236_v62 }
  0x68   : >> { %7360 = vst [vmem:[#allocation65_spill] sm:$0xff] %v5211_v31  ;;  %7361 = vst [vmem:[#allocation66_spill] sm:$0xff] %v5220_v57  ;;  %v5264_v54 = vand.u32 4294901760, %v583_v52  ;;  %v5269_v57 = vand.u32 4294901760, %v5240_v47  ;;  %v5273_v45 = vsub.f32 %v5068_v11, %v5112_v24  ;;  %432 = vmatprep.subr.mxu0 %v5198_v43  ;;  %v5283_v23 = vand.u32 4294901760, %v5245_v10 }
  0x69   : >> { %7362 = vst [vmem:[#allocation67_spill] sm:$0xff] %v5226_v33  ;;  %7363 = vst [vmem:[#allocation68_spill] sm:$0xff] %v5229_v50  ;;  %579 = vmatprep.subr.mxu1 %v5249_v41  ;;  %v595_v3 = vsub.f32 %v5226_v33, %v5252_v1  ;;  %v5280_v52 = vand.u32 4294901760, %v5256_v0  ;;  %v5292_v11 = vand.u32 4294901760, %v589_v16  ;;  %434 = vmatpush1.msra.mxu0 %v5214_v59  ;;  %v5301_v24 = vand.u32 4294901760, %v5261_v18 }
  0x6a   : >> { %7364 = vst [vmem:[#allocation69_spill] sm:$0xff] %v5236_v62  ;;  %7365 = vst [vmem:[#allocation70_spill] sm:$0xff] %v5240_v47  ;;  %v5287_v62 = vsub.f32 %v5084_v46, %v5128_v25  ;;  %585 = vmatpush1.msra.mxu1 %v5264_v54  ;;  %436 = vmatprep.subr.mxu0 %v5229_v50 }
  0x6b   : >> { %7366 = vst [vmem:[#allocation71_spill] sm:$0xff] %v5249_v41  ;;  %7367 = vst [vmem:[#allocation72_spill] sm:$0xff] %v5252_v1  ;;  %v601_v41 = vsub.f32 %v5240_v47, %v5269_v57  ;;  %v5298_v1 = vand.u32 4294901760, %v5273_v45  ;;  %v5303_v36 = vand.u32 4294901760, %v595_v3  ;;  %v607_v46 = vsub.f32 %v5256_v0, %v5280_v52  ;;  %591 = vmatprep.subr.mxu1 %v5292_v11 }
  0x6c   : >> { %7368 = vst [vmem:[#allocation73_spill] sm:$0xff] %v5256_v0  ;;  %7369 = vst [vmem:[#allocation74_spill] sm:$0xff] %v5259_v60  ;;  %v5309_v16 = vand.u32 4294901760, %v5287_v62  ;;  %438 = vmatpush1.msra.mxu0 %v5243_v55 }
  0x6d   : >> { %7370 = vst [vmem:[#allocation75_spill] sm:$0xff] %v5264_v54  ;;  %7371 = vst [vmem:[#allocation76_spill] sm:$0xff] %v5269_v57  ;;  %v5313_v54 = vsub.f32 %v5114_v2, %v5154_v5  ;;  %v350_v57 = vld [vmem:[#allocation2] sm:$0xff]  ;;  %v5316_v25 = vand.u32 4294901760, %v601_v41  ;;  %v613_v3 = vsub.f32 %v5273_v45, %v5298_v1  ;;  %597 = vmatpush1.msra.mxu1 %v5303_v36  ;;  %v5329_v2 = vand.u32 4294901760, %v607_v46 }
  0x6e   : >> { %7372 = vst [vmem:[#allocation77_spill] sm:$0xff] %v5273_v45  ;;  %7373 = vst [vmem:[#allocation78_spill] sm:$0xff] %v5280_v52  ;;  %v5326_v52 = vsub.f32 %v5143_v30, %v5180_v56  ;;  %440 = vmatprep.subr.mxu0 %v5259_v60  ;;  %v619_v41 = vsub.f32 %v5287_v62, %v5309_v16 }
  0x6f   : >> { %7374 = vst [vmem:[#allocation79_spill] sm:$0xff] %v5283_v23  ;;  %7375 = vst [vmem:[#allocation80_spill] sm:$0xff] %v5287_v62  ;;  %603 = vmatprep.subr.mxu1 %v5316_v25  ;;  %v5342_v30 = vand.u32 4294901760, %v613_v3  ;;  %442 = vmatpush1.msra.mxu0 %v5283_v23 }
  0x70   : >> { %7376 = vst [vmem:[#allocation81_spill] sm:$0xff] %v5292_v11  ;;  %7377 = vst [vmem:[#allocation82_spill] sm:$0xff] %v5298_v1  ;;  %v5335_v11 = vand.u32 4294901760, %v5313_v54  ;;  %v5339_v1 = vsub.f32 %v5156_v17, %v5198_v43  ;;  %v5346_v46 = vand.u32 4294901760, %v5326_v52  ;;  %609 = vmatpush1.msra.mxu1 %v5329_v2  ;;  %v5355_v56 = vand.u32 4294901760, %v619_v41  ;;  %444 = vmatprep.subr.mxu0 %v5301_v24 }
  0x71   : >> { %7378 = vst [vmem:[#allocation83_spill] sm:$0xff] %v5301_v24  ;;  %7379 = vst [vmem:[#allocation84_spill] sm:$0xff] %v5303_v36  ;;  %v5348_v36 = vand.u32 4294901760, %v350_v57  ;;  %615 = vmatprep.subr.mxu1 %v5342_v30  ;;  %446 = vmatpush1.msra.mxu0 %v5322_v34 }
  0x72   : >> { %7380 = vst [vmem:[#allocation85_spill] sm:$0xff] %v5309_v16  ;;  %7381 = vst [vmem:[#allocation86_spill] sm:$0xff] %v5313_v54  ;;  %v5352_v16 = vsub.f32 %v5171_v53, %v5214_v59  ;;  %v625_v17 = vsub.f32 %v5313_v54, %v5335_v11  ;;  %v5361_v3 = vand.u32 4294901760, %v5339_v1  ;;  %v631_v53 = vsub.f32 %v5326_v52, %v5346_v46 }
  0x73   : >> { %7382 = vst [vmem:[#allocation87_spill] sm:$0xff] %v5316_v25  ;;  %7383 = vst [vmem:[#allocation88_spill] sm:$0xff] %v5322_v34  ;;  %v5365_v25 = vsub.f32 %v5186_v32, %v5229_v50  ;;  %v5372_v41 = vsub.f32 %v350_v57, %v5348_v36  ;;  %621 = vmatpush1.msra.mxu1 %v5355_v56  ;;  %723 = vmatprep.subr.mxu0 %v4937_v22 }
  0x74   : >> { %7384 = vst [vmem:[#allocation89_spill] sm:$0xff] %v5326_v52  ;;  %7385 = vst [vmem:[#allocation90_spill] sm:$0xff] %v5329_v2  ;;  %v5375_v2 = vand.u32 4294901760, %v5352_v16  ;;  %v5382_v32 = vand.u32 4294901760, %v625_v17  ;;  %v5392_v57 = vsub.f32 %v5216_v37, %v5259_v60  ;;  %v5394_v50 = vand.u32 4294901760, %v631_v53 }
  0x75   : >> { %7386 = vst [vmem:[#allocation91_spill] sm:$0xff] %v5335_v11  ;;  %7387 = vst [vmem:[#allocation92_spill] sm:$0xff] %v5339_v1  ;;  %v5379_v11 = vsub.f32 %v5200_v38, %v5243_v55  ;;  %v7116_v38 = vand.u32 4294901760, %v5372_v41  ;;  %v5412_v53 = vsub.f32 %v5245_v10, %v5283_v23 }
  0x76   : >> { %7388 = vst [vmem:[#allocation93_spill] sm:$0xff] %v5342_v30  ;;  %7389 = vst [vmem:[#allocation94_spill] sm:$0xff] %v5346_v46  ;;  %v637_v30 = vsub.f32 %v5339_v1, %v5361_v3  ;;  %v5388_v46 = vand.u32 4294901760, %v5365_v25  ;;  %v643_v17 = vsub.f32 %v5352_v16, %v5375_v2  ;;  %627 = vmatprep.subr.mxu1 %v5382_v32  ;;  %v5408_v37 = vand.u32 4294901760, %v5392_v57 }
  0x77   : >> { %7390 = vst [vmem:[#allocation95_spill] sm:$0xff] %v5352_v16  ;;  %7391 = vst [vmem:[#allocation96_spill] sm:$0xff] %v5355_v56  ;;  %v5400_v56 = vand.u32 4294901760, %v5379_v11  ;;  %633 = vmatpush1.msra.mxu1 %v5394_v50 }
  0x78   : >> { %7392 = vst [vmem:[#allocation97_spill] sm:$0xff] %v5361_v3  ;;  %7393 = vst [vmem:[#allocation98_spill] sm:$0xff] %v5365_v25  ;;  %v5403_v22 = vand.u32 4294901760, %v637_v30  ;;  %v649_v3 = vsub.f32 %v5365_v25, %v5388_v46  ;;  %v5418_v60 = vand.u32 4294901760, %v643_v17  ;;  %v661_v10 = vsub.f32 %v5392_v57, %v5408_v37 }
  0x79   : >> { %7394 = vst [vmem:[#allocation99_spill] sm:$0xff] %v5375_v2  ;;  %7395 = vst [vmem:[#allocation100_spill] sm:$0xff] %v5379_v11  ;;  %v483_v2 = vsub.f32 %v5372_v41, %v7116_v38  ;;  %v655_v30 = vsub.f32 %v5379_v11, %v5400_v56  ;;  %v5436_v17 = vsub.f32 %v5289_v40, %v5322_v34 }
  0x7a   : >> { %7396 = vst [vmem:[#allocation101_spill] sm:$0xff] %v5382_v32  ;;  %7397 = vst [vmem:[#allocation102_spill] sm:$0xff] %v5388_v46  ;;  %v5424_v32 = vsub.f32 %v5261_v18, %v5301_v24  ;;  %639 = vmatprep.subr.mxu1 %v5403_v22  ;;  %v5427_v46 = vand.u32 4294901760, %v649_v3  ;;  %v5445_v3 = vand.u32 4294901760, %v661_v10 }
  0x7b   : >> { %7398 = vst [vmem:[#allocation103_spill] sm:$0xff] %v5392_v57  ;;  %7399 = vst [vmem:[#allocation104_spill] sm:$0xff] %v5394_v50  ;;  %v5432_v50 = vand.u32 4294901760, %v5412_v53  ;;  %v484_v38 = vand.u32 4294901760, %v483_v2  ;;  %645 = vmatpush1.msra.mxu1 %v5418_v60 }
  0x7c   : >> { %7400 = vst [vmem:[#allocation105_spill] sm:$0xff] %v5400_v56  ;;  %7401 = vst [vmem:[#allocation106_spill] sm:$0xff] %v5403_v22  ;;  %v5439_v56 = vand.u32 4294901760, %v655_v30  ;;  %v5442_v18 = vand.u32 4294901760, %v5424_v32  ;;  %651 = vmatprep.subr.mxu1 %v5427_v46 }
  0x7d   : >> { %7402 = vst [vmem:[#allocation107_spill] sm:$0xff] %v5408_v37  ;;  %7403 = vst [vmem:[#allocation108_spill] sm:$0xff] %v5412_v53  ;;  %v667_v22 = vsub.f32 %v5412_v53, %v5432_v50  ;;  %v5450_v37 = vand.u32 4294901760, %v5436_v17  ;;  %485 = vmatmul.mubr.f32.vlgmr.msra.gmra.mxu0 %v484_v38 }
  0x7e   : >> { %7404 = vst [vmem:[#allocation109_spill] sm:$0xff] %v5424_v32  ;;  %7405 = vst [vmem:[#allocation110_spill] sm:$0xff] %v5427_v46  ;;  %657 = vmatpush1.msra.mxu1 %v5439_v56  ;;  %v673_v40 = vsub.f32 %v5424_v32, %v5442_v18  ;;  %726 = vmatpush1.msra.mxu0 %v4950_v27  ;;  %v7410_v46 = vmov 0.0  }
  0x7f   : >> { %7406 = vst [vmem:[#allocation111_spill] sm:$0xff] %v5432_v50  ;;  %7407 = vst [vmem:[#allocation112_spill] sm:$0xff] %v5436_v17  ;;  %663 = vmatprep.subr.mxu1 %v5445_v3  ;;  %v5457_v2 = vand.u32 4294901760, %v667_v22  ;;  %v679_v30 = vsub.f32 %v5436_v17, %v5450_v37  ;;  %729 = vmatprep.subr.mxu0 %v4956_v29  ;;  %v7411_v22 = vld [vmem:[#allocation24_spill] sm:$0xff] }
  0x80   : >> { %7408 = vst [vmem:[#allocation113_spill] sm:$0xff] %v5442_v18  ;;  %7409 = vst [vmem:[#allocation114_spill] sm:$0xff] %v5450_v37  ;;  %v5462_v10 = vand.u32 4294901760, %v673_v40  ;;  %849 = vmatprep.mubr.f32.mxu0 %v7410_v46  ;;  %732 = vmatpush1.msra.mxu0 %v4972_v35  ;;  %v7412_v40 = vld [vmem:[#allocation25_spill] sm:$0xff] }
  0x81   : >> { %669 = vmatpush1.msra.mxu1 %v5457_v2  ;;  %v5467_v38 = vand.u32 4294901760, %v679_v30  ;;  %735 = vmatprep.subr.mxu0 %v4985_v39  ;;  %v7413_v30 = vld [vmem:[#allocation28_spill] sm:$0xff] }
  0x82   : >> { %675 = vmatprep.subr.mxu1 %v5462_v10  ;;  %738 = vmatpush1.msra.mxu0 %v4999_v44 }
  0x83   : >> { %681 = vmatpush1.msra.mxu1 %v5467_v38  ;;  %741 = vmatprep.subr.mxu0 %v5013_v49 }
  0x84   : >> { %716 = vmatmul.mubr.f32.vlgmr.msra.gmra.mxu1 %v5348_v36  ;;  %744 = vmatpush1.msra.mxu0 %v5049_v63 }
  0x85   : >> { %858 = vmatprep.subr.mxu1 %v4915_v6  ;;  %747 = vmatprep.subr.mxu0 %v5063_v9 }
  0x86   : >> { %860 = vmatpush1.msra.mxu1 %v4917_v7  ;;  %750 = vmatpush1.msra.mxu0 %v5079_v42 }
  0x87   : >> { %862 = vmatprep.subr.mxu1 %v4919_v8  ;;  %753 = vmatprep.subr.mxu0 %v5095_v58 }
  0x88   : >> { %864 = vmatpush1.msra.mxu1 %v4923_v13  ;;  %756 = vmatpush1.msra.mxu0 %v5109_v12 }
  0x89   : >> { %866 = vmatprep.subr.mxu1 %v4925_v14  ;;  %759 = vmatprep.subr.mxu0 %v5125_v61 }
  0x8a   : >> { %868 = vmatpush1.msra.mxu1 %v4927_v15  ;;  %762 = vmatpush1.msra.mxu0 %v5141_v51 }
  0x8b   : >> { %870 = vmatprep.subr.mxu1 %v4930_v19  ;;  %765 = vmatprep.subr.mxu0 %v5169_v4 }
  0x8c   : >> { %872 = vmatpush1.msra.mxu1 %v4932_v20  ;;  %768 = vmatpush1.msra.mxu0 %v5184_v48  ;;  %v7430_v48 = vld [vmem:[#allocation33_spill] sm:$0xff] }
  0x8d   : >> { %874 = vmatprep.subr.mxu1 %v4934_v21  ;;  %771 = vmatprep.subr.mxu0 %v5211_v31  ;;  %v7414_v31 = vld [vmem:[#allocation30_spill] sm:$0xff] }
  0x8e   : >> { %876 = vmatpush1.msra.mxu1 %v4947_v26  ;;  %774 = vmatpush1.msra.mxu0 %v5226_v33  ;;  %v7415_v33 = vld [vmem:[#allocation34_spill] sm:$0xff] }
  0x8f   : >> { %878 = vmatprep.subr.mxu1 %v4953_v28  ;;  %777 = vmatprep.subr.mxu0 %v5240_v47  ;;  %v7416_v47 = vld [vmem:[#allocation39_spill] sm:$0xff] }
  0x90   : >> { %880 = vmatpush1.msra.mxu1 %v7411_v22  ;;  %780 = vmatpush1.msra.mxu0 %v5256_v0  ;;  %v7417_v0 = vld [vmem:[#allocation41_spill] sm:$0xff] }
  0x91   : >> { %882 = vmatprep.subr.mxu1 %v7412_v40  ;;  %783 = vmatprep.subr.mxu0 %v5273_v45  ;;  %v7418_v45 = vld [vmem:[#allocation44_spill] sm:$0xff] }
  0x92   : >> { %884 = vmatpush1.msra.mxu1 %v7413_v30  ;;  %786 = vmatpush1.msra.mxu0 %v5287_v62  ;;  %v7419_v62 = vld [vmem:[#allocation47_spill] sm:$0xff] }
  0x93   : >> { %886 = vmatprep.subr.mxu1 %v7414_v31  ;;  %789 = vmatprep.subr.mxu0 %v5313_v54  ;;  %v7420_v54 = vld [vmem:[#allocation49_spill] sm:$0xff] }
  0x94   : >> { %888 = vmatpush1.msra.mxu1 %v7415_v33  ;;  %792 = vmatpush1.msra.mxu0 %v5326_v52  ;;  %v7421_v52 = vld [vmem:[#allocation51_spill] sm:$0xff] }
  0x95   : >> { %890 = vmatprep.subr.mxu1 %v7416_v47  ;;  %795 = vmatprep.subr.mxu0 %v5339_v1  ;;  %v7428_v1 = vld [vmem:[#allocation74_spill] sm:$0xff] }
  0x96   : >> { %892 = vmatpush1.msra.mxu1 %v7417_v0  ;;  %798 = vmatpush1.msra.mxu0 %v5352_v16  ;;  %v7422_v16 = vld [vmem:[#allocation59_spill] sm:$0xff] }
  0x97   : >> { %894 = vmatprep.subr.mxu1 %v7418_v45  ;;  %801 = vmatprep.subr.mxu0 %v5365_v25  ;;  %v7425_v25 = vld [vmem:[#allocation68_spill] sm:$0xff] }
  0x98   : >> { %896 = vmatpush1.msra.mxu1 %v7419_v62  ;;  %804 = vmatpush1.msra.mxu0 %v5379_v11  ;;  %v7423_v11 = vld [vmem:[#allocation23_spill] sm:$0xff] }
  0x99   : >> { %898 = vmatprep.subr.mxu1 %v7420_v54  ;;  %807 = vmatprep.subr.mxu0 %v5392_v57  ;;  %v7424_v57 = vld [vmem:[#allocation26_spill] sm:$0xff] }
  0x9a   : >> { %900 = vmatpush1.msra.mxu1 %v7421_v52  ;;  %810 = vmatpush1.msra.mxu0 %v5412_v53  ;;  %v7426_v53 = vld [vmem:[#allocation27_spill] sm:$0xff] }
  0x9b   : >> { %902 = vmatprep.subr.mxu1 %v5154_v5  ;;  %813 = vmatprep.subr.mxu0 %v5424_v32  ;;  %v7427_v32 = vld [vmem:[#allocation29_spill] sm:$0xff] }
  0x9c   : >> { %904 = vmatpush1.msra.mxu1 %v7422_v16  ;;  %816 = vmatpush1.msra.mxu0 %v5436_v17  ;;  %v7429_v17 = vld [vmem:[#allocation31_spill] sm:$0xff] }
  0x9d   : >> { %906 = vmatprep.subr.mxu1 %v5198_v43  ;;  %852 = vmatmul.mubr.f32.vlgmr.msra.gmra.mxu0 %v5372_v41 }
  0x9e   : >> { %965 = vmatprep.subr.mxu0 %v7423_v11  ;;  %908 = vmatpush1.msra.mxu1 %v5214_v59  ;;  %v7431_v11 = vld [vmem:[#allocation37_spill] sm:$0xff] }
  0x9f   : >> { %969 = vmatpush1.msra.mxu0 %v7424_v57  ;;  %910 = vmatprep.subr.mxu1 %v7425_v25  ;;  %v7434_v57 = vld [vmem:[#allocation46_spill] sm:$0xff] }
  0xa0   : >> { %973 = vmatprep.subr.mxu0 %v7426_v53  ;;  %912 = vmatpush1.msra.mxu1 %v5243_v55  ;;  %v7432_v53 = vld [vmem:[#allocation43_spill] sm:$0xff] }
  0xa1   : >> { %977 = vmatpush1.msra.mxu0 %v7427_v32  ;;  %914 = vmatprep.subr.mxu1 %v7428_v1  ;;  %v7433_v32 = vand.u32 4294901760, %v5372_v41  ;;  %v7439_v41 = vld [vmem:[#allocation57_spill] sm:$0xff] }
  0xa2   : >> { %981 = vmatprep.subr.mxu0 %v7429_v17  ;;  %916 = vmatpush1.msra.mxu1 %v5283_v23  ;;  %v7435_v17 = vld [vmem:[#allocation48_spill] sm:$0xff] }
  0xa3   : >> { %985 = vmatpush1.msra.mxu0 %v7430_v48  ;;  %918 = vmatprep.subr.mxu1 %v5301_v24  ;;  %v7436_v48 = vld [vmem:[#allocation50_spill] sm:$0xff] }
  0xa4   : >> { %989 = vmatprep.subr.mxu0 %v7431_v11  ;;  %920 = vmatpush1.msra.mxu1 %v5322_v34  ;;  %v7437_v11 = vld [vmem:[#allocation53_spill] sm:$0xff] }
  0xa5   : >> { %953 = vmatprep.mubr.f32.mxu1 %v7410_v46  ;;  %993 = vmatpush1.msra.mxu0 %v7432_v53  ;;  %v7438_v53 = vld [vmem:[#allocation55_spill] sm:$0xff] }
  0xa6   : >> { %957 = vmatmul.mubr.f32.vlgmr.msra.gmra.mxu1 %v7433_v32  ;;  %997 = vmatprep.subr.mxu0 %v7434_v57  ;;  %v7440_v32 = vld [vmem:[#allocation62_spill] sm:$0xff] }
  0xa7   : >> { %1130 = vmatprep.subr.mxu1 %v4915_v6  ;;  %1001 = vmatpush1.msra.mxu0 %v7435_v17  ;;  %v7441_v17 = vld [vmem:[#allocation64_spill] sm:$0xff] }
  0xa8   : >> { %1132 = vmatpush1.msra.mxu1 %v4917_v7  ;;  %1005 = vmatprep.subr.mxu0 %v7436_v48  ;;  %v7442_v48 = vld [vmem:[#allocation69_spill] sm:$0xff] }
  0xa9   : >> { %1134 = vmatprep.subr.mxu1 %v4919_v8  ;;  %1009 = vmatpush1.msra.mxu0 %v7437_v11  ;;  %v7443_v11 = vld [vmem:[#allocation72_spill] sm:$0xff] }
  0xaa   : >> { %1136 = vmatpush1.msra.mxu1 %v4923_v13  ;;  %1013 = vmatprep.subr.mxu0 %v7438_v53  ;;  %v7444_v53 = vld [vmem:[#allocation76_spill] sm:$0xff] }
  0xab   : >> { %1138 = vmatprep.subr.mxu1 %v4925_v14  ;;  %1017 = vmatpush1.msra.mxu0 %v7439_v41  ;;  %v7445_v41 = vld [vmem:[#allocation78_spill] sm:$0xff] }
  0xac   : >> { %1140 = vmatpush1.msra.mxu1 %v4927_v15  ;;  %1021 = vmatprep.subr.mxu0 %v7440_v32  ;;  %v7446_v32 = vld [vmem:[#allocation82_spill] sm:$0xff] }
  0xad   : >> { %1142 = vmatprep.subr.mxu1 %v4930_v19  ;;  %1025 = vmatpush1.msra.mxu0 %v7441_v17  ;;  %v7447_v17 = vld [vmem:[#allocation85_spill] sm:$0xff] }
  0xae   : >> { %1144 = vmatpush1.msra.mxu1 %v4932_v20  ;;  %1029 = vmatprep.subr.mxu0 %v7442_v48  ;;  %v7448_v48 = vld [vmem:[#allocation91_spill] sm:$0xff] }
  0xaf   : >> { %1146 = vmatprep.subr.mxu1 %v4934_v21  ;;  %1033 = vmatpush1.msra.mxu0 %v7443_v11  ;;  %v7449_v11 = vld [vmem:[#allocation94_spill] sm:$0xff] }
  0xb0   : >> { %1148 = vmatpush1.msra.mxu1 %v4947_v26  ;;  %1037 = vmatprep.subr.mxu0 %v7444_v53  ;;  %v7450_v53 = vld [vmem:[#allocation97_spill] sm:$0xff] }
  0xb1   : >> { %1150 = vmatprep.subr.mxu1 %v4953_v28  ;;  %1041 = vmatpush1.msra.mxu0 %v7445_v41  ;;  %v7451_v41 = vld [vmem:[#allocation99_spill] sm:$0xff] }
  0xb2   : >> { %1152 = vmatpush1.msra.mxu1 %v7411_v22  ;;  %1045 = vmatprep.subr.mxu0 %v7446_v32  ;;  %v7452_v32 = vld [vmem:[#allocation102_spill] sm:$0xff] }
  0xb3   : >> { %1154 = vmatprep.subr.mxu1 %v7412_v40  ;;  %1049 = vmatpush1.msra.mxu0 %v7447_v17  ;;  %v7453_v17 = vld [vmem:[#allocation105_spill] sm:$0xff] }
  0xb4   : >> { %1156 = vmatpush1.msra.mxu1 %v7413_v30  ;;  %1053 = vmatprep.subr.mxu0 %v7448_v48  ;;  %v7454_v48 = vld [vmem:[#allocation107_spill] sm:$0xff] }
  0xb5   : >> { %1158 = vmatprep.subr.mxu1 %v7414_v31  ;;  %1057 = vmatpush1.msra.mxu0 %v7449_v11 }
  0xb6   : >> { %1160 = vmatpush1.msra.mxu1 %v7415_v33  ;;  %1061 = vmatprep.subr.mxu0 %v7450_v53 }
  0xb7   : >> { %1162 = vmatprep.subr.mxu1 %v7416_v47  ;;  %1065 = vmatpush1.msra.mxu0 %v7451_v41 }
  0xb8   : >> { %1164 = vmatpush1.msra.mxu1 %v7417_v0  ;;  %1069 = vmatprep.subr.mxu0 %v7452_v32  ;;  %v7460_v32 = vld [vmem:[#allocation42_spill] sm:$0xff] }
  0xb9   : >> { %1166 = vmatprep.subr.mxu1 %v7418_v45  ;;  %1073 = vmatpush1.msra.mxu0 %v7453_v17  ;;  %v7459_v17 = vld [vmem:[#allocation40_spill] sm:$0xff] }
  0xba   : >> { %1168 = vmatpush1.msra.mxu1 %v7419_v62  ;;  %1077 = vmatprep.subr.mxu0 %v7454_v48  ;;  %v7458_v48 = vld [vmem:[#allocation38_spill] sm:$0xff] }
  0xbb   : >> { %1170 = vmatprep.subr.mxu1 %v7420_v54  ;;  %1081 = vmatpush1.msra.mxu0 %v5432_v50  ;;  %v7457_v50 = vld [vmem:[#allocation36_spill] sm:$0xff] }
  0xbc   : >> { %1172 = vmatpush1.msra.mxu1 %v7421_v52  ;;  %1085 = vmatprep.subr.mxu0 %v5442_v18  ;;  %v7456_v18 = vld [vmem:[#allocation35_spill] sm:$0xff] }
  0xbd   : >> { %1174 = vmatprep.subr.mxu1 %v5154_v5  ;;  %1089 = vmatpush1.msra.mxu0 %v5450_v37  ;;  %v7455_v37 = vld [vmem:[#allocation32_spill] sm:$0xff] }
  0xbe   : >> { %1122 = vmatprep.mubr.f32.mxu0 %v7410_v46  ;;  %1176 = vmatpush1.msra.mxu1 %v7422_v16 }
  0xbf   : >> { %1124 = vmatmul.mubr.f32.vlgmr.msra.gmra.mxu0 %v5348_v36  ;;  %1178 = vmatprep.subr.mxu1 %v5198_v43 }
  0xc0   : >> { %1225 = vmatprep.mubr.f32.mxu1 %v7410_v46  ;;  %1180 = vmatpush1.msra.mxu1 %v5214_v59 }
  0xc1   : >> { %1235 = vmatprep.subr.mxu0 %v4915_v6  ;;  %1182 = vmatprep.subr.mxu1 %v7425_v25 }
  0xc2   : >> { %1237 = vmatpush1.msra.mxu0 %v4917_v7  ;;  %1184 = vmatpush1.msra.mxu1 %v5243_v55 }
  0xc3   : >> { %1239 = vmatprep.subr.mxu0 %v4919_v8  ;;  %1186 = vmatprep.subr.mxu1 %v7428_v1 }
  0xc4   : >> { %1241 = vmatpush1.msra.mxu0 %v4923_v13  ;;  %1188 = vmatpush1.msra.mxu1 %v5283_v23 }
  0xc5   : >> { %1243 = vmatprep.subr.mxu0 %v4925_v14  ;;  %1190 = vmatprep.subr.mxu1 %v5301_v24 }
  0xc6   : >> { %1245 = vmatpush1.msra.mxu0 %v4927_v15  ;;  %1192 = vmatpush1.msra.mxu1 %v5322_v34 }
  0xc7   : >> { %1247 = vmatprep.subr.mxu0 %v4930_v19  ;;  %1227 = vmatmul.mubr.f32.vlgmr.msra.gmra.mxu1 %v5348_v36  ;;  %v7461_v36 = vld [vmem:[#allocation45_spill] sm:$0xff] }
  0xc8   : >> { %1347 = vmatprep.subr.mxu1 %v7455_v37  ;;  %1249 = vmatpush1.msra.mxu0 %v4932_v20  ;;  %v7462_v37 = vld [vmem:[#allocation52_spill] sm:$0xff] }
  0xc9   : >> { %1353 = vmatpush1.msra.mxu1 %v7456_v18  ;;  %1251 = vmatprep.subr.mxu0 %v4934_v21  ;;  %v7466_v18 = vld [vmem:[#allocation61_spill] sm:$0xff] }
  0xca   : >> { %1359 = vmatprep.subr.mxu1 %v7457_v50  ;;  %1253 = vmatpush1.msra.mxu0 %v4947_v26  ;;  %v7463_v50 = vld [vmem:[#allocation54_spill] sm:$0xff] }
  0xcb   : >> { %1365 = vmatpush1.msra.mxu1 %v7458_v48  ;;  %1255 = vmatprep.subr.mxu0 %v4953_v28  ;;  %v7464_v48 = vld [vmem:[#allocation56_spill] sm:$0xff] }
  0xcc   : >> { %1371 = vmatprep.subr.mxu1 %v7459_v17  ;;  %1257 = vmatpush1.msra.mxu0 %v7411_v22  ;;  %v7465_v17 = vld [vmem:[#allocation58_spill] sm:$0xff] }
  0xcd   : >> { %1377 = vmatpush1.msra.mxu1 %v7460_v32  ;;  %1259 = vmatprep.subr.mxu0 %v7412_v40  ;;  %v7467_v32 = vld [vmem:[#allocation63_spill] sm:$0xff] }
  0xce   : >> { %1383 = vmatprep.subr.mxu1 %v7461_v36  ;;  %1261 = vmatpush1.msra.mxu0 %v7413_v30  ;;  %v7468_v36 = vld [vmem:[#allocation66_spill] sm:$0xff] }
  0xcf   : >> { %1389 = vmatpush1.msra.mxu1 %v7462_v37  ;;  %1263 = vmatprep.subr.mxu0 %v7414_v31  ;;  %v7469_v37 = vld [vmem:[#allocation71_spill] sm:$0xff] }
  0xd0   : >> { %1395 = vmatprep.subr.mxu1 %v7463_v50  ;;  %1265 = vmatpush1.msra.mxu0 %v7415_v33  ;;  %v7470_v50 = vld [vmem:[#allocation75_spill] sm:$0xff] }
  0xd1   : >> { %1401 = vmatpush1.msra.mxu1 %v7464_v48  ;;  %1267 = vmatprep.subr.mxu0 %v7416_v47  ;;  %v7471_v48 = vld [vmem:[#allocation81_spill] sm:$0xff] }
  0xd2   : >> { %1407 = vmatprep.subr.mxu1 %v7465_v17  ;;  %1269 = vmatpush1.msra.mxu0 %v7417_v0  ;;  %v7472_v17 = vld [vmem:[#allocation84_spill] sm:$0xff] }
  0xd3   : >> { %1413 = vmatpush1.msra.mxu1 %v7466_v18  ;;  %1271 = vmatprep.subr.mxu0 %v7418_v45  ;;  %v7473_v18 = vld [vmem:[#allocation87_spill] sm:$0xff] }
  0xd4   : >> { %1419 = vmatprep.subr.mxu1 %v7467_v32  ;;  %1273 = vmatpush1.msra.mxu0 %v7419_v62  ;;  %v7474_v32 = vld [vmem:[#allocation90_spill] sm:$0xff] }
  0xd5   : >> { %1425 = vmatpush1.msra.mxu1 %v7468_v36  ;;  %1275 = vmatprep.subr.mxu0 %v7420_v54  ;;  %v7475_v36 = vld [vmem:[#allocation93_spill] sm:$0xff] }
  0xd6   : >> { %1431 = vmatprep.subr.mxu1 %v7469_v37  ;;  %1277 = vmatpush1.msra.mxu0 %v7421_v52  ;;  %v7476_v37 = vld [vmem:[#allocation96_spill] sm:$0xff] }
  0xd7   : >> { %1437 = vmatpush1.msra.mxu1 %v7470_v50  ;;  %1279 = vmatprep.subr.mxu0 %v5154_v5  ;;  %v7477_v50 = vld [vmem:[#allocation101_spill] sm:$0xff] }
  0xd8   : >> { %1443 = vmatprep.subr.mxu1 %v7471_v48  ;;  %1281 = vmatpush1.msra.mxu0 %v7422_v16  ;;  %v7478_v48 = vld [vmem:[#allocation104_spill] sm:$0xff] }
  0xd9   : >> { %1449 = vmatpush1.msra.mxu1 %v7472_v17  ;;  %1283 = vmatprep.subr.mxu0 %v5198_v43  ;;  %v7479_v17 = vld [vmem:[#allocation106_spill] sm:$0xff] }
  0xda   : >> { %1455 = vmatprep.subr.mxu1 %v7473_v18  ;;  %1566 = vmatprep.mubr.f32.mxu1 %v7410_v46  ;;  %v7480_v18 = vld [vmem:[#allocation110_spill] sm:$0xff] }
  0xdb   : >> { %1461 = vmatpush1.msra.mxu1 %v7474_v32  ;;  %1285 = vmatpush1.msra.mxu0 %v5214_v59  ;;  %v7481_v32 = vld [vmem:[#allocation22_spill] sm:$0xff] }
  0xdc   : >> { %1467 = vmatprep.subr.mxu1 %v7475_v36  ;;  %1287 = vmatprep.subr.mxu0 %v7425_v25 }
  0xdd   : >> { %1473 = vmatpush1.msra.mxu1 %v7476_v37  ;;  %1289 = vmatpush1.msra.mxu0 %v5243_v55 }
  0xde   : >> { %1479 = vmatprep.subr.mxu1 %v7477_v50  ;;  %1291 = vmatprep.subr.mxu0 %v7428_v1 }
  0xdf   : >> { %1485 = vmatpush1.msra.mxu1 %v7478_v48  ;;  %1293 = vmatpush1.msra.mxu0 %v5283_v23 }
  0xe0   : >> { %1491 = vmatprep.subr.mxu1 %v7479_v17  ;;  %1295 = vmatprep.subr.mxu0 %v5301_v24 }
  0xe1   : >> { %1497 = vmatpush1.msra.mxu1 %v5418_v60  ;;  %1297 = vmatpush1.msra.mxu0 %v5322_v34  ;;  %v7482_v60 = vld [vmem:[#allocation19_spill] sm:$0xff] }
  0xe2   : >> { %1503 = vmatprep.subr.mxu1 %v7480_v18  ;;  %1330 = vmatprep.mubr.f32.mxu0 %v7410_v46 }
  0xe3   : >> { %1509 = vmatpush1.msra.mxu1 %v5439_v56  ;;  %1576 = vmatprep.subr.mxu0 %v7481_v32  ;;  %v342_v56 = vld [vmem:[%s341_s19] sm:$0xff] }
  0xe4   : >> { %1515 = vmatprep.subr.mxu1 %v5445_v3  ;;  %v5679_v36 = vadd.f32 %v7482_v60, %v342_v56 }
  0xe5   : >> { %1521 = vmatpush1.msra.mxu1 %v5457_v2 }
  0xe6   : >> { %1527 = vmatprep.subr.mxu1 %v5462_v10  ;;  %7483 = vst [vmem:[#allocation24_spill] sm:$0xff] %v5679_v36 }
  0xe7   : >> { %1533 = vmatpush1.msra.mxu1 %v5467_v38 }
  0xe8   : >> { %1712 = vmatprep.subr.mxu1 %v4915_v6 }
 0x13d   : >> { %v486_v3 = vpop.f32.mrf.mxu0 }
 0x13f   : >> { %v488_v37 = vpop.f32.mrf.mxu0 }
 0x144   : >> { %v717_v50 = vpop.f32.mrf.mxu1 }
 0x145   : >> { %v718_v32 = vadd.f32 %v717_v50, %v486_v3  ;;  %v7532_v3 = vld [vmem:[#allocation105_spill] sm:$0xff]  ;;  %v7533_v50 = vld [vmem:[#allocation107_spill] sm:$0xff] }
 0x146   : >> { %v719_v48 = vpop.f32.mrf.mxu1 }
 0x15d   : >> { %v853_v2 = vpop.f32.mrf.mxu0 }
 0x15e   : >> { %v854_v53 = vadd.f32 %v853_v2, %v718_v32  ;;  %v7534_v2 = vld [vmem:[#allocation111_spill] sm:$0xff] }
 0x15f   : >> { %v855_v17 = vpop.f32.mrf.mxu0 }
 0x160   : >> { %v7535_v17 = vld [vmem:[#allocation113_spill] sm:$0xff] }
 0x166   : >> { %v958_v10 = vpop.f32.mrf.mxu1 }
 0x167   : >> { %v959_v11 = vadd.f32 %v958_v10, %v854_v53  ;;  %v7501_v53 = vld [vmem:[#allocation103_spill] sm:$0xff]  ;;  %v7536_v10 = vld [vmem:[#allocation114_spill] sm:$0xff] }
 0x168   : >> { %v960_v18 = vpop.f32.mrf.mxu1 }
 0x17f   : >> { %v1125_v38 = vpop.f32.mrf.mxu0 }
 0x180   : >> { %v1126_v57 = vadd.f32 %v1125_v38, %v959_v11  ;;  %v7499_v11 = vld [vmem:[#allocation98_spill] sm:$0xff] }
 0x181   : >> { %v1127_v41 = vpop.f32.mrf.mxu0 }
 0x182   : >> { %v7502_v41 = vld [vmem:[#allocation108_spill] sm:$0xff] }
 0x187   : >> { %v1228_v6 = vpop.f32.mrf.mxu1 }
 0x188   : >> { %v1229_v34 = vadd.f32 %v1228_v6, %v1126_v57  ;;  %v7500_v57 = vld [vmem:[#allocation100_spill] sm:$0xff] }
 0x189   : >> { %v1230_v24 = vpop.f32.mrf.mxu1 }
 0x18a   : >> { %v1232_v23 = vadd.f32 %v1229_v34, %v342_v56  ;;  %v7498_v24 = vld [vmem:[#allocation95_spill] sm:$0xff]  ;;  %v7503_v56 = vld [vmem:[#allocation109_spill] sm:$0xff] }
 0x18c   : >> { %4411 = vtanh.f32 %v1232_v23 }
 0x199   : >> { %v5681_v60 = vpop.eup %4411  }
 0x19a   : >> { %v5684_v37 = vand.u32 4294901760, %v5681_v60 }
 0x19c   : >> { %1568 = vmatmul.mubr.f32.vlgmr.msra.gmra.mxu1 %v5684_v37  ;;  %v5689_v48 = vsub.f32 %v5681_v60, %v5684_v37 }
 0x19d   : >> { %1714 = vmatpush1.msra.mxu1 %v4917_v7  ;;  %1807 = vmatprep.mubr.f32.mxu1 %v7410_v46 }
 0x19e   : >> { %1716 = vmatprep.subr.mxu1 %v4919_v8  ;;  %v1333_v6 = vand.u32 4294901760, %v5689_v48 }
 0x19f   : >> { %1718 = vmatpush1.msra.mxu1 %v4923_v13 }
 0x1a0   : >> { %1720 = vmatprep.subr.mxu1 %v4925_v14  ;;  %v1334_v34 = vsub.f32 %v5689_v48, %v1333_v6 }
 0x1a1   : >> { %1722 = vmatpush1.msra.mxu1 %v4927_v15 }
 0x1a2   : >> { %1724 = vmatprep.subr.mxu1 %v4930_v19  ;;  %v1335_v23 = vand.u32 4294901760, %v1334_v34 }
 0x1a3   : >> { %1726 = vmatpush1.msra.mxu1 %v4932_v20 }
 0x1a4   : >> { %1728 = vmatprep.subr.mxu1 %v4934_v21  ;;  %1336 = vmatmul.mubr.f32.vlgmr.msra.gmra.mxu0 %v1335_v23 }
 0x1a5   : >> { %1579 = vmatpush1.msra.mxu0 %v4950_v27  ;;  %1730 = vmatpush1.msra.mxu1 %v4947_v26  ;;  %v7484_v27 = vld [vmem:[#allocation60_spill] sm:$0xff] }
 0x1a6   : >> { %1582 = vmatprep.subr.mxu0 %v4956_v29  ;;  %1732 = vmatprep.subr.mxu1 %v4953_v28  ;;  %v7485_v29 = vld [vmem:[#allocation65_spill] sm:$0xff] }
 0x1a7   : >> { %1585 = vmatpush1.msra.mxu0 %v4972_v35  ;;  %1734 = vmatpush1.msra.mxu1 %v7411_v22  ;;  %v7487_v35 = vld [vmem:[#allocation70_spill] sm:$0xff] }
 0x1a8   : >> { %1588 = vmatprep.subr.mxu0 %v4985_v39  ;;  %1736 = vmatprep.subr.mxu1 %v7412_v40  ;;  %v7488_v39 = vld [vmem:[#allocation73_spill] sm:$0xff] }
 0x1a9   : >> { %1591 = vmatpush1.msra.mxu0 %v4999_v44  ;;  %1738 = vmatpush1.msra.mxu1 %v7413_v30  ;;  %v7489_v44 = vld [vmem:[#allocation77_spill] sm:$0xff] }
 0x1aa   : >> { %1594 = vmatprep.subr.mxu0 %v5013_v49  ;;  %1740 = vmatprep.subr.mxu1 %v7414_v31  ;;  %v7490_v49 = vld [vmem:[#allocation80_spill] sm:$0xff] }
 0x1ab   : >> { %1597 = vmatpush1.msra.mxu0 %v5049_v63  ;;  %1742 = vmatpush1.msra.mxu1 %v7415_v33  ;;  %v7493_v63 = vld [vmem:[#allocation83_spill] sm:$0xff] }
 0x1ac   : >> { %1600 = vmatprep.subr.mxu0 %v5063_v9  ;;  %1744 = vmatprep.subr.mxu1 %v7416_v47  ;;  %v7495_v9 = vld [vmem:[#allocation88_spill] sm:$0xff] }
 0x1ad   : >> { %1603 = vmatpush1.msra.mxu0 %v5079_v42  ;;  %1746 = vmatpush1.msra.mxu1 %v7417_v0  ;;  %v7496_v42 = vld [vmem:[#allocation92_spill] sm:$0xff] }
 0x1ae   : >> { %1606 = vmatprep.subr.mxu0 %v5095_v58  ;;  %1748 = vmatprep.subr.mxu1 %v7418_v45  ;;  %v7497_v58 = vld [vmem:[#allocation21_spill] sm:$0xff] }
 0x1af   : >> { %1609 = vmatpush1.msra.mxu0 %v5109_v12  ;;  %1750 = vmatpush1.msra.mxu1 %v7419_v62  ;;  %v7486_v12 = vld [vmem:[#allocation67_spill] sm:$0xff] }
 0x1b0   : >> { %1612 = vmatprep.subr.mxu0 %v5125_v61  ;;  %1752 = vmatprep.subr.mxu1 %v7420_v54  ;;  %v7492_v61 = vld [vmem:[#allocation86_spill] sm:$0xff] }
 0x1b1   : >> { %1615 = vmatpush1.msra.mxu0 %v5141_v51  ;;  %1754 = vmatpush1.msra.mxu1 %v7421_v52  ;;  %v7491_v51 = vld [vmem:[#allocation79_spill] sm:$0xff] }
 0x1b2   : >> { %1618 = vmatprep.subr.mxu0 %v5169_v4  ;;  %1756 = vmatprep.subr.mxu1 %v5154_v5  ;;  %v7494_v4 = vld [vmem:[#allocation89_spill] sm:$0xff] }
 0x1b3   : >> { %1621 = vmatpush1.msra.mxu0 %v7484_v27  ;;  %1758 = vmatpush1.msra.mxu1 %v7422_v16 }
 0x1b4   : >> { %1624 = vmatprep.subr.mxu0 %v7485_v29  ;;  %1760 = vmatprep.subr.mxu1 %v5198_v43 }
 0x1b5   : >> { %1627 = vmatpush1.msra.mxu0 %v7486_v12  ;;  %1762 = vmatpush1.msra.mxu1 %v5214_v59 }
 0x1b6   : >> { %1630 = vmatprep.subr.mxu0 %v7487_v35  ;;  %1764 = vmatprep.subr.mxu1 %v7425_v25 }
 0x1b7   : >> { %1633 = vmatpush1.msra.mxu0 %v7488_v39  ;;  %1766 = vmatpush1.msra.mxu1 %v5243_v55 }
 0x1b8   : >> { %1636 = vmatprep.subr.mxu0 %v7489_v44  ;;  %1768 = vmatprep.subr.mxu1 %v7428_v1 }
 0x1b9   : >> { %1639 = vmatpush1.msra.mxu0 %v7490_v49  ;;  %1770 = vmatpush1.msra.mxu1 %v7491_v51 }
 0x1ba   : >> { %1642 = vmatprep.subr.mxu0 %v7492_v61  ;;  %1772 = vmatprep.subr.mxu1 %v7493_v63 }
 0x1bb   : >> { %1645 = vmatpush1.msra.mxu0 %v7494_v4  ;;  %1774 = vmatpush1.msra.mxu1 %v7495_v9 }
 0x1bc   : >> { %1648 = vmatprep.subr.mxu0 %v7496_v42  ;;  %1811 = vmatmul.mubr.f32.vlgmr.msra.gmra.mxu1 %v1333_v6 }
 0x1bd   : >> { %1986 = vmatprep.subr.mxu1 %v7497_v58  ;;  %1651 = vmatpush1.msra.mxu0 %v7498_v24  ;;  %v7537_v58 = vld [vmem:[#allocation20_spill] sm:$0xff] }
 0x1be   : >> { %1988 = vmatpush1.msra.mxu1 %v4917_v7  ;;  %1654 = vmatprep.subr.mxu0 %v7499_v11  ;;  %v7504_v7 = vld [vmem:[#allocation112_spill] sm:$0xff] }
 0x1bf   : >> { %1990 = vmatprep.subr.mxu1 %v4919_v8  ;;  %1657 = vmatpush1.msra.mxu0 %v7500_v57  ;;  %v7505_v8 = vld [vmem:[#allocation23_spill] sm:$0xff] }
 0x1c0   : >> { %1992 = vmatpush1.msra.mxu1 %v4923_v13  ;;  %1660 = vmatprep.subr.mxu0 %v7501_v53  ;;  %v7506_v13 = vld [vmem:[#allocation26_spill] sm:$0xff] }
 0x1c1   : >> { %1994 = vmatprep.subr.mxu1 %v4925_v14  ;;  %1663 = vmatpush1.msra.mxu0 %v7502_v41  ;;  %v7507_v14 = vld [vmem:[#allocation27_spill] sm:$0xff] }
 0x1c2   : >> { %1996 = vmatpush1.msra.mxu1 %v4927_v15  ;;  %1666 = vmatprep.subr.mxu0 %v7503_v56  ;;  %v7508_v15 = vld [vmem:[#allocation29_spill] sm:$0xff] }
 0x1c3   : >> { %1998 = vmatprep.subr.mxu1 %v4930_v19  ;;  %1669 = vmatpush1.msra.mxu0 %v7504_v7  ;;  %v7509_v19 = vld [vmem:[#allocation31_spill] sm:$0xff] }
 0x1c4   : >> { %1702 = vmatprep.mubr.f32.mxu0 %v7410_v46  ;;  %2000 = vmatpush1.msra.mxu1 %v4932_v20  ;;  %v7510_v20 = vld [vmem:[#allocation33_spill] sm:$0xff] }
 0x1c5   : >> { %1705 = vmatmul.mubr.f32.vlgmr.msra.gmra.mxu0 %v5689_v48  ;;  %1820 = vmatprep.subr.mxu0 %v7505_v8 }
 0x1c6   : >> { %2002 = vmatprep.subr.mxu1 %v4934_v21  ;;  %1824 = vmatpush1.msra.mxu0 %v7506_v13  ;;  %v7511_v21 = vld [vmem:[#allocation37_spill] sm:$0xff] }
 0x1c7   : >> { %2004 = vmatpush1.msra.mxu1 %v4947_v26  ;;  %1828 = vmatprep.subr.mxu0 %v7507_v14  ;;  %v7512_v26 = vld [vmem:[#allocation43_spill] sm:$0xff] }
 0x1c8   : >> { %2006 = vmatprep.subr.mxu1 %v4953_v28  ;;  %1832 = vmatpush1.msra.mxu0 %v7508_v15  ;;  %v7513_v28 = vld [vmem:[#allocation46_spill] sm:$0xff] }
 0x1c9   : >> { %2008 = vmatpush1.msra.mxu1 %v7411_v22  ;;  %1836 = vmatprep.subr.mxu0 %v7509_v19  ;;  %v7514_v22 = vld [vmem:[#allocation48_spill] sm:$0xff] }
 0x1ca   : >> { %2010 = vmatprep.subr.mxu1 %v7412_v40  ;;  %1840 = vmatpush1.msra.mxu0 %v7510_v20  ;;  %v7515_v40 = vld [vmem:[#allocation50_spill] sm:$0xff] }
 0x1cb   : >> { %2012 = vmatpush1.msra.mxu1 %v7413_v30  ;;  %1844 = vmatprep.subr.mxu0 %v7511_v21  ;;  %v7516_v30 = vld [vmem:[#allocation53_spill] sm:$0xff] }
 0x1cc   : >> { %2014 = vmatprep.subr.mxu1 %v7414_v31  ;;  %1848 = vmatpush1.msra.mxu0 %v7512_v26  ;;  %v7517_v31 = vld [vmem:[#allocation55_spill] sm:$0xff] }
 0x1cd   : >> { %2016 = vmatpush1.msra.mxu1 %v7415_v33  ;;  %1852 = vmatprep.subr.mxu0 %v7513_v28  ;;  %v7518_v33 = vld [vmem:[#allocation57_spill] sm:$0xff] }
 0x1ce   : >> { %2018 = vmatprep.subr.mxu1 %v7416_v47  ;;  %1856 = vmatpush1.msra.mxu0 %v7514_v22  ;;  %v7519_v47 = vld [vmem:[#allocation62_spill] sm:$0xff] }
 0x1cf   : >> { %2020 = vmatpush1.msra.mxu1 %v7417_v0  ;;  %1860 = vmatprep.subr.mxu0 %v7515_v40  ;;  %v7520_v0 = vld [vmem:[#allocation64_spill] sm:$0xff]  ;;  %v5829_v40 = vmov 0.0  }
 0x1d0   : >> { %2022 = vmatprep.subr.mxu1 %v7418_v45  ;;  %1864 = vmatpush1.msra.mxu0 %v7516_v30  ;;  %v7521_v45 = vld [vmem:[#allocation69_spill] sm:$0xff]  ;;  %v5831_v30 = vmov 1.0  }
 0x1d1   : >> { %2024 = vmatpush1.msra.mxu1 %v7419_v62  ;;  %1868 = vmatprep.subr.mxu0 %v7517_v31  ;;  %v7522_v62 = vld [vmem:[#allocation72_spill] sm:$0xff] }
 0x1d2   : >> { %2026 = vmatprep.subr.mxu1 %v7420_v54  ;;  %1872 = vmatpush1.msra.mxu0 %v7518_v33  ;;  %v7523_v54 = vld [vmem:[#allocation76_spill] sm:$0xff] }
 0x1d3   : >> { %2028 = vmatpush1.msra.mxu1 %v7421_v52  ;;  %1876 = vmatprep.subr.mxu0 %v7519_v47  ;;  %v7524_v52 = vld [vmem:[#allocation78_spill] sm:$0xff] }
 0x1d4   : >> { %2030 = vmatprep.subr.mxu1 %v5154_v5  ;;  %1880 = vmatpush1.msra.mxu0 %v7520_v0  ;;  %v7525_v5 = vld [vmem:[#allocation82_spill] sm:$0xff] }
 0x1d5   : >> { %2032 = vmatpush1.msra.mxu1 %v7422_v16  ;;  %1884 = vmatprep.subr.mxu0 %v7521_v45  ;;  %v7526_v16 = vld [vmem:[#allocation85_spill] sm:$0xff] }
 0x1d6   : >> { %2034 = vmatprep.subr.mxu1 %v5198_v43  ;;  %1888 = vmatpush1.msra.mxu0 %v7522_v62  ;;  %v7527_v43 = vld [vmem:[#allocation91_spill] sm:$0xff] }
 0x1d7   : >> { %2036 = vmatpush1.msra.mxu1 %v5214_v59  ;;  %1892 = vmatprep.subr.mxu0 %v7523_v54  ;;  %v7528_v59 = vld [vmem:[#allocation94_spill] sm:$0xff] }
 0x1d8   : >> { %2038 = vmatprep.subr.mxu1 %v7425_v25  ;;  %1896 = vmatpush1.msra.mxu0 %v7524_v52  ;;  %v7529_v25 = vld [vmem:[#allocation97_spill] sm:$0xff] }
 0x1d9   : >> { %2040 = vmatpush1.msra.mxu1 %v5243_v55  ;;  %1900 = vmatprep.subr.mxu0 %v7525_v5  ;;  %v7530_v55 = vld [vmem:[#allocation99_spill] sm:$0xff] }
 0x1da   : >> { %2042 = vmatprep.subr.mxu1 %v7428_v1  ;;  %1904 = vmatpush1.msra.mxu0 %v7526_v16  ;;  %v7531_v1 = vld [vmem:[#allocation102_spill] sm:$0xff] }
 0x1db   : >> { %2044 = vmatpush1.msra.mxu1 %v7491_v51  ;;  %1908 = vmatprep.subr.mxu0 %v7527_v43 }
 0x1dc   : >> { %2046 = vmatprep.subr.mxu1 %v7493_v63  ;;  %1912 = vmatpush1.msra.mxu0 %v7528_v59 }
 0x1dd   : >> { %2048 = vmatpush1.msra.mxu1 %v7495_v9  ;;  %2081 = vmatprep.mubr.f32.mxu1 %v7410_v46 }
 0x1de   : >> { %1916 = vmatprep.subr.mxu0 %v7529_v25  ;;  %2083 = vmatmul.mubr.f32.vlgmr.msra.gmra.mxu1 %v5684_v37 }
 0x1df   : >> { %1920 = vmatpush1.msra.mxu0 %v7530_v55  ;;  %1977 = vmatprep.mubr.f32.mxu0 %v7410_v46 }
 0x1e0   : >> { %1924 = vmatprep.subr.mxu0 %v7531_v1 }
 0x1e1   : >> { %1928 = vmatpush1.msra.mxu0 %v7532_v3 }
 0x1e2   : >> { %1932 = vmatprep.subr.mxu0 %v7533_v50 }
 0x1e3   : >> { %1936 = vmatpush1.msra.mxu0 %v7534_v2 }
 0x1e4   : >> { %1940 = vmatprep.subr.mxu0 %v7535_v17 }
 0x1e5   : >> { %1944 = vmatpush1.msra.mxu0 %v7536_v10 }
 0x1e6   : >> { %1979 = vmatmul.mubr.f32.vlgmr.msra.gmra.mxu0 %v5684_v37 }
 0x25c   : >> { %v1569_v38 = vpop.f32.mrf.mxu1 }
 0x25e   : >> { %v1571_v6 = vpop.f32.mrf.mxu1 }
 0x264   : >> { %v1337_v18 = vpop.f32.mrf.mxu0 }
 0x265   : >> { %v1570_v46 = vadd.f32 %v1569_v38, %v1337_v18 }
 0x266   : >> { %v1339_v32 = vpop.f32.mrf.mxu0 }
 0x267   : >> { %v1572_v27 = vadd.f32 %v1571_v6, %v1339_v32 }
 0x27c   : >> { %v1812_v34 = vpop.f32.mrf.mxu1 }
 0x27e   : >> { %v1814_v35 = vpop.f32.mrf.mxu1 }
 0x285   : >> { %v1706_v48 = vpop.f32.mrf.mxu0 }
 0x286   : >> { %v1707_v29 = vadd.f32 %v1706_v48, %v1570_v46 }
 0x287   : >> { %v1708_v23 = vpop.f32.mrf.mxu0 }
 0x288   : >> { %v1709_v12 = vadd.f32 %v1708_v23, %v1572_v27  ;;  %v1813_v39 = vadd.f32 %v1812_v34, %v1707_v29 }
 0x28a   : >> { %v1815_v61 = vadd.f32 %v1814_v35, %v1709_v12 }
 0x29e   : >> { %v2084_v44 = vpop.f32.mrf.mxu1 }
 0x2a0   : >> { %v2086_v9 = vpop.f32.mrf.mxu1 }
 0x2a6   : >> { %v1980_v49 = vpop.f32.mrf.mxu0 }
 0x2a7   : >> { %v1981_v51 = vadd.f32 %v1980_v49, %v1813_v39 }
 0x2a8   : >> { %v1982_v63 = vpop.f32.mrf.mxu0 }
 0x2a9   : >> { %v2085_v4 = vadd.f32 %v2084_v44, %v1981_v51   ;;  %v1983_v37 = vadd.f32 %v1982_v63, %v1815_v61 }
 0x2ab   : >> { %v2087_v42 = vadd.f32 %v2086_v9, %v1983_v37 }
 0x2ad   : >> { %v2095_v24 = vadd.f32 %v7537_v58, %v2087_v42 }
 0x2af   : >> { %v4211_v11 = vmul.f32 -1.442695, %v2095_v24 }
 0x2b1   : >> { %4413 = vpow2.f32 %v4211_v11 }
 0x2be   : >> { %v4414_v57 = vpop.eup %4413 }
 0x2bf   : >> { %v2099_v53 = vadd.f32 1.0, %v4414_v57 }
 0x2c1   : >> { %4415 = vrcp.f32 %v2099_v53 }
 0x2ce   : >> { %v4416_v41 = vpop.eup %4415  }
 0x2cf   : >> { %v4212_v56 = vadd.f32 -1.0, %v4416_v41  ;;  %4109 = vmin.xlane.f32.xlu0 %v4416_v41 }
 0x2d1   : >> { %v2103_v7 = vmax.f32 %v4212_v56, 0.0 }
 0x2d3   : >> { %v2104_v8 = vsub.f32 %v4416_v41, %v2103_v7 }
 0x2d5   : >> { %v2105_v13 = vmul.f32 %v5681_v60, %v2104_v8 }
 0x2d7   : >> { %v2106_v14 = vadd.f32 %v5681_v60, %v2105_v13  }
 0x2d9   : >> { %v7538_v31 = vmov %v2106_v14 }
 0x358   : >> { %v4110_v15 = vpop.xlane.xlu0 %4109 }
 0x359   : >> { %v4111_v19 = vrot.slane %v4110_v15, 4 }
 0x35b   : >> { %v4112_v20 = vmin.f32 %v4110_v15, %v4111_v19 }
 0x35d   : >> { %v4113_v21 = vrot.slane %v4112_v20, 2 }
 0x35f   : >> { %v4114_v26 = vmin.f32 %v4112_v20, %v4113_v21 }
 0x361   : >> { %v4115_v28 = vrot.slane %v4114_v26, 1 }
 0x363   : >> { %v4116_v22 = vmin.f32 %v4114_v26, %v4115_v28 }
 0x365   : >> { %4226 = vpush %v4116_v22 }
 0x396   : >> { %s4227_s15 = spop %4226 }
 0x397   : >> { %p4118_p3 = scmp.lt.f32.partialorder %s4227_s15, 0.99 }
 0x398   : >> { %v5835_v33 = vmov (%p4118_p3), 0.0   ;;  %v5837_v47 = vmov (%p4118_p3), 1.0   ;;  %s5848_s21 = smov (%p4118_p3), 1  }
 0x399   : >> { %4120 = sbr.rel (!%p4118_p3) target bundleno = 1814 (0x716), region = 132 }
 0x39e LB: >>> { %7539 = vst [vmem:[#allocation115_spill] sm:$0xff] %v4677_v33  ;;  %7540 = vst [vmem:[#allocation116_spill] sm:$0xff] %v4681_v47  ;;  %v2169_v0 = vld [vmem:[#allocation6 + $0xf8] sm:$0xff]  ;;  %v2168_v45 = vld [vmem:[#allocation6 + $0xf0] sm:$0xff]  ;;  %v7150_v25 = vmov 0.0   ;;  %s3928_s26 = sadd.s32 2, %s4701_s21   ;;  %s4701_s21 = sphi %s5848_s21, %s7783_s21   ;;  %v4697_v60 = vphi %v5681_v60, %v6661_v60   ;;  %v4693_v4 = vphi %v2085_v4, %v3907_v4   ;;  %v4689_v41 = vphi %v4416_v41, %v3925_v41   ;;  %v4685_v14 = vphi %v2106_v14, %v7782_v14   ;;  %v4681_v47 = vphi %v5837_v47, %v7781_v47   ;;  %v4677_v33 = vphi %v5835_v33, %v7780_v33  }
 0x39f   : >>> { %7541 = vst [vmem:[#allocation117_spill] sm:$0xff] %v4685_v14  ;;  %v2167_v62 = vld [vmem:[#allocation6 + $0xe8] sm:$0xff]  ;;  %v5871_v54 = vand.u32 4294901760, %v2169_v0  ;;  %v5873_v52 = vand.u32 4294901760, %v2168_v45  ;;  %v2166_v16 = vld [vmem:[#allocation6 + $0xe0] sm:$0xff]  ;;  %v2165_v43 = vld [vmem:[#allocation6 + $0xd8] sm:$0xff]  ;;  %2266 = vmatprep.mubr.f32.mxu0 %v7150_v25  ;;  %2502 = vmatprep.mubr.f32.mxu1 %v7150_v25 }
 0x3a0   : >>> { %v5875_v5 = vand.u32 4294901760, %v2167_v62  ;;  %v2164_v59 = vld [vmem:[#allocation6 + $0xd0] sm:$0xff]  ;;  %v5879_v55 = vand.u32 4294901760, %v2166_v16  ;;  %v5881_v1 = vand.u32 4294901760, %v2165_v43  ;;  %v2163_v50 = vld [vmem:[#allocation6 + $0xc8] sm:$0xff]  ;;  %v2162_v2 = vld [vmem:[#allocation6 + $0xc0] sm:$0xff] }
 0x3a1   : >>> { %7542 = vst [vmem:[#allocation118_spill] sm:$0xff] %v5871_v54  ;;  %v5883_v3 = vand.u32 4294901760, %v2164_v59  ;;  %v2161_v17 = vld [vmem:[#allocation6 + $0xb8] sm:$0xff]  ;;  %2171 = vmatprep.subr.mxu0 %v5871_v54  ;;  %v5886_v10 = vand.u32 4294901760, %v2163_v50  ;;  %v5888_v18 = vand.u32 4294901760, %v2162_v2  ;;  %v5893_v32 = vsub.f32 %v2169_v0, %v5871_v54  ;;  %v5895_v48 = vld [vmem:[#allocation6 + $0xb0] sm:$0xff] }
 0x3a2   : >>> { %v5890_v38 = vand.u32 4294901760, %v2161_v17  ;;  %v5897_v6 = vld [vmem:[#allocation6 + $0xa8] sm:$0xff]  ;;  %v5899_v46 = vld [vmem:[#allocation6 + $0xa0] sm:$0xff]  ;;  %2173 = vmatpush1.msra.mxu0 %v5873_v52  ;;  %v5903_v34 = vand.u32 4294901760, %v5895_v48  ;;  %v5906_v23 = vsub.f32 %v2168_v45, %v5873_v52  ;;  %v5912_v29 = vsub.f32 %v2167_v62, %v5875_v5  ;;  %v5914_v12 = vld [vmem:[#allocation6 + $0x98] sm:$0xff]  ;;  %s3042_s20 = sadd.s32 1, %s4701_s21  ;;  %s7783_s21 = smov %s3928_s26 }
 0x3a3   : >>> { %7543 = vst [vmem:[#allocation119_spill] sm:$0xff] %v5893_v32  ;;  %v5909_v27 = vand.u32 4294901760, %v5897_v6  ;;  %v5916_v35 = vld [vmem:[#allocation6 + $0x90] sm:$0xff]  ;;  %v5918_v39 = vld [vmem:[#allocation6 + $0x88] sm:$0xff]  ;;  %2175 = vmatprep.subr.mxu0 %v5875_v5  ;;  %v5922_v44 = vand.u32 4294901760, %v5893_v32  ;;  %v5925_v49 = vand.u32 4294901760, %v5899_v46  ;;  %v5928_v51 = vsub.f32 %v2166_v16, %v5879_v55 }
 0x3a4   : >>> { %7544 = vst [vmem:[#allocation120_spill] sm:$0xff] %v5906_v23  ;;  %7545 = vst [vmem:[#allocation121_spill] sm:$0xff] %v5912_v29  ;;  %v5931_v61 = vand.u32 4294901760, %v5914_v12  ;;  %2177 = vmatpush1.msra.mxu0 %v5879_v55  ;;  %v5935_v63 = vand.u32 4294901760, %v5906_v23  ;;  %v5938_v37 = vand.u32 4294901760, %v5912_v29  ;;  %v5941_v9 = vsub.f32 %v2165_v43, %v5881_v1  ;;  %v5946_v58 = vld [vmem:[#allocation6 + $0x80] sm:$0xff] }
 0x3a5   : >>> { %7546 = vst [vmem:[#allocation122_spill] sm:$0xff] %v5922_v44  ;;  %7547 = vst [vmem:[#allocation123_spill] sm:$0xff] %v5928_v51  ;;  %v5944_v42 = vand.u32 4294901760, %v5916_v35  ;;  %2179 = vmatprep.subr.mxu0 %v5881_v1  ;;  %v2281_v24 = vsub.f32 %v5893_v32, %v5922_v44  ;;  %v5952_v11 = vand.u32 4294901760, %v5928_v51  ;;  %v5955_v57 = vsub.f32 %v2164_v59, %v5883_v3  ;;  %v5971_v15 = vld [vmem:[#allocation6 + $0x78] sm:$0xff]  ;;  %v5984_v28 = vld [vmem:[#allocation6 + $0x70] sm:$0xff] }
 0x3a6   : >>> { %7548 = vst [vmem:[#allocation124_spill] sm:$0xff] %v5935_v63  ;;  %7549 = vst [vmem:[#allocation125_spill] sm:$0xff] %v5938_v37  ;;  %v5958_v53 = vand.u32 4294901760, %v5918_v39  ;;  %2181 = vmatpush1.msra.mxu0 %v5883_v3  ;;  %v2287_v56 = vsub.f32 %v5906_v23, %v5935_v63  ;;  %v2293_v7 = vsub.f32 %v5912_v29, %v5938_v37  ;;  %v5966_v8 = vand.u32 4294901760, %v5941_v9  ;;  %v5996_v0 = vld [vmem:[#allocation6 + $0x68] sm:$0xff]  ;;  %v6010_v59 = vld [vmem:[#allocation6 + $0x60] sm:$0xff] }
 0x3a7   : >>> { %7550 = vst [vmem:[#allocation126_spill] sm:$0xff] %v5941_v9  ;;  %7551 = vst [vmem:[#allocation127_spill] sm:$0xff] %v5952_v11  ;;  %v5969_v13 = vsub.f32 %v2163_v50, %v5886_v10  ;;  %2183 = vmatprep.subr.mxu0 %v5886_v10  ;;  %v5974_v19 = vand.u32 4294901760, %v2281_v24  ;;  %v2299_v20 = vsub.f32 %v5928_v51, %v5952_v11  ;;  %v5979_v21 = vand.u32 4294901760, %v5955_v57  ;;  %v6040_v14 = vld [vmem:[#allocation6 + $0x50] sm:$0xff]  ;;  %v6112_v11 = vld [vmem:[#allocation6 + $0x38] sm:$0xff] }
 0x3a8   : >>> { %7552 = vst [vmem:[#allocation128_spill] sm:$0xff] %v5955_v57  ;;  %7553 = vst [vmem:[#allocation129_spill] sm:$0xff] %v5966_v8  ;;  %v5982_v26 = vand.u32 4294901760, %v5946_v58  ;;  %2185 = vmatpush1.msra.mxu0 %v5888_v18  ;;  %v5987_v22 = vand.u32 4294901760, %v2287_v56  ;;  %v5989_v40 = vand.u32 4294901760, %v2293_v7  ;;  %v2305_v30 = vsub.f32 %v5941_v9, %v5966_v8  ;;  %v6024_v7 = vld [vmem:[#allocation6 + $0x58] sm:$0xff] }
 0x3a9   : >>> { %7554 = vst [vmem:[#allocation130_spill] sm:$0xff] %v5969_v13  ;;  %7555 = vst [vmem:[#allocation131_spill] sm:$0xff] %v5974_v19  ;;  %v5994_v31 = vand.u32 4294901760, %v5969_v13  ;;  %2187 = vmatprep.subr.mxu0 %v5890_v38  ;;  %2283 = vmatprep.subr.mxu1 %v5974_v19  ;;  %v6000_v45 = vand.u32 4294901760, %v2299_v20  ;;  %v2311_v62 = vsub.f32 %v5955_v57, %v5979_v21  ;;  %v6008_v43 = vand.u32 4294901760, %v5971_v15  ;;  %v6127_v63 = vld [vmem:[#allocation6 + $0x30] sm:$0xff] }
 0x3aa   : >>> { %7556 = vst [vmem:[#allocation132_spill] sm:$0xff] %v5979_v21  ;;  %7557 = vst [vmem:[#allocation133_spill] sm:$0xff] %v5987_v22  ;;  %v6005_v16 = vsub.f32 %v2162_v2, %v5888_v18  ;;  %2189 = vmatpush1.msra.mxu0 %v5903_v34  ;;  %2289 = vmatpush1.msra.mxu1 %v5987_v22  ;;  %v6014_v50 = vand.u32 4294901760, %v2305_v30  ;;  %v6019_v56 = vsub.f32 %v2161_v17, %v5890_v38  ;;  %v6070_v22 = vld [vmem:[#allocation6 + $0x48] sm:$0xff]  ;;  %v7618_v36 = vld [vmem:[#allocation24_spill] sm:$0xff]  ;;  %p3043_p12 = scmp.lt.s32.totalorder %s3042_s20, 12 }
 0x3ab   : >>> { %7558 = vst [vmem:[#allocation134_spill] sm:$0xff] %v5989_v40  ;;  %7559 = vst [vmem:[#allocation135_spill] sm:$0xff] %v5994_v31  ;;  %v2317_v24 = vsub.f32 %v5969_v13, %v5994_v31  ;;  %v6022_v2 = vand.u32 4294901760, %v5984_v28  ;;  %2191 = vmatprep.subr.mxu0 %v5909_v27  ;;  %2295 = vmatprep.subr.mxu1 %v5989_v40  ;;  %v6028_v20 = vand.u32 4294901760, %v2311_v62  ;;  %v6038_v17 = vand.u32 4294901760, %v5996_v0  ;;  %p2115_p2 = scmp.lt.s32.totalorder %s3928_s26, 12 }
 0x3ac   : >>> { %7560 = vst [vmem:[#allocation136_spill] sm:$0xff] %v6000_v45  ;;  %7561 = vst [vmem:[#allocation137_spill] sm:$0xff] %v6005_v16  ;;  %v6031_v30 = vand.u32 4294901760, %v6005_v16  ;;  %v6035_v25 = vsub.f32 %v5895_v48, %v5903_v34  ;;  %2193 = vmatpush1.msra.mxu0 %v5925_v49  ;;  %2301 = vmatpush1.msra.mxu1 %v6000_v45  ;;  %v6047_v62 = vand.u32 4294901760, %v6019_v56  ;;  %v6054_v48 = vand.u32 4294901760, %v6010_v59 }
 0x3ad   : >>> { %7562 = vst [vmem:[#allocation138_spill] sm:$0xff] %v6014_v50  ;;  %7563 = vst [vmem:[#allocation139_spill] sm:$0xff] %v6019_v56  ;;  %v6044_v33 = vand.u32 4294901760, %v2317_v24  ;;  %v6051_v47 = vsub.f32 %v5897_v6, %v5909_v27  ;;  %2195 = vmatprep.subr.mxu0 %v5931_v61  ;;  %2307 = vmatprep.subr.mxu1 %v6014_v50  ;;  %v6065_v45 = vsub.f32 %v5899_v46, %v5925_v49  ;;  %s3045_s6 = scalar_select %p3043_p12, 1, 0 }
 0x3ae   : >>> { %7564 = vst [vmem:[#allocation140_spill] sm:$0xff] %v6022_v2  ;;  %7565 = vst [vmem:[#allocation141_spill] sm:$0xff] %v6028_v20  ;;  %v2323_v40 = vsub.f32 %v6005_v16, %v6031_v30  ;;  %v6061_v24 = vand.u32 4294901760, %v6035_v25  ;;  %v6068_v6 = vand.u32 4294901760, %v6024_v7  ;;  %2197 = vmatpush1.msra.mxu0 %v5944_v42  ;;  %2313 = vmatpush1.msra.mxu1 %v6028_v20  ;;  %v6084_v46 = vand.u32 4294901760, %v6040_v14 }
 0x3af   : >>> { %7566 = vst [vmem:[#allocation142_spill] sm:$0xff] %v6031_v30  ;;  %7567 = vst [vmem:[#allocation143_spill] sm:$0xff] %v6035_v25  ;;  %v2329_v50 = vsub.f32 %v6019_v56, %v6047_v62  ;;  %v6077_v19 = vand.u32 4294901760, %v6051_v47  ;;  %v6081_v30 = vsub.f32 %v5914_v12, %v5931_v61  ;;  %2199 = vmatprep.subr.mxu0 %v5958_v53  ;;  %2319 = vmatprep.subr.mxu1 %v6044_v33  ;;  %v6099_v12 = vld [vmem:[#allocation6 + $0x40] sm:$0xff] }
 0x3b0   : >>> { %7568 = vst [vmem:[#allocation144_spill] sm:$0xff] %v6038_v17  ;;  %7569 = vst [vmem:[#allocation145_spill] sm:$0xff] %v6044_v33  ;;  %v6088_v31 = vand.u32 4294901760, %v2323_v40  ;;  %v2335_v20 = vsub.f32 %v6035_v25, %v6061_v24  ;;  %v6097_v21 = vsub.f32 %v5916_v35, %v5944_v42  ;;  %2201 = vmatpush1.msra.mxu0 %v5982_v26  ;;  %vm2130_vm0 = vcmp.lt.f32.partialorder %v4689_v41, 0.99 }
 0x3b1   : >>> { %7570 = vst [vmem:[#allocation146_spill] sm:$0xff] %v6047_v62  ;;  %7571 = vst [vmem:[#allocation147_spill] sm:$0xff] %v6051_v47  ;;  %v6093_v62 = vand.u32 4294901760, %v6065_v45  ;;  %v6102_v8 = vand.u32 4294901760, %v2329_v50  ;;  %v2341_v40 = vsub.f32 %v6051_v47, %v6077_v19  ;;  %v6107_v33 = vand.u32 4294901760, %v6081_v30  ;;  %2203 = vmatprep.subr.mxu0 %v6008_v43 }
 0x3b2   : >>> { %7572 = vst [vmem:[#allocation148_spill] sm:$0xff] %v6054_v48  ;;  %7573 = vst [vmem:[#allocation149_spill] sm:$0xff] %v6061_v24  ;;  %v6110_v24 = vand.u32 4294901760, %v6070_v22  ;;  %2325 = vmatpush1.msra.mxu1 %v6088_v31  ;;  %v6116_v35 = vand.u32 4294901760, %v2335_v20  ;;  %v6121_v37 = vand.u32 4294901760, %v6097_v21  ;;  %2205 = vmatpush1.msra.mxu0 %v6022_v2  ;;  %v6140_v44 = vsub.f32 %v5946_v58, %v5982_v26 }
 0x3b3   : >>> { %7574 = vst [vmem:[#allocation150_spill] sm:$0xff] %v6065_v45  ;;  %7575 = vst [vmem:[#allocation151_spill] sm:$0xff] %v6068_v6  ;;  %v2347_v50 = vsub.f32 %v6065_v45, %v6093_v62  ;;  %2331 = vmatprep.subr.mxu1 %v6102_v8  ;;  %v2353_v20 = vsub.f32 %v6081_v30, %v6107_v33  ;;  %2207 = vmatprep.subr.mxu0 %v6038_v17  ;;  %v6156_v45 = vld [vmem:[#allocation6 + $0x20] sm:$0xff] }
 0x3b4   : >>> { %7576 = vst [vmem:[#allocation152_spill] sm:$0xff] %v6077_v19  ;;  %7577 = vst [vmem:[#allocation153_spill] sm:$0xff] %v6081_v30  ;;  %v6125_v19 = vsub.f32 %v5918_v39, %v5958_v53  ;;  %v6142_v39 = vld [vmem:[#allocation6 + $0x28] sm:$0xff]  ;;  %2337 = vmatpush1.msra.mxu1 %v6116_v35  ;;  %v6154_v30 = vand.u32 4294901760, %v6112_v11  ;;  %2209 = vmatpush1.msra.mxu0 %v6054_v48  ;;  %v6182_v47 = vsub.f32 %v5984_v28, %v6022_v2 }
 0x3b5   : >>> { %7578 = vst [vmem:[#allocation154_spill] sm:$0xff] %v6088_v31  ;;  %7579 = vst [vmem:[#allocation155_spill] sm:$0xff] %v6093_v62  ;;  %v6131_v31 = vand.u32 4294901760, %v2341_v40  ;;  %v6136_v62 = vand.u32 4294901760, %v6099_v12  ;;  %v2359_v40 = vsub.f32 %v6097_v21, %v6121_v37  ;;  %v6160_v58 = vand.u32 4294901760, %v2353_v20  ;;  %2211 = vmatprep.subr.mxu0 %v6068_v6 }
 0x3b6   : >>> { %7580 = vst [vmem:[#allocation156_spill] sm:$0xff] %v6097_v21  ;;  %7581 = vst [vmem:[#allocation157_spill] sm:$0xff] %v6102_v8  ;;  %v6146_v8 = vand.u32 4294901760, %v2347_v50  ;;  %v6163_v50 = vand.u32 4294901760, %v6140_v44  ;;  %v6172_v21 = vld [vmem:[#allocation6 + $0x18] sm:$0xff]  ;;  %2213 = vmatpush1.msra.mxu0 %v6084_v46  ;;  %v6199_v28 = vand.u32 4294901760, %v6156_v45  ;;  %v6229_v25 = vsub.f32 %v6024_v7, %v6068_v6 }
 0x3b7   : >>> { %7582 = vst [vmem:[#allocation158_spill] sm:$0xff] %v6107_v33  ;;  %7583 = vst [vmem:[#allocation159_spill] sm:$0xff] %v6116_v35  ;;  %v6151_v33 = vand.u32 4294901760, %v6125_v19  ;;  %2343 = vmatprep.subr.mxu1 %v6131_v31  ;;  %v6167_v35 = vsub.f32 %v5971_v15, %v6008_v43  ;;  %v6185_v15 = vand.u32 4294901760, %v6142_v39  ;;  %2215 = vmatprep.subr.mxu0 %v6110_v24 }
 0x3b8   : >>> { %7584 = vst [vmem:[#allocation160_spill] sm:$0xff] %v6121_v37  ;;  %7585 = vst [vmem:[#allocation161_spill] sm:$0xff] %v6125_v19  ;;  %v6170_v37 = vand.u32 4294901760, %v6127_v63  ;;  %2349 = vmatpush1.msra.mxu1 %v6146_v8  ;;  %2217 = vmatpush1.msra.mxu0 %v6136_v62 }
 0x3b9   : >>> { %7586 = vst [vmem:[#allocation162_spill] sm:$0xff] %v6131_v31  ;;  %7587 = vst [vmem:[#allocation163_spill] sm:$0xff] %v6140_v44  ;;  %v6176_v31 = vand.u32 4294901760, %v2359_v40  ;;  %v2365_v20 = vsub.f32 %v6125_v19, %v6151_v33  ;;  %2355 = vmatprep.subr.mxu1 %v6160_v58  ;;  %v6192_v40 = vand.u32 4294901760, %v6167_v35  ;;  %v6201_v19 = vld [vmem:[#allocation6 + $0x10] sm:$0xff]  ;;  %2219 = vmatprep.subr.mxu0 %v6154_v30 }
 0x3ba   : >>> { %7588 = vst [vmem:[#allocation164_spill] sm:$0xff] %v6146_v8  ;;  %7589 = vst [vmem:[#allocation165_spill] sm:$0xff] %v6151_v33  ;;  %v2371_v8 = vsub.f32 %v6140_v44, %v6163_v50  ;;  %v6196_v33 = vsub.f32 %v5996_v0, %v6038_v17  ;;  %v6212_v44 = vsub.f32 %v6010_v59, %v6054_v48  ;;  %v6215_v0 = vand.u32 4294901760, %v6172_v21  ;;  %v6217_v17 = vld [vmem:[#allocation6 + $0x8] sm:$0xff] }
 0x3bb   : >>> { %7590 = vst [vmem:[#allocation166_spill] sm:$0xff] %v6160_v58  ;;  %7591 = vst [vmem:[#allocation167_spill] sm:$0xff] %v6163_v50  ;;  %2361 = vmatpush1.msra.mxu1 %v6176_v31  ;;  %v6205_v58 = vand.u32 4294901760, %v2365_v20  ;;  %v6208_v50 = vand.u32 4294901760, %v6182_v47  ;;  %v2377_v20 = vsub.f32 %v6167_v35, %v6192_v40  ;;  %v6239_v48 = vand.u32 4294901760, %v6201_v19  ;;  %2221 = vmatpush1.msra.mxu0 %v6170_v37 }
 0x3bc   : >>> { %7592 = vst [vmem:[#allocation168_spill] sm:$0xff] %v6167_v35  ;;  %7593 = vst [vmem:[#allocation169_spill] sm:$0xff] %v6176_v31  ;;  %v6220_v2 = vand.u32 4294901760, %v2371_v8  ;;  %v6225_v31 = vand.u32 4294901760, %v6196_v33  ;;  %v6236_v8 = vand.u32 4294901760, %v6212_v44  ;;  %v2138_v35 = vld [vmem:[#allocation6] sm:$0xff]  ;;  %2223 = vmatprep.subr.mxu0 %v6185_v15 }
 0x3bd   : >>> { %7594 = vst [vmem:[#allocation170_spill] sm:$0xff] %v6182_v47  ;;  %7595 = vst [vmem:[#allocation171_spill] sm:$0xff] %v6192_v40  ;;  %2367 = vmatprep.subr.mxu1 %v6205_v58  ;;  %v2383_v59 = vsub.f32 %v6182_v47, %v6208_v50  ;;  %v6243_v40 = vsub.f32 %v6040_v14, %v6084_v46  ;;  %v6246_v7 = vand.u32 4294901760, %v2377_v20  ;;  %v6255_v47 = vand.u32 4294901760, %v6217_v17 }
 0x3be   : >>> { %7596 = vst [vmem:[#allocation172_spill] sm:$0xff] %v6196_v33  ;;  %7597 = vst [vmem:[#allocation173_spill] sm:$0xff] %v6205_v58  ;;  %2373 = vmatpush1.msra.mxu1 %v6220_v2  ;;  %v2389_v58 = vsub.f32 %v6196_v33, %v6225_v31  ;;  %v2395_v14 = vsub.f32 %v6212_v44, %v6236_v8  ;;  %2225 = vmatpush1.msra.mxu0 %v6199_v28  ;;  %v6275_v33 = vand.u32 4294901760, %v2138_v35 }
 0x3bf   : >>> { %7598 = vst [vmem:[#allocation174_spill] sm:$0xff] %v6208_v50  ;;  %7599 = vst [vmem:[#allocation175_spill] sm:$0xff] %v6212_v44  ;;  %v6252_v50 = vand.u32 4294901760, %v6229_v25  ;;  %v6257_v6 = vand.u32 4294901760, %v2383_v59  ;;  %v6263_v20 = vand.u32 4294901760, %v6243_v40  ;;  %2379 = vmatprep.subr.mxu1 %v6246_v7  ;;  %2227 = vmatprep.subr.mxu0 %v6215_v0 }
 0x3c0   : >>> { %7600 = vst [vmem:[#allocation176_spill] sm:$0xff] %v6220_v2  ;;  %7601 = vst [vmem:[#allocation177_spill] sm:$0xff] %v6225_v31  ;;  %v6267_v2 = vsub.f32 %v6070_v22, %v6110_v24  ;;  %v6270_v31 = vand.u32 4294901760, %v2389_v58  ;;  %v6282_v44 = vand.u32 4294901760, %v2395_v14  ;;  %2229 = vmatpush1.msra.mxu0 %v6239_v48 }
 0x3c1   : >>> { %7602 = vst [vmem:[#allocation178_spill] sm:$0xff] %v6236_v8  ;;  %7603 = vst [vmem:[#allocation179_spill] sm:$0xff] %v6239_v48  ;;  %v2401_v59 = vsub.f32 %v6229_v25, %v6252_v50  ;;  %v6279_v8 = vsub.f32 %v6099_v12, %v6136_v62  ;;  %2385 = vmatpush1.msra.mxu1 %v6257_v6  ;;  %v2407_v22 = vsub.f32 %v6243_v40, %v6263_v20 }
 0x3c2   : >>> { %7604 = vst [vmem:[#allocation180_spill] sm:$0xff] %v6246_v7  ;;  %7605 = vst [vmem:[#allocation181_spill] sm:$0xff] %v6252_v50  ;;  %v6288_v58 = vand.u32 4294901760, %v6267_v2  ;;  %v6292_v7 = vsub.f32 %v6112_v11, %v6154_v30  ;;  %2391 = vmatprep.subr.mxu1 %v6270_v31  ;;  %2231 = vmatprep.subr.mxu0 %v6255_v47 }
 0x3c3   : >>> { %7606 = vst [vmem:[#allocation182_spill] sm:$0xff] %v6255_v47  ;;  %7607 = vst [vmem:[#allocation183_spill] sm:$0xff] %v6257_v6  ;;  %v6295_v12 = vand.u32 4294901760, %v2401_v59  ;;  %v6299_v14 = vand.u32 4294901760, %v6279_v8  ;;  %v2133_v6 = vadd.f32 %v4693_v4, %v7618_v36  ;;  %2397 = vmatpush1.msra.mxu1 %v6282_v44  ;;  %2233 = vmatpush1.msra.mxu0 %v6275_v33 }
 0x3c4   : >>> { %7608 = vst [vmem:[#allocation184_spill] sm:$0xff] %v6263_v20  ;;  %7609 = vst [vmem:[#allocation185_spill] sm:$0xff] %v6267_v2  ;;  %v6304_v20 = vand.u32 4294901760, %v2407_v22  ;;  %v2413_v11 = vsub.f32 %v6267_v2, %v6288_v58  ;;  %v6310_v59 = vand.u32 4294901760, %v6292_v7  ;;  %v6318_v4 = vsub.f32 %v6127_v63, %v6170_v37  ;;  %2512 = vmatprep.subr.mxu0 %v5893_v32 }
 0x3c5   : >>> { %7610 = vst [vmem:[#allocation186_spill] sm:$0xff] %v6270_v31  ;;  %7611 = vst [vmem:[#allocation187_spill] sm:$0xff] %v6275_v33  ;;  %2403 = vmatprep.subr.mxu1 %v6295_v12  ;;  %v2419_v31 = vsub.f32 %v6279_v8, %v6299_v14  ;;  %4417 = vtanh.f32 %v2133_v6  ;;  %v6332_v6 = vsub.f32 %v6156_v45, %v6199_v28 }
 0x3c6   : >>> { %7612 = vst [vmem:[#allocation188_spill] sm:$0xff] %v6279_v8  ;;  %7613 = vst [vmem:[#allocation189_spill] sm:$0xff] %v6282_v44  ;;  %2409 = vmatpush1.msra.mxu1 %v6304_v20  ;;  %v6321_v22 = vand.u32 4294901760, %v2413_v11  ;;  %v2425_v36 = vsub.f32 %v6292_v7, %v6310_v59  ;;  %v6337_v63 = vand.u32 4294901760, %v6318_v4  ;;  %v6341_v11 = vsub.f32 %v6172_v21, %v6215_v0 }
 0x3c7   : >>> { %7614 = vst [vmem:[#allocation190_spill] sm:$0xff] %v6288_v58  ;;  %7615 = vst [vmem:[#allocation191_spill] sm:$0xff] %v6292_v7  ;;  %v6334_v44 = vand.u32 4294901760, %v2419_v31  ;;  %v6345_v32 = vsub.f32 %v6201_v19, %v6239_v48  ;;  %v6354_v31 = vand.u32 4294901760, %v6332_v6 }
 0x3c8   : >>> { %7616 = vst [vmem:[#allocation192_spill] sm:$0xff] %v6295_v12  ;;  %7617 = vst [vmem:[#allocation193_spill] sm:$0xff] %v6299_v14  ;;  %v6328_v12 = vsub.f32 %v6142_v39, %v6185_v15  ;;  %2415 = vmatprep.subr.mxu1 %v6321_v22  ;;  %v6348_v39 = vand.u32 4294901760, %v2425_v36  ;;  %v2431_v19 = vsub.f32 %v6318_v4, %v6337_v63  ;;  %v6364_v21 = vand.u32 4294901760, %v6341_v11 }
 0x3c9   : >>> { %7619 = vst [vmem:[#allocation194_spill] sm:$0xff] %v6304_v20  ;;  %7620 = vst [vmem:[#allocation195_spill] sm:$0xff] %v6310_v59  ;;  %v6358_v20 = vsub.f32 %v6217_v17, %v6255_v47  ;;  %2421 = vmatpush1.msra.mxu1 %v6334_v44  ;;  %v6367_v36 = vand.u32 4294901760, %v6345_v32 }
 0x3ca   : >>> { %7621 = vst [vmem:[#allocation196_spill] sm:$0xff] %v6318_v4  ;;  %7622 = vst [vmem:[#allocation197_spill] sm:$0xff] %v6321_v22  ;;  %v6351_v45 = vand.u32 4294901760, %v6328_v12  ;;  %v6370_v22 = vsub.f32 %v2138_v35, %v6275_v33  ;;  %2427 = vmatprep.subr.mxu1 %v6348_v39  ;;  %v2449_v14 = vsub.f32 %v6341_v11, %v6364_v21 }
 0x3cb   : >>> { %7623 = vst [vmem:[#allocation198_spill] sm:$0xff] %v6328_v12  ;;  %7624 = vst [vmem:[#allocation199_spill] sm:$0xff] %v6332_v6  ;;  %v6378_v59 = vand.u32 4294901760, %v6358_v20  ;;  %v2455_v35 = vsub.f32 %v6345_v32, %v6367_v36 }
 0x3cc   : >>> { %7625 = vst [vmem:[#allocation200_spill] sm:$0xff] %v6334_v44  ;;  %7626 = vst [vmem:[#allocation201_spill] sm:$0xff] %v6337_v63  ;;  %v2437_v17 = vsub.f32 %v6328_v12, %v6351_v45  ;;  %v2443_v44 = vsub.f32 %v6332_v6, %v6354_v31  ;;  %v6380_v63 = vand.u32 4294901760, %v2431_v19  ;;  %v6387_v58 = vand.u32 4294901760, %v6370_v22 }
 0x3cd   : >>> { %7627 = vst [vmem:[#allocation202_spill] sm:$0xff] %v6341_v11  ;;  %7628 = vst [vmem:[#allocation203_spill] sm:$0xff] %v6345_v32  ;;  %v6396_v19 = vand.u32 4294901760, %v2449_v14  ;;  %v6398_v50 = vand.u32 4294901760, %v2455_v35  ;;  %v7639_v35 = vmov 0.0  }
 0x3ce   : >>> { %7629 = vst [vmem:[#allocation204_spill] sm:$0xff] %v6348_v39  ;;  %7630 = vst [vmem:[#allocation205_spill] sm:$0xff] %v6351_v45  ;;  %v6389_v39 = vand.u32 4294901760, %v2437_v17  ;;  %v6391_v45 = vand.u32 4294901760, %v2443_v44  ;;  %2433 = vmatpush1.msra.mxu1 %v6380_v63 }
 0x3cf   : >>> { %7631 = vst [vmem:[#allocation206_spill] sm:$0xff] %v6354_v31  ;;  %7632 = vst [vmem:[#allocation207_spill] sm:$0xff] %v6358_v20  ;;  %v2461_v31 = vsub.f32 %v6358_v20, %v6378_v59 }
 0x3d0   : >>> { %7633 = vst [vmem:[#allocation208_spill] sm:$0xff] %v6364_v21  ;;  %7634 = vst [vmem:[#allocation209_spill] sm:$0xff] %v6367_v36  ;;  %v2467_v21 = vsub.f32 %v6370_v22, %v6387_v58  ;;  %2439 = vmatprep.subr.mxu1 %v6389_v39 }
 0x3d1   : >>> { %7635 = vst [vmem:[#allocation210_spill] sm:$0xff] %v6370_v22  ;;  %7636 = vst [vmem:[#allocation211_spill] sm:$0xff] %v6378_v59  ;;  %v6403_v36 = vand.u32 4294901760, %v2461_v31  ;;  %2445 = vmatpush1.msra.mxu1 %v6391_v45 }
 0x3d2   : >>> { %7637 = vst [vmem:[#allocation212_spill] sm:$0xff] %v6387_v58  ;;  %v6406_v44 = vand.u32 4294901760, %v2467_v21  ;;  %2451 = vmatprep.subr.mxu1 %v6396_v19  ;;  %v4418_v14 = vpop.eup %4417 }
 0x3d3   : >>> { %2457 = vmatpush1.msra.mxu1 %v6398_v50  ;;  %v6415_v17 = vsel %vm2130_vm0, %v4418_v14, %v4697_v60 }
 0x3d4   : >>> { %2463 = vmatprep.subr.mxu1 %v6403_v36  ;;  %7638 = vst [vmem:[#allocation213_spill] sm:$0xff] %v6415_v17  ;;  %v6419_v31 = vand.u32 4294901760, %v6415_v17 }
 0x3d5   : >>> { %2469 = vmatpush1.msra.mxu1 %v6406_v44 }
 0x3d6   : >>> { %2648 = vmatprep.subr.mxu1 %v5871_v54  ;;  %v6424_v21 = vsub.f32 %v6415_v17, %v6419_v31  ;;  %2504 = vmatmul.mubr.f32.vlgmr.msra.gmra.mxu1 %v6419_v31 }
 0x3d7   : >>> { %2650 = vmatpush1.msra.mxu1 %v5873_v52  ;;  %2743 = vmatprep.mubr.f32.mxu1 %v7639_v35 }
 0x3d8   : >>> { %v2269_v60 = vand.u32 4294901760, %v6424_v21  ;;  %2652 = vmatprep.subr.mxu1 %v5875_v5 }
 0x3d9   : >>> { %2654 = vmatpush1.msra.mxu1 %v5879_v55 }
 0x3da   : >>> { %v2270_v14 = vsub.f32 %v6424_v21, %v2269_v60  ;;  %2656 = vmatprep.subr.mxu1 %v5881_v1 }
 0x3db   : >>> { %2658 = vmatpush1.msra.mxu1 %v5883_v3 }
 0x3dc   : >>> { %v2271_v17 = vand.u32 4294901760, %v2270_v14  ;;  %2660 = vmatprep.subr.mxu1 %v5886_v10  ;;  %v7641_v14 = vld [vmem:[#allocation140_spill] sm:$0xff] }
 0x3dd   : >>> { %2662 = vmatpush1.msra.mxu1 %v5888_v18 }
 0x3de   : >>> { %2272 = vmatmul.mubr.f32.vlgmr.msra.gmra.mxu0 %v2271_v17  ;;  %2664 = vmatprep.subr.mxu1 %v5890_v38  ;;  %v7640_v17 = vld [vmem:[#allocation143_spill] sm:$0xff] }
 0x3df   : >>> { %2515 = vmatpush1.msra.mxu0 %v5906_v23  ;;  %2666 = vmatpush1.msra.mxu1 %v5903_v34  ;;  %v7648_v23 = vld [vmem:[#allocation156_spill] sm:$0xff] }
 0x3e0   : >>> { %2518 = vmatprep.subr.mxu0 %v5912_v29  ;;  %2668 = vmatprep.subr.mxu1 %v5909_v27  ;;  %v7646_v29 = vld [vmem:[#allocation153_spill] sm:$0xff] }
 0x3e1   : >>> { %2521 = vmatpush1.msra.mxu0 %v5928_v51  ;;  %2670 = vmatpush1.msra.mxu1 %v5925_v49  ;;  %v7644_v51 = vld [vmem:[#allocation150_spill] sm:$0xff] }
 0x3e2   : >>> { %2524 = vmatprep.subr.mxu0 %v5941_v9  ;;  %2672 = vmatprep.subr.mxu1 %v5931_v61  ;;  %v7642_v9 = vld [vmem:[#allocation147_spill] sm:$0xff] }
 0x3e3   : >>> { %2527 = vmatpush1.msra.mxu0 %v5955_v57  ;;  %2674 = vmatpush1.msra.mxu1 %v5944_v42  ;;  %v7643_v57 = vld [vmem:[#allocation144_spill] sm:$0xff] }
 0x3e4   : >>> { %2530 = vmatprep.subr.mxu0 %v5969_v13  ;;  %2676 = vmatprep.subr.mxu1 %v5958_v53  ;;  %v7645_v13 = vld [vmem:[#allocation148_spill] sm:$0xff] }
 0x3e5   : >>> { %2533 = vmatpush1.msra.mxu0 %v6005_v16  ;;  %2678 = vmatpush1.msra.mxu1 %v5982_v26  ;;  %v7647_v16 = vld [vmem:[#allocation151_spill] sm:$0xff] }
 0x3e6   : >>> { %2536 = vmatprep.subr.mxu0 %v6019_v56  ;;  %2680 = vmatprep.subr.mxu1 %v6008_v43  ;;  %v7649_v56 = vld [vmem:[#allocation161_spill] sm:$0xff] }
 0x3e7   : >>> { %2539 = vmatpush1.msra.mxu0 %v7640_v17  ;;  %2682 = vmatpush1.msra.mxu1 %v7641_v14  ;;  %v7650_v17 = vld [vmem:[#allocation163_spill] sm:$0xff] }
 0x3e8   : >>> { %2542 = vmatprep.subr.mxu0 %v7642_v9  ;;  %2684 = vmatprep.subr.mxu1 %v7643_v57  ;;  %v7651_v9 = vld [vmem:[#allocation168_spill] sm:$0xff] }
 0x3e9   : >>> { %2545 = vmatpush1.msra.mxu0 %v7644_v51  ;;  %2686 = vmatpush1.msra.mxu1 %v7645_v13  ;;  %v7652_v51 = vld [vmem:[#allocation170_spill] sm:$0xff] }
 0x3ea   : >>> { %2548 = vmatprep.subr.mxu0 %v7646_v29  ;;  %2688 = vmatprep.subr.mxu1 %v7647_v16  ;;  %v7653_v29 = vld [vmem:[#allocation172_spill] sm:$0xff] }
 0x3eb   : >>> { %2551 = vmatpush1.msra.mxu0 %v7648_v23  ;;  %2690 = vmatpush1.msra.mxu1 %v6084_v46  ;;  %v7654_v23 = vld [vmem:[#allocation175_spill] sm:$0xff] }
 0x3ec   : >>> { %2554 = vmatprep.subr.mxu0 %v7649_v56  ;;  %2692 = vmatprep.subr.mxu1 %v6110_v24 }
 0x3ed   : >>> { %2557 = vmatpush1.msra.mxu0 %v7650_v17  ;;  %2638 = vmatprep.mubr.f32.mxu0 %v7639_v35 }
 0x3ee   : >>> { %2560 = vmatprep.subr.mxu0 %v7651_v9  ;;  %2694 = vmatpush1.msra.mxu1 %v6136_v62 }
 0x3ef   : >>> { %2563 = vmatpush1.msra.mxu0 %v7652_v51  ;;  %2696 = vmatprep.subr.mxu1 %v6154_v30 }
 0x3f0   : >>> { %2566 = vmatprep.subr.mxu0 %v7653_v29  ;;  %2698 = vmatpush1.msra.mxu1 %v6170_v37 }
 0x3f1   : >>> { %2569 = vmatpush1.msra.mxu0 %v7654_v23  ;;  %2700 = vmatprep.subr.mxu1 %v6185_v15 }
 0x3f2   : >>> { %2572 = vmatprep.subr.mxu0 %v6229_v25  ;;  %2702 = vmatpush1.msra.mxu1 %v6199_v28 }
 0x3f3   : >>> { %2575 = vmatpush1.msra.mxu0 %v6243_v40  ;;  %2704 = vmatprep.subr.mxu1 %v6215_v0 }
 0x3f4   : >>> { %2578 = vmatprep.subr.mxu0 %v6267_v2  ;;  %2706 = vmatpush1.msra.mxu1 %v6239_v48 }
 0x3f5   : >>> { %2581 = vmatpush1.msra.mxu0 %v6279_v8  ;;  %2708 = vmatprep.subr.mxu1 %v6255_v47 }
 0x3f6   : >>> { %2584 = vmatprep.subr.mxu0 %v6292_v7  ;;  %2710 = vmatpush1.msra.mxu1 %v6275_v33 }
 0x3f7   : >>> { %2587 = vmatpush1.msra.mxu0 %v6318_v4  ;;  %2747 = vmatmul.mubr.f32.vlgmr.msra.gmra.mxu1 %v2269_v60  ;;  %v7655_v60 = vld [vmem:[#allocation122_spill] sm:$0xff] }
 0x3f8   : >>> { %2590 = vmatprep.subr.mxu0 %v6328_v12  ;;  %2922 = vmatprep.subr.mxu1 %v5871_v54 }
 0x3f9   : >>> { %2593 = vmatpush1.msra.mxu0 %v6332_v6  ;;  %2924 = vmatpush1.msra.mxu1 %v5873_v52  ;;  %v7656_v6 = vld [vmem:[#allocation124_spill] sm:$0xff] }
 0x3fa   : >>> { %2596 = vmatprep.subr.mxu0 %v6341_v11  ;;  %2926 = vmatprep.subr.mxu1 %v5875_v5  ;;  %v7657_v11 = vld [vmem:[#allocation125_spill] sm:$0xff] }
 0x3fb   : >>> { %2599 = vmatpush1.msra.mxu0 %v6345_v32  ;;  %2928 = vmatpush1.msra.mxu1 %v5879_v55  ;;  %v7658_v32 = vld [vmem:[#allocation127_spill] sm:$0xff] }
 0x3fc   : >>> { %2602 = vmatprep.subr.mxu0 %v6358_v20  ;;  %2930 = vmatprep.subr.mxu1 %v5881_v1  ;;  %v7659_v20 = vld [vmem:[#allocation129_spill] sm:$0xff] }
 0x3fd   : >>> { %2605 = vmatpush1.msra.mxu0 %v6370_v22  ;;  %2932 = vmatpush1.msra.mxu1 %v5883_v3  ;;  %v7660_v22 = vld [vmem:[#allocation132_spill] sm:$0xff] }
 0x3fe   : >>> { %2641 = vmatmul.mubr.f32.vlgmr.msra.gmra.mxu0 %v6424_v21  ;;  %2756 = vmatprep.subr.mxu0 %v7655_v60  ;;  %v7661_v21 = vld [vmem:[#allocation135_spill] sm:$0xff] }
 0x3ff   : >>> { %2760 = vmatpush1.msra.mxu0 %v7656_v6  ;;  %2934 = vmatprep.subr.mxu1 %v5886_v10  ;;  %v7662_v6 = vld [vmem:[#allocation142_spill] sm:$0xff] }
 0x400   : >>> { %2764 = vmatprep.subr.mxu0 %v7657_v11  ;;  %2936 = vmatpush1.msra.mxu1 %v5888_v18  ;;  %v7663_v11 = vld [vmem:[#allocation146_spill] sm:$0xff] }
 0x401   : >>> { %2768 = vmatpush1.msra.mxu0 %v7658_v32  ;;  %2938 = vmatprep.subr.mxu1 %v5890_v38  ;;  %v7664_v32 = vld [vmem:[#allocation149_spill] sm:$0xff] }
 0x402   : >>> { %2772 = vmatprep.subr.mxu0 %v7659_v20  ;;  %2940 = vmatpush1.msra.mxu1 %v5903_v34  ;;  %v7665_v20 = vld [vmem:[#allocation152_spill] sm:$0xff] }
 0x403   : >>> { %2776 = vmatpush1.msra.mxu0 %v7660_v22  ;;  %2942 = vmatprep.subr.mxu1 %v5909_v27  ;;  %v7666_v22 = vld [vmem:[#allocation155_spill] sm:$0xff] }
 0x404   : >>> { %2780 = vmatprep.subr.mxu0 %v7661_v21  ;;  %2944 = vmatpush1.msra.mxu1 %v5925_v49  ;;  %v7667_v21 = vld [vmem:[#allocation158_spill] sm:$0xff] }
 0x405   : >>> { %2784 = vmatpush1.msra.mxu0 %v7662_v6  ;;  %2946 = vmatprep.subr.mxu1 %v5931_v61  ;;  %v7668_v6 = vld [vmem:[#allocation160_spill] sm:$0xff] }
 0x406   : >>> { %2788 = vmatprep.subr.mxu0 %v7663_v11  ;;  %2948 = vmatpush1.msra.mxu1 %v5944_v42  ;;  %v7669_v11 = vld [vmem:[#allocation165_spill] sm:$0xff] }
 0x407   : >>> { %2792 = vmatpush1.msra.mxu0 %v7664_v32  ;;  %2950 = vmatprep.subr.mxu1 %v5958_v53  ;;  %v7670_v32 = vld [vmem:[#allocation167_spill] sm:$0xff] }
 0x408   : >>> { %2796 = vmatprep.subr.mxu0 %v7665_v20  ;;  %2952 = vmatpush1.msra.mxu1 %v5982_v26  ;;  %v7671_v20 = vld [vmem:[#allocation171_spill] sm:$0xff] }
 0x409   : >>> { %2800 = vmatpush1.msra.mxu0 %v7666_v22  ;;  %2954 = vmatprep.subr.mxu1 %v6008_v43  ;;  %v7672_v22 = vld [vmem:[#allocation174_spill] sm:$0xff] }
 0x40a   : >>> { %2804 = vmatprep.subr.mxu0 %v7667_v21  ;;  %2956 = vmatpush1.msra.mxu1 %v7641_v14  ;;  %v7673_v21 = vld [vmem:[#allocation177_spill] sm:$0xff] }
 0x40b   : >>> { %2808 = vmatpush1.msra.mxu0 %v7668_v6  ;;  %2958 = vmatprep.subr.mxu1 %v7643_v57  ;;  %v7674_v6 = vld [vmem:[#allocation178_spill] sm:$0xff] }
 0x40c   : >>> { %2812 = vmatprep.subr.mxu0 %v7669_v11  ;;  %2960 = vmatpush1.msra.mxu1 %v7645_v13  ;;  %v7675_v11 = vld [vmem:[#allocation181_spill] sm:$0xff] }
 0x40d   : >>> { %2816 = vmatpush1.msra.mxu0 %v7670_v32  ;;  %2962 = vmatprep.subr.mxu1 %v7647_v16  ;;  %v7676_v32 = vld [vmem:[#allocation184_spill] sm:$0xff] }
 0x40e   : >>> { %2820 = vmatprep.subr.mxu0 %v7671_v20  ;;  %2964 = vmatpush1.msra.mxu1 %v6084_v46  ;;  %v7677_v20 = vld [vmem:[#allocation190_spill] sm:$0xff] }
 0x40f   : >>> { %2824 = vmatpush1.msra.mxu0 %v7672_v22  ;;  %2966 = vmatprep.subr.mxu1 %v6110_v24  ;;  %v7678_v22 = vld [vmem:[#allocation193_spill] sm:$0xff] }
 0x410   : >>> { %2828 = vmatprep.subr.mxu0 %v7673_v21  ;;  %2913 = vmatprep.mubr.f32.mxu0 %v7639_v35  ;;  %v7679_v21 = vld [vmem:[#allocation195_spill] sm:$0xff] }
 0x411   : >>> { %2832 = vmatpush1.msra.mxu0 %v7674_v6  ;;  %2968 = vmatpush1.msra.mxu1 %v6136_v62  ;;  %v7680_v6 = vld [vmem:[#allocation201_spill] sm:$0xff] }
 0x412   : >>> { %2836 = vmatprep.subr.mxu0 %v7675_v11  ;;  %2970 = vmatprep.subr.mxu1 %v6154_v30  ;;  %v7681_v11 = vld [vmem:[#allocation205_spill] sm:$0xff] }
 0x413   : >>> { %2840 = vmatpush1.msra.mxu0 %v7676_v32  ;;  %2972 = vmatpush1.msra.mxu1 %v6170_v37  ;;  %v7682_v32 = vld [vmem:[#allocation206_spill] sm:$0xff] }
 0x414   : >>> { %2844 = vmatprep.subr.mxu0 %v7677_v20  ;;  %2974 = vmatprep.subr.mxu1 %v6185_v15  ;;  %v7683_v20 = vld [vmem:[#allocation208_spill] sm:$0xff] }
 0x415   : >>> { %2848 = vmatpush1.msra.mxu0 %v7678_v22  ;;  %2976 = vmatpush1.msra.mxu1 %v6199_v28  ;;  %v7684_v22 = vld [vmem:[#allocation209_spill] sm:$0xff] }
 0x416   : >>> { %2852 = vmatprep.subr.mxu0 %v7679_v21  ;;  %2978 = vmatprep.subr.mxu1 %v6215_v0  ;;  %v7688_v21 = vld [vmem:[#allocation136_spill] sm:$0xff] }
 0x417   : >>> { %2856 = vmatpush1.msra.mxu0 %v7680_v6  ;;  %2980 = vmatpush1.msra.mxu1 %v6239_v48  ;;  %v7685_v6 = vld [vmem:[#allocation131_spill] sm:$0xff] }
 0x418   : >>> { %2860 = vmatprep.subr.mxu0 %v7681_v11  ;;  %2982 = vmatprep.subr.mxu1 %v6255_v47  ;;  %v7686_v11 = vld [vmem:[#allocation133_spill] sm:$0xff] }
 0x419   : >>> { %2864 = vmatpush1.msra.mxu0 %v7682_v32  ;;  %2984 = vmatpush1.msra.mxu1 %v6275_v33  ;;  %v7687_v32 = vld [vmem:[#allocation134_spill] sm:$0xff] }
 0x41a   : >>> { %2868 = vmatprep.subr.mxu0 %v7683_v20  ;;  %3017 = vmatprep.mubr.f32.mxu1 %v7639_v35  ;;  %v7689_v20 = vld [vmem:[#allocation138_spill] sm:$0xff] }
 0x41b   : >>> { %2872 = vmatpush1.msra.mxu0 %v7684_v22  ;;  %3019 = vmatmul.mubr.f32.vlgmr.msra.gmra.mxu1 %v6419_v31  ;;  %v7690_v22 = vld [vmem:[#allocation141_spill] sm:$0xff] }
 0x41c   : >>> { %2876 = vmatprep.subr.mxu0 %v6378_v59  ;;  %3169 = vmatprep.subr.mxu1 %v7685_v6  ;;  %v7691_v6 = vld [vmem:[#allocation145_spill] sm:$0xff] }
 0x41d   : >>> { %2880 = vmatpush1.msra.mxu0 %v6387_v58  ;;  %3175 = vmatpush1.msra.mxu1 %v7686_v11  ;;  %v7692_v11 = vld [vmem:[#allocation154_spill] sm:$0xff] }
 0x41e   : >>> { %2915 = vmatmul.mubr.f32.vlgmr.msra.gmra.mxu0 %v6419_v31  ;;  %3181 = vmatprep.subr.mxu1 %v7687_v32  ;;  %v7693_v32 = vld [vmem:[#allocation157_spill] sm:$0xff]  ;;  %v7694_v31 = vld [vmem:[#allocation159_spill] sm:$0xff] }
 0x41f   : >>> { %3187 = vmatpush1.msra.mxu1 %v7688_v21  ;;  %3057 = vmatprep.subr.mxu0 %v5871_v54  ;;  %v7697_v21 = vld [vmem:[#allocation166_spill] sm:$0xff] }
 0x420   : >>> { %3193 = vmatprep.subr.mxu1 %v7689_v20  ;;  %3059 = vmatpush1.msra.mxu0 %v5873_v52  ;;  %v7695_v20 = vld [vmem:[#allocation162_spill] sm:$0xff] }
 0x421   : >>> { %3199 = vmatpush1.msra.mxu1 %v7690_v22  ;;  %3061 = vmatprep.subr.mxu0 %v5875_v5  ;;  %v7696_v22 = vld [vmem:[#allocation164_spill] sm:$0xff] }
 0x422   : >>> { %3205 = vmatprep.subr.mxu1 %v7691_v6  ;;  %3063 = vmatpush1.msra.mxu0 %v5879_v55  ;;  %v7698_v6 = vld [vmem:[#allocation169_spill] sm:$0xff] }
 0x423   : >>> { %3211 = vmatpush1.msra.mxu1 %v7692_v11  ;;  %3065 = vmatprep.subr.mxu0 %v5881_v1  ;;  %v7699_v11 = vld [vmem:[#allocation173_spill] sm:$0xff] }
 0x424   : >>> { %3217 = vmatprep.subr.mxu1 %v7693_v32  ;;  %3067 = vmatpush1.msra.mxu0 %v5883_v3  ;;  %v7700_v32 = vld [vmem:[#allocation176_spill] sm:$0xff] }
 0x425   : >>> { %3223 = vmatpush1.msra.mxu1 %v7694_v31  ;;  %3069 = vmatprep.subr.mxu0 %v5886_v10  ;;  %v7701_v31 = vld [vmem:[#allocation180_spill] sm:$0xff] }
 0x426   : >>> { %3229 = vmatprep.subr.mxu1 %v7695_v20  ;;  %3071 = vmatpush1.msra.mxu0 %v5888_v18  ;;  %v7702_v20 = vld [vmem:[#allocation183_spill] sm:$0xff] }
 0x427   : >>> { %3235 = vmatpush1.msra.mxu1 %v7696_v22  ;;  %3073 = vmatprep.subr.mxu0 %v5890_v38  ;;  %v7703_v22 = vld [vmem:[#allocation186_spill] sm:$0xff] }
 0x428   : >>> { %3241 = vmatprep.subr.mxu1 %v7697_v21  ;;  %3075 = vmatpush1.msra.mxu0 %v5903_v34  ;;  %v7704_v21 = vld [vmem:[#allocation189_spill] sm:$0xff] }
 0x429   : >>> { %3247 = vmatpush1.msra.mxu1 %v7698_v6  ;;  %3077 = vmatprep.subr.mxu0 %v5909_v27  ;;  %v7705_v6 = vld [vmem:[#allocation192_spill] sm:$0xff] }
 0x42a   : >>> { %3253 = vmatprep.subr.mxu1 %v7699_v11  ;;  %3079 = vmatpush1.msra.mxu0 %v5925_v49  ;;  %v7706_v11 = vld [vmem:[#allocation194_spill] sm:$0xff] }
 0x42b   : >>> { %3259 = vmatpush1.msra.mxu1 %v7700_v32  ;;  %3081 = vmatprep.subr.mxu0 %v5931_v61  ;;  %v7707_v32 = vld [vmem:[#allocation197_spill] sm:$0xff] }
 0x42c   : >>> { %3265 = vmatprep.subr.mxu1 %v7701_v31  ;;  %3083 = vmatpush1.msra.mxu0 %v5944_v42  ;;  %v7708_v31 = vld [vmem:[#allocation200_spill] sm:$0xff] }
 0x42d   : >>> { %3271 = vmatpush1.msra.mxu1 %v7702_v20  ;;  %3085 = vmatprep.subr.mxu0 %v5958_v53  ;;  %v7709_v20 = vld [vmem:[#allocation204_spill] sm:$0xff] }
 0x42e   : >>> { %3277 = vmatprep.subr.mxu1 %v7703_v22  ;;  %3087 = vmatpush1.msra.mxu0 %v5982_v26 }
 0x42f   : >>> { %3283 = vmatpush1.msra.mxu1 %v7704_v21  ;;  %3089 = vmatprep.subr.mxu0 %v6008_v43 }
 0x430   : >>> { %3289 = vmatprep.subr.mxu1 %v7705_v6  ;;  %3091 = vmatpush1.msra.mxu0 %v7641_v14 }
 0x431   : >>> { %3295 = vmatpush1.msra.mxu1 %v7706_v11  ;;  %3093 = vmatprep.subr.mxu0 %v7643_v57 }
 0x432   : >>> { %3301 = vmatprep.subr.mxu1 %v7707_v32  ;;  %3095 = vmatpush1.msra.mxu0 %v7645_v13 }
 0x433   : >>> { %3307 = vmatpush1.msra.mxu1 %v7708_v31  ;;  %3097 = vmatprep.subr.mxu0 %v7647_v16 }
 0x434   : >>> { %3313 = vmatprep.subr.mxu1 %v7709_v20  ;;  %3099 = vmatpush1.msra.mxu0 %v6084_v46 }
 0x435   : >>> { %3319 = vmatpush1.msra.mxu1 %v6380_v63  ;;  %3101 = vmatprep.subr.mxu0 %v6110_v24 }
 0x436   : >>> { %3325 = vmatprep.subr.mxu1 %v6389_v39  ;;  %3103 = vmatpush1.msra.mxu0 %v6136_v62 }
 0x437   : >>> { %3331 = vmatpush1.msra.mxu1 %v6391_v45  ;;  %3105 = vmatprep.subr.mxu0 %v6154_v30 }
 0x438   : >>> { %3337 = vmatprep.subr.mxu1 %v6396_v19  ;;  %3388 = vmatprep.mubr.f32.mxu1 %v7639_v35 }
 0x439   : >>> { %3343 = vmatpush1.msra.mxu1 %v6398_v50  ;;  %3107 = vmatpush1.msra.mxu0 %v6170_v37  ;;  %v7710_v50 = vld [vmem:[#allocation119_spill] sm:$0xff] }
 0x43a   : >>> { %3349 = vmatprep.subr.mxu1 %v6403_v36  ;;  %3109 = vmatprep.subr.mxu0 %v6185_v15 }
 0x43b   : >>> { %3355 = vmatpush1.msra.mxu1 %v6406_v44  ;;  %3111 = vmatpush1.msra.mxu0 %v6199_v28 }
 0x43c   : >>> { %3534 = vmatprep.subr.mxu1 %v5871_v54  ;;  %3113 = vmatprep.subr.mxu0 %v6215_v0 }
 0x43d   : >>> { %3115 = vmatpush1.msra.mxu0 %v6239_v48  ;;  %3152 = vmatprep.mubr.f32.mxu0 %v7639_v35 }
 0x43e   : >>> { %3117 = vmatprep.subr.mxu0 %v6255_v47 }
 0x43f   : >>> { %3119 = vmatpush1.msra.mxu0 %v6275_v33 }
 0x440   : >>> { %3398 = vmatprep.subr.mxu0 %v7710_v50  ;;  %v7711_v50 = vld [vmem:[#allocation20_spill] sm:$0xff] }
 0x496   : >>> { %v2505_v39 = vpop.f32.mrf.mxu1 }
 0x498   : >>> { %v2507_v36 = vpop.f32.mrf.mxu1 }
 0x49e   : >>> { %v2273_v63 = vpop.f32.mrf.mxu0 }
 0x49f   : >>> { %v2506_v7 = vadd.f32 %v2505_v39, %v2273_v63 }
 0x4a0   : >>> { %v2275_v45 = vpop.f32.mrf.mxu0 }
 0x4a1   : >>> { %v2508_v6 = vadd.f32 %v2507_v36, %v2275_v45  ;;  %v7712_v36 = vld [vmem:[#allocation24_spill] sm:$0xff] }
 0x4b7   : >>> { %v2748_v44 = vpop.f32.mrf.mxu1 }
 0x4b9   : >>> { %v2750_v21 = vpop.f32.mrf.mxu1 }
 0x4be   : >>> { %v2642_v19 = vpop.f32.mrf.mxu0 }
 0x4bf   : >>> { %v2643_v33 = vadd.f32 %v2642_v19, %v2506_v7 }
 0x4c0   : >>> { %v2644_v22 = vpop.f32.mrf.mxu0 }
 0x4c1   : >>> { %v2645_v32 = vadd.f32 %v2644_v22, %v2508_v6  ;;  %v2749_v8 = vadd.f32 %v2748_v44, %v2643_v33  ;;  %v3046_v33 = vstv %s3045_s6  ;;  %v7718_v6 = vld [vmem:[#allocation213_spill] sm:$0xff] }
 0x4c2   : >>> { %vm3047_vm1 = vcmp.eq.s32.totalorder %v3046_v33, 1 }
 0x4c3   : >>> { %v2751_v20 = vadd.f32 %v2750_v21, %v2645_v32  ;;  %v7713_v21 = vld [vmem:[#allocation116_spill] sm:$0xff] }
 0x4db   : >>> { %v3020_v11 = vpop.f32.mrf.mxu1 }
 0x4dd   : >>> { %v3022_v59 = vpop.f32.mrf.mxu1 }
 0x4de   : >>> { %v2916_v31 = vpop.f32.mrf.mxu0 }
 0x4df   : >>> { %v2917_v47 = vadd.f32 %v2916_v31, %v2749_v8 }
 0x4e0   : >>> { %v2918_v58 = vpop.f32.mrf.mxu0 }
 0x4e1   : >>> { %v2919_v60 = vadd.f32 %v2918_v58, %v2751_v20  ;;  %v3021_v48 = vadd.f32 %v3020_v11, %v2917_v47  ;;  %v3040_v58 = vadd.f32 1.0, %v7713_v21 }
 0x4e3   : >>> { %v3023_v12 = vadd.f32 %v3022_v59, %v2919_v60  ;;  %v3051_v22 = vadd.f32 %v3021_v48, %v7712_v36  ;;  %v7714_v59 = vld [vmem:[#allocation115_spill] sm:$0xff] }
 0x4e5   : >>> { %v3025_v4 = vadd.f32 %v7711_v50, %v3023_v12  ;;  %v2131_v12 = vsub.f32 0.0, %v4689_v41 }
 0x4e7   : >>> { %v4214_v54 = vmul.f32 -1.442695, %v3025_v4  ;;  %v2132_v4 = vsel %vm2130_vm0, %v2131_v12, %v7714_v59  ;;  %v7722_v12 = vld [vmem:[#allocation123_spill] sm:$0xff] }
 0x4e8   : >>> { %v7729_v59 = vld [vmem:[#allocation147_spill] sm:$0xff] }
 0x4e9   : >>> { %4419 = vpow2.f32 %v4214_v54  ;;  %v3041_v54 = vsel %vm2130_vm0, %v3040_v58, %v7713_v21  ;;  %v7720_v21 = vld [vmem:[#allocation120_spill] sm:$0xff]  ;;  %v7721_v58 = vld [vmem:[#allocation121_spill] sm:$0xff] }
 0x4f6   : >>> { %v4420_v2 = vpop.eup %4419 }
 0x4f7   : >>> { %v3029_v45 = vadd.f32 1.0, %v4420_v2  ;;  %v3926_v2 = vadd.f32 1.0, %v3041_v54 }
 0x4f9   : >>> { %4421 = vrcp.f32 %v3029_v45 }
 0x4fa   : >>> { %4423 = vtanh.f32 %v3051_v22 }
 0x506   : >>> { %v4422_v8 = vpop.eup %4421 }
 0x507   : >>> { %v3032_v47 = vadd.f32 %v4689_v41, %v4422_v8  ;;  %v4424_v63 = vpop.eup %4423 }
 0x509   : >>> { %v4215_v7 = vadd.f32 -1.0, %v3032_v47  ;;  %v6643_v48 = vsel %vm2130_vm0, %v3032_v47, %v4689_v41 }
 0x50a   : >>> { %v3049_v60 = vsub.f32 0.0, %v6643_v48  ;;  %vm3044_vm2 = vcmp.lt.f32.partialorder %v6643_v48, 0.99 }
 0x50b   : >>> { %v3034_v39 = vmax.f32 %v4215_v7, 0.0  ;;  %vm6650_vm3 = vmand %vm3044_vm2, %vm3047_vm1  ;;  %v7728_v7 = vld [vmem:[#allocation143_spill] sm:$0xff] }
 0x50c   : >>> { %v6656_v33 = vsel %vm6650_vm3, %v3049_v60, %v2132_v4   ;;  %v6661_v60 = vsel %vm6650_vm3, %v4424_v63, %v7718_v6   ;;  %v6665_v47 = vsel %vm6650_vm3, %v3926_v2, %v3041_v54   ;;  %v7723_v54 = vld [vmem:[#allocation126_spill] sm:$0xff]  ;;  %v7727_v2 = vld [vmem:[#allocation139_spill] sm:$0xff]  ;;  %v7731_v63 = vld [vmem:[#allocation153_spill] sm:$0xff] }
 0x50d   : >>> { %v7717_v44 = vmov %v6656_v33  ;;  %v7719_v11 = vmov %v6665_v47  ;;  %v6667_v32 = vsub.f32 %v4422_v8, %v3034_v39  ;;  %v6670_v31 = vand.u32 4294901760, %v6661_v60  ;;  %v7724_v33 = vld [vmem:[#allocation128_spill] sm:$0xff]  ;;  %v7725_v8 = vld [vmem:[#allocation130_spill] sm:$0xff]  ;;  %v7726_v47 = vld [vmem:[#allocation137_spill] sm:$0xff] }
 0x50e   : >>> { %v7730_v4 = vld [vmem:[#allocation150_spill] sm:$0xff]  ;;  %v7732_v39 = vld [vmem:[#allocation156_spill] sm:$0xff] }
 0x50f   : >>> { %3390 = vmatmul.mubr.f32.vlgmr.msra.gmra.mxu1 %v6670_v31  ;;  %v6675_v20 = vsub.f32 %v6661_v60, %v6670_v31 }
 0x510   : >>> { %3536 = vmatpush1.msra.mxu1 %v5873_v52  ;;  %3629 = vmatprep.mubr.f32.mxu1 %v7639_v35 }
 0x511   : >>> { %3538 = vmatprep.subr.mxu1 %v5875_v5  ;;  %v3155_v45 = vand.u32 4294901760, %v6675_v20 }
 0x512   : >>> { %3540 = vmatpush1.msra.mxu1 %v5879_v55 }
 0x513   : >>> { %3542 = vmatprep.subr.mxu1 %v5881_v1  ;;  %v3156_v36 = vsub.f32 %v6675_v20, %v3155_v45 }
 0x514   : >>> { %3544 = vmatpush1.msra.mxu1 %v5883_v3 }
 0x515   : >>> { %3546 = vmatprep.subr.mxu1 %v5886_v10  ;;  %v3157_v22 = vand.u32 4294901760, %v3156_v36  ;;  %v7738_v36 = vld [vmem:[#allocation191_spill] sm:$0xff] }
 0x516   : >>> { %3548 = vmatpush1.msra.mxu1 %v5888_v18 }
 0x517   : >>> { %3550 = vmatprep.subr.mxu1 %v5890_v38  ;;  %3158 = vmatmul.mubr.f32.vlgmr.msra.gmra.mxu0 %v3157_v22  ;;  %v7742_v22 = vld [vmem:[#allocation199_spill] sm:$0xff] }
 0x518   : >>> { %3401 = vmatpush1.msra.mxu0 %v7720_v21  ;;  %3552 = vmatpush1.msra.mxu1 %v5903_v34  ;;  %v7743_v21 = vld [vmem:[#allocation202_spill] sm:$0xff] }
 0x519   : >>> { %3404 = vmatprep.subr.mxu0 %v7721_v58  ;;  %3554 = vmatprep.subr.mxu1 %v5909_v27  ;;  %v7744_v58 = vld [vmem:[#allocation203_spill] sm:$0xff] }
 0x51a   : >>> { %3407 = vmatpush1.msra.mxu0 %v7722_v12  ;;  %3556 = vmatpush1.msra.mxu1 %v5925_v49  ;;  %v7775_v12 = vld [vmem:[#allocation208_spill] sm:$0xff] }
 0x51b   : >>> { %3410 = vmatprep.subr.mxu0 %v7723_v54  ;;  %3558 = vmatprep.subr.mxu1 %v5931_v61  ;;  %v7776_v54 = vld [vmem:[#allocation209_spill] sm:$0xff] }
 0x51c   : >>> { %3413 = vmatpush1.msra.mxu0 %v7724_v33  ;;  %3560 = vmatpush1.msra.mxu1 %v5944_v42  ;;  %v7777_v33 = vld [vmem:[#allocation211_spill] sm:$0xff] }
 0x51d   : >>> { %3416 = vmatprep.subr.mxu0 %v7725_v8  ;;  %3562 = vmatprep.subr.mxu1 %v5958_v53  ;;  %v7778_v8 = vld [vmem:[#allocation212_spill] sm:$0xff] }
 0x51e   : >>> { %3419 = vmatpush1.msra.mxu0 %v7726_v47  ;;  %3564 = vmatpush1.msra.mxu1 %v5982_v26 }
 0x51f   : >>> { %3422 = vmatprep.subr.mxu0 %v7727_v2  ;;  %3566 = vmatprep.subr.mxu1 %v6008_v43 }
 0x520   : >>> { %3425 = vmatpush1.msra.mxu0 %v7728_v7  ;;  %3568 = vmatpush1.msra.mxu1 %v7641_v14 }
 0x521   : >>> { %3428 = vmatprep.subr.mxu0 %v7729_v59  ;;  %3570 = vmatprep.subr.mxu1 %v7643_v57 }
 0x522   : >>> { %3431 = vmatpush1.msra.mxu0 %v7730_v4  ;;  %3572 = vmatpush1.msra.mxu1 %v7645_v13 }
 0x523   : >>> { %3434 = vmatprep.subr.mxu0 %v7731_v63  ;;  %3574 = vmatprep.subr.mxu1 %v7647_v16 }
 0x524   : >>> { %3437 = vmatpush1.msra.mxu0 %v7732_v39  ;;  %3576 = vmatpush1.msra.mxu1 %v6084_v46 }
 0x525   : >>> { %3440 = vmatprep.subr.mxu0 %v7649_v56  ;;  %3578 = vmatprep.subr.mxu1 %v6110_v24  ;;  %v7734_v56 = vld [vmem:[#allocation185_spill] sm:$0xff] }
 0x526   : >>> { %3443 = vmatpush1.msra.mxu0 %v7650_v17  ;;  %3580 = vmatpush1.msra.mxu1 %v6136_v62  ;;  %v7736_v17 = vld [vmem:[#allocation188_spill] sm:$0xff] }
 0x527   : >>> { %3446 = vmatprep.subr.mxu0 %v7651_v9  ;;  %3582 = vmatprep.subr.mxu1 %v6154_v30  ;;  %v7733_v9 = vld [vmem:[#allocation179_spill] sm:$0xff] }
 0x528   : >>> { %3449 = vmatpush1.msra.mxu0 %v7652_v51  ;;  %3584 = vmatpush1.msra.mxu1 %v6170_v37  ;;  %v7735_v51 = vld [vmem:[#allocation182_spill] sm:$0xff] }
 0x529   : >>> { %3452 = vmatprep.subr.mxu0 %v7653_v29  ;;  %3586 = vmatprep.subr.mxu1 %v6185_v15  ;;  %v7737_v29 = vld [vmem:[#allocation187_spill] sm:$0xff] }
 0x52a   : >>> { %3455 = vmatpush1.msra.mxu0 %v7654_v23  ;;  %3588 = vmatpush1.msra.mxu1 %v6199_v28  ;;  %v7739_v23 = vld [vmem:[#allocation118_spill] sm:$0xff] }
 0x52b   : >>> { %3458 = vmatprep.subr.mxu0 %v6229_v25  ;;  %3590 = vmatprep.subr.mxu1 %v6215_v0  ;;  %v7740_v25 = vld [vmem:[#allocation196_spill] sm:$0xff] }
 0x52c   : >>> { %3461 = vmatpush1.msra.mxu0 %v6243_v40  ;;  %3592 = vmatpush1.msra.mxu1 %v7733_v9  ;;  %v7741_v40 = vld [vmem:[#allocation198_spill] sm:$0xff] }
 0x52d   : >>> { %3464 = vmatprep.subr.mxu0 %v7734_v56  ;;  %3594 = vmatprep.subr.mxu1 %v7735_v51 }
 0x52e   : >>> { %3467 = vmatpush1.msra.mxu0 %v7736_v17  ;;  %3596 = vmatpush1.msra.mxu1 %v7737_v29 }
 0x52f   : >>> { %3470 = vmatprep.subr.mxu0 %v7738_v36  ;;  %3633 = vmatmul.mubr.f32.vlgmr.msra.gmra.mxu1 %v3155_v45  ;;  %v7745_v45 = vld [vmem:[#allocation207_spill] sm:$0xff] }
 0x530   : >>> { %3808 = vmatprep.subr.mxu1 %v7739_v23  ;;  %3473 = vmatpush1.msra.mxu0 %v7740_v25 }
 0x531   : >>> { %3810 = vmatpush1.msra.mxu1 %v5873_v52  ;;  %3476 = vmatprep.subr.mxu0 %v7741_v40  ;;  %v7746_v52 = vld [vmem:[#allocation210_spill] sm:$0xff] }
 0x532   : >>> { %3812 = vmatprep.subr.mxu1 %v5875_v5  ;;  %3479 = vmatpush1.msra.mxu0 %v7742_v22  ;;  %v7747_v5 = vld [vmem:[#allocation122_spill] sm:$0xff] }
 0x533   : >>> { %3814 = vmatpush1.msra.mxu1 %v5879_v55  ;;  %3482 = vmatprep.subr.mxu0 %v7743_v21  ;;  %v7748_v55 = vld [vmem:[#allocation124_spill] sm:$0xff] }
 0x534   : >>> { %3816 = vmatprep.subr.mxu1 %v5881_v1  ;;  %3485 = vmatpush1.msra.mxu0 %v7744_v58  ;;  %v7749_v1 = vld [vmem:[#allocation125_spill] sm:$0xff] }
 0x535   : >>> { %3818 = vmatpush1.msra.mxu1 %v5883_v3  ;;  %3488 = vmatprep.subr.mxu0 %v7745_v45  ;;  %v7750_v3 = vld [vmem:[#allocation127_spill] sm:$0xff] }
 0x536   : >>> { %3820 = vmatprep.subr.mxu1 %v5886_v10  ;;  %3491 = vmatpush1.msra.mxu0 %v7746_v52  ;;  %v7751_v10 = vld [vmem:[#allocation129_spill] sm:$0xff] }
 0x537   : >>> { %3524 = vmatprep.mubr.f32.mxu0 %v7639_v35  ;;  %3822 = vmatpush1.msra.mxu1 %v5888_v18  ;;  %v7752_v18 = vld [vmem:[#allocation132_spill] sm:$0xff] }
 0x538   : >>> { %3527 = vmatmul.mubr.f32.vlgmr.msra.gmra.mxu0 %v6675_v20  ;;  %3642 = vmatprep.subr.mxu0 %v7747_v5  ;;  %v7774_v20 = vld [vmem:[#allocation206_spill] sm:$0xff] }
 0x539   : >>> { %3824 = vmatprep.subr.mxu1 %v5890_v38  ;;  %3646 = vmatpush1.msra.mxu0 %v7748_v55  ;;  %v7753_v38 = vld [vmem:[#allocation135_spill] sm:$0xff] }
 0x53a   : >>> { %3826 = vmatpush1.msra.mxu1 %v5903_v34  ;;  %3650 = vmatprep.subr.mxu0 %v7749_v1  ;;  %v7754_v34 = vld [vmem:[#allocation142_spill] sm:$0xff]  ;;  %v7779_v1 = vld [vmem:[#allocation117_spill] sm:$0xff] }
 0x53b   : >>> { %3828 = vmatprep.subr.mxu1 %v5909_v27  ;;  %3654 = vmatpush1.msra.mxu0 %v7750_v3  ;;  %v7755_v27 = vld [vmem:[#allocation146_spill] sm:$0xff]  ;;  %v2136_v3 = vadd.f32 %v7779_v1, %v7718_v6 }
 0x53c   : >>> { %3830 = vmatpush1.msra.mxu1 %v5925_v49  ;;  %3658 = vmatprep.subr.mxu0 %v7751_v10  ;;  %v7756_v49 = vld [vmem:[#allocation149_spill] sm:$0xff]  ;;  %v3036_v10 = vmul.f32 %v6667_v32, %v7718_v6 }
 0x53d   : >>> { %3832 = vmatprep.subr.mxu1 %v5931_v61  ;;  %3662 = vmatpush1.msra.mxu0 %v7752_v18  ;;  %v7757_v61 = vld [vmem:[#allocation152_spill] sm:$0xff]  ;;  %v2137_v18 = vsel %vm2130_vm0, %v2136_v3, %v7779_v1 }
 0x53e   : >>> { %3834 = vmatpush1.msra.mxu1 %v5944_v42  ;;  %3666 = vmatprep.subr.mxu0 %v7753_v38  ;;  %v7758_v42 = vld [vmem:[#allocation155_spill] sm:$0xff]  ;;  %v3037_v38 = vadd.f32 %v3036_v10, %v2137_v18 }
 0x53f   : >>> { %3836 = vmatprep.subr.mxu1 %v5958_v53  ;;  %3670 = vmatpush1.msra.mxu0 %v7754_v34  ;;  %v7759_v53 = vld [vmem:[#allocation158_spill] sm:$0xff] }
 0x540   : >>> { %3838 = vmatpush1.msra.mxu1 %v5982_v26  ;;  %3674 = vmatprep.subr.mxu0 %v7755_v27  ;;  %v7760_v26 = vld [vmem:[#allocation160_spill] sm:$0xff] }
 0x541   : >>> { %3840 = vmatprep.subr.mxu1 %v6008_v43  ;;  %3678 = vmatpush1.msra.mxu0 %v7756_v49  ;;  %v7761_v43 = vld [vmem:[#allocation165_spill] sm:$0xff] }
 0x542   : >>> { %3842 = vmatpush1.msra.mxu1 %v7641_v14  ;;  %3682 = vmatprep.subr.mxu0 %v7757_v61  ;;  %v7762_v14 = vld [vmem:[#allocation167_spill] sm:$0xff] }
 0x543   : >>> { %3844 = vmatprep.subr.mxu1 %v7643_v57  ;;  %3686 = vmatpush1.msra.mxu0 %v7758_v42  ;;  %v7763_v57 = vld [vmem:[#allocation171_spill] sm:$0xff] }
 0x544   : >>> { %3846 = vmatpush1.msra.mxu1 %v7645_v13  ;;  %3690 = vmatprep.subr.mxu0 %v7759_v53  ;;  %v7764_v13 = vld [vmem:[#allocation174_spill] sm:$0xff] }
 0x545   : >>> { %3848 = vmatprep.subr.mxu1 %v7647_v16  ;;  %3694 = vmatpush1.msra.mxu0 %v7760_v26  ;;  %v7765_v16 = vld [vmem:[#allocation177_spill] sm:$0xff] }
 0x546   : >>> { %3850 = vmatpush1.msra.mxu1 %v6084_v46  ;;  %3698 = vmatprep.subr.mxu0 %v7761_v43  ;;  %v7766_v46 = vld [vmem:[#allocation178_spill] sm:$0xff] }
 0x547   : >>> { %3852 = vmatprep.subr.mxu1 %v6110_v24  ;;  %3702 = vmatpush1.msra.mxu0 %v7762_v14  ;;  %v7767_v24 = vld [vmem:[#allocation181_spill] sm:$0xff] }
 0x548   : >>> { %3854 = vmatpush1.msra.mxu1 %v6136_v62  ;;  %3706 = vmatprep.subr.mxu0 %v7763_v57  ;;  %v7768_v62 = vld [vmem:[#allocation184_spill] sm:$0xff] }
 0x549   : >>> { %3856 = vmatprep.subr.mxu1 %v6154_v30  ;;  %3710 = vmatpush1.msra.mxu0 %v7764_v13  ;;  %v7769_v30 = vld [vmem:[#allocation190_spill] sm:$0xff] }
 0x54a   : >>> { %3858 = vmatpush1.msra.mxu1 %v6170_v37  ;;  %3714 = vmatprep.subr.mxu0 %v7765_v16  ;;  %v7770_v37 = vld [vmem:[#allocation193_spill] sm:$0xff] }
 0x54b   : >>> { %3860 = vmatprep.subr.mxu1 %v6185_v15  ;;  %3718 = vmatpush1.msra.mxu0 %v7766_v46  ;;  %v7771_v15 = vld [vmem:[#allocation195_spill] sm:$0xff] }
 0x54c   : >>> { %3862 = vmatpush1.msra.mxu1 %v6199_v28  ;;  %3722 = vmatprep.subr.mxu0 %v7767_v24  ;;  %v7772_v28 = vld [vmem:[#allocation201_spill] sm:$0xff] }
 0x54d   : >>> { %3864 = vmatprep.subr.mxu1 %v6215_v0  ;;  %3726 = vmatpush1.msra.mxu0 %v7768_v62  ;;  %v7773_v0 = vld [vmem:[#allocation205_spill] sm:$0xff] }
 0x54e   : >>> { %3866 = vmatpush1.msra.mxu1 %v7733_v9  ;;  %3730 = vmatprep.subr.mxu0 %v7769_v30 }
 0x54f   : >>> { %3868 = vmatprep.subr.mxu1 %v7735_v51  ;;  %3734 = vmatpush1.msra.mxu0 %v7770_v37 }
 0x550   : >>> { %3870 = vmatpush1.msra.mxu1 %v7737_v29  ;;  %3903 = vmatprep.mubr.f32.mxu1 %v7639_v35 }
 0x551   : >>> { %3738 = vmatprep.subr.mxu0 %v7771_v15  ;;  %3905 = vmatmul.mubr.f32.vlgmr.msra.gmra.mxu1 %v6670_v31 }
 0x552   : >>> { %3742 = vmatpush1.msra.mxu0 %v7772_v28  ;;  %3799 = vmatprep.mubr.f32.mxu0 %v7639_v35 }
 0x553   : >>> { %3746 = vmatprep.subr.mxu0 %v7773_v0 }
 0x554   : >>> { %3750 = vmatpush1.msra.mxu0 %v7774_v20 }
 0x555   : >>> { %3754 = vmatprep.subr.mxu0 %v7775_v12 }
 0x556   : >>> { %3758 = vmatpush1.msra.mxu0 %v7776_v54 }
 0x557   : >>> { %3762 = vmatprep.subr.mxu0 %v7777_v33  ;;  %v7780_v33 = vmov %v7717_v44 }
 0x558   : >>> { %3766 = vmatpush1.msra.mxu0 %v7778_v8 }
 0x559   : >>> { %3801 = vmatmul.mubr.f32.vlgmr.msra.gmra.mxu0 %v6670_v31 }
 0x5cf   : >>> { %v3391_v2 = vpop.f32.mrf.mxu1 }
 0x5d1   : >>> { %v3393_v4 = vpop.f32.mrf.mxu1 }
 0x5d7   : >>> { %v3159_v47 = vpop.f32.mrf.mxu0 }
 0x5d8   : >>> { %v3392_v35 = vadd.f32 %v3391_v2, %v3159_v47  ;;  %v7781_v47 = vmov %v7719_v11 }
 0x5d9   : >>> { %v3161_v7 = vpop.f32.mrf.mxu0 }
 0x5da   : >>> { %v3394_v9 = vadd.f32 %v3393_v4, %v3161_v7 }
 0x5ef   : >>> { %v3634_v63 = vpop.f32.mrf.mxu1 }
 0x5f1   : >>> { %v3636_v17 = vpop.f32.mrf.mxu1 }
 0x5f8   : >>> { %v3528_v59 = vpop.f32.mrf.mxu0 }
 0x5f9   : >>> { %v3529_v56 = vadd.f32 %v3528_v59, %v3392_v35 }
 0x5fa   : >>> { %v3530_v39 = vpop.f32.mrf.mxu0 }
 0x5fb   : >>> { %v3531_v51 = vadd.f32 %v3530_v39, %v3394_v9  ;;  %v3635_v29 = vadd.f32 %v3634_v63, %v3529_v56 }
 0x5fd   : >>> { %v3637_v40 = vadd.f32 %v3636_v17, %v3531_v51 }
 0x611   : >>> { %v3906_v36 = vpop.f32.mrf.mxu1 }
 0x613   : >>> { %v3908_v21 = vpop.f32.mrf.mxu1 }
 0x619   : >>> { %v3802_v23 = vpop.f32.mrf.mxu0 }
 0x61a   : >>> { %v3803_v25 = vadd.f32 %v3802_v23, %v3635_v29 }
 0x61b   : >>> { %v3804_v22 = vpop.f32.mrf.mxu0 }
 0x61c   : >>> { %v3907_v4 = vadd.f32 %v3906_v36, %v3803_v25   ;;  %v3805_v31 = vadd.f32 %v3804_v22, %v3637_v40 }
 0x61e   : >>> { %v3909_v58 = vadd.f32 %v3908_v21, %v3805_v31 }
 0x620   : >>> { %v3911_v45 = vadd.f32 %v7711_v50, %v3909_v58  ;;  %v3038_v50 = vsel %vm2130_vm0, %v3037_v38, %v7779_v1 }
 0x621   : >>> { %v3054_v6 = vadd.f32 %v6661_v60, %v3038_v50 }
 0x622   : >>> { %v4216_v52 = vmul.f32 -1.442695, %v3911_v45 }
 0x623   : >>> { %v3055_v53 = vsel %vm6650_vm3, %v3054_v6, %v3038_v50 }
 0x624   : >>> { %4425 = vpow2.f32 %v4216_v52 }
 0x631   : >>> { %v4426_v5 = vpop.eup %4425 }
 0x632   : >>> { %v3915_v55 = vadd.f32 1.0, %v4426_v5 }
 0x634   : >>> { %4427 = vrcp.f32 %v3915_v55 }
 0x641   : >>> { %v4428_v34 = vpop.eup %4427 }
 0x642   : >>> { %v3918_v27 = vadd.f32 %v4428_v34, %v6643_v48 }
 0x644   : >>> { %v4217_v49 = vadd.f32 -1.0, %v3918_v27  ;;  %v3925_v41 = vsel %vm6650_vm3, %v3918_v27, %v6643_v48  }
 0x645   : >>> { %2116 = vmin.xlane.f32.xlu0 %v3925_v41 }
 0x646   : >>> { %v3920_v61 = vmax.f32 %v4217_v49, 0.0 }
 0x648   : >>> { %v3921_v32 = vsub.f32 %v4428_v34, %v3920_v61 }
 0x64a   : >>> { %v3922_v42 = vmul.f32 %v3921_v32, %v6661_v60 }
 0x64c   : >>> { %v3923_v26 = vadd.f32 %v3922_v42, %v3055_v53 }
 0x64e   : >>> { %v3924_v43 = vsel %vm6650_vm3, %v3923_v26, %v3038_v50  }
 0x6ce   : >>> { %v2117_v14 = vpop.xlane.xlu0 %2116 }
 0x6cf   : >>> { %v2118_v57 = vrot.slane %v2117_v14, 4 }
 0x6d1   : >>> { %v2119_v13 = vmin.f32 %v2117_v14, %v2118_v57  ;;  %v7782_v14 = vmov %v3924_v43 }
 0x6d3   : >>> { %v2120_v48 = vrot.slane %v2119_v13, 2 }
 0x6d5   : >>> { %v2121_v16 = vmin.f32 %v2119_v13, %v2120_v48 }
 0x6d7   : >>> { %v2122_v46 = vrot.slane %v2121_v16, 1 }
 0x6d9   : >>> { %v2123_v24 = vmin.f32 %v2121_v16, %v2122_v46 }
 0x6db   : >>> { %4228 = vpush %v2123_v24 }
 0x70c   : >>> { %s4229_s13 = spop %4228 }
 0x70d   : >>> { %p2125_p4 = scmp.lt.f32.partialorder %s4229_s13, 0.99 }
 0x70f   : >>> { %p2126_p6 = pnand %p2125_p4, %p2115_p2 }
 0x710   : >> { %v7784_v40 = vmov (%p2126_p6), %v7717_v44  ;;  %v7785_v30 = vmov (%p2126_p6), %v7719_v11  ;;  %v7786_v31 = vmov (%p2126_p6), %v3924_v43 }
 0x711   : >> { %2129 = sbr.rel (!%p2126_p6) target bundleno = 926 (0x39e), region = 138 }
 0x716 PF: >> { %4429 = vrcp.f32 %v4709_v30  ;;  %v3934_v41 = vld [vmem:[%s4895_s9] sm:$0xff]  ;;  %s3937_s16 = scalar_lea.vmem %s7299_s11, %s5673_s18 [#allocation11]  ;;  %s3931_s30 = scalar_lea.vmem %s7300_s12, %s5673_s18 [#allocation8]  ;;  %v4713_v31 = vphi %v7538_v31, %v7786_v31   ;;  %v4709_v30 = vphi %v5831_v30, %v7785_v30   ;;  %v4705_v40 = vphi %v5829_v40, %v7784_v40  }
 0x717   : >> { %v3935_v60 = vadd.f32 %v4705_v40, %v3934_v41  ;;  %3938 = vst [vmem:[%s3937_s16] sm:$0xff] %v4709_v30  ;;  %s339_s17 = sadd.s32 1, %s4673_s17  }
 0x718   : >> { %p336_p8 = scmp.ge.s32.totalorder %s339_s17, 6  }
 0x719   : >> { %3936 = vst [vmem:[%s4895_s9] sm:$0xff] %v3935_v60  ;;  %s3944_s10 = sand.u32 (%p336_p8), 1, %s4796_s27   ;;  %s4219_s19 = sshll.u32 (%p336_p8), %s4661_s24, 7 }
 0x71a   : > { %s6881_s26 = scalar_lea.hbm (%p336_p8), %s6994_s4, %s4219_s19  ;;  %s7787_s6 = sld [smem:[#allocation214_spill]] (%p336_p8) }
 0x71b   : > { %s3981_s16 = sshll.u32 (%p336_p8), %s4895_s9, 4  ;;  %s7788_s29 = sld [smem:[#allocation215_spill]] (%p336_p8)  ;;  %s3982_s16 = int_to_ptr.vmem [resolvable:$true] %s3981_s16 }
 0x71c   : > { %s6894_s12 = scalar_lea.sflag (%p336_p8), [#allocation10], %s3944_s10  ;;  %s4485_s24 = scalar_lea.vmem (%p336_p8), %s3982_s16, 128 }
 0x71d   : > { %p4486_p10 = scmp.ne.s32.totalorder (%p336_p8), %s3982_s16, %s4485_s24  ;;  %p7789_p0 = scmp.ne.s32.totalorder (%p336_p8), %s7307_s7, 0 }
 0x71e   : > { %s4724_s27 = smov (%p336_p8), [#allocation9]  }
 0x71f   : > { %p4487_p1 = pnand (%p336_p8), %p4486_p10, %p7789_p0  ;;  %s4489_s15 = sshll.u32 (%p336_p8), %s4724_s27, 4  ;;  %s4490_s15 = int_to_ptr.vmem [resolvable:$false] %s4489_s15 }
 0x720   : > { %s6886_s13 = scalar_lea.hbm (%p336_p8), %s7787_s6, %s4219_s19  ;;  %s4491_s21 = scalar_lea.vmem (%p336_p8), %s4490_s15, 256 }
 0x721   : > { %s6892_s11 = scalar_lea.hbm (%p336_p8), %s7788_s29, %s4219_s19  ;;  %p4488_p5 = pneg (%p336_p8), %p4487_p1 }
 0x722   : > { %338 = sbr.rel (!%p336_p8) target bundleno = 76 (0x4c), region = 149  ;;  %p4492_p7 = scmp.lt.s32.totalorder (%p336_p8), %s3982_s16, %s4490_s15 }
 0x723   : >> { %v4430_v19 = vpop.eup %4429  ;;  %p4493_p9 = scmp.lt.s32.totalorder (%p336_p8), %s4491_s21, %s4485_s24 }
 0x724   : >> { %v3930_v44 = vmul.f32 %v4713_v31, %v4430_v19 }
 0x725   : > { %p4494_p11 = por (%p336_p8), %p4493_p9, %p4492_p7 }
 0x726   : >> { %3932 = vst [vmem:[%s3931_s30] sm:$0xff] %v3930_v44  ;;  %3933 = vst [vmem:[#allocation2] sm:$0xff] %v3930_v44 }
 0x727   : > { %p4495_p13 = pnand %p4494_p11, %p4488_p5 }
 0x729   : > { %4498 = shalt.err (!%p4495_p13)
}
 0x72a   : > { %s4499_s9 = scalar_lea.hbm %s6886_s13, 128  ;;  %s4503_s18 = scalar_lea.hbm %s7787_s6, 256 }
 0x72b   : > { %p4500_p3 = scmp.ne.s32.totalorder %s6886_s13, %s4499_s9  ;;  %p4504_p4 = scmp.lt.s32.totalorder %s6886_s13, %s7787_s6 }
 0x72c   : > { %p4505_p6 = scmp.lt.s32.totalorder %s4503_s18, %s4499_s9 }
 0x72d   : > { %p4501_p12 = pnand %p4500_p3, %p7789_p0 }
 0x72e   : > { %p4506_p8 = por %p4505_p6, %p4504_p4 }
 0x72f   : > { %p4502_p2 = pneg %p4501_p12 }
 0x731   : > { %p4507_p10 = pnand %p4506_p8, %p4502_p2 }
 0x733   : > { %4510 = shalt.err (!%p4507_p10)
}
 0x734   : > { %4237 = dma.vmem_to_hbm [thread:$0]  (%p7789_p0), %s3982_s16, 128, %s6886_s13, %s6894_s12  }
 0x735   : > { %s7790_s30 = scalar_lea.vmem [#allocation8], %s4882_s8  ;;  %s3940_s27 = scalar_lea.sflag [#allocation5], %s4879_s28 }
 0x736   : > { %s3965_s24 = sshll.u32 %s7790_s30, 4  ;;  %s4725_s21 = smov [#allocation8]   ;;  %s6915_s24 = int_to_ptr.vmem [resolvable:$true] %s3965_s24 }
 0x737   : > { %s4511_s15 = scalar_lea.vmem %s6915_s24, 768  ;;  %s4515_s9 = sshll.u32 %s4725_s21, 4  ;;  %s4516_s9 = int_to_ptr.vmem [resolvable:$false] %s4515_s9 }
 0x738   : > { %p4512_p1 = scmp.ne.s32.totalorder %s6915_s24, %s4511_s15  ;;  %s4517_s10 = scalar_lea.vmem %s4516_s9, 1536 }
 0x739   : > { %p4518_p9 = scmp.lt.s32.totalorder %s6915_s24, %s4516_s9  ;;  %p4519_p11 = scmp.lt.s32.totalorder %s4517_s10, %s4511_s15 }
 0x73a   : > { %p4513_p5 = pnand %p4512_p1, %p7789_p0 }
 0x73b   : > { %p4520_p13 = por %p4519_p11, %p4518_p9 }
 0x73c   : > { %p4514_p7 = pneg %p4513_p5 }
 0x73e   : > { %p4521_p3 = pnand %p4520_p13, %p4514_p7 }
 0x740   : > { %4524 = shalt.err (!%p4521_p3)
}
 0x741   : > { %s4525_s13 = scalar_lea.hbm %s6881_s26, 768  ;;  %s4529_s18 = scalar_lea.hbm %s6994_s4, 1536 }
 0x742   : > { %p4526_p12 = scmp.ne.s32.totalorder %s6881_s26, %s4525_s13  ;;  %p4530_p6 = scmp.lt.s32.totalorder %s6881_s26, %s6994_s4 }
 0x743   : > { %p4531_p8 = scmp.lt.s32.totalorder %s4529_s18, %s4525_s13 }
 0x744   : > { %p4527_p2 = pnand %p4526_p12, %p7789_p0 }
 0x745   : > { %p4532_p10 = por %p4531_p8, %p4530_p6 }
 0x746   : > { %p4528_p4 = pneg %p4527_p2 }
 0x748   : > { %p4533_p1 = pnand %p4532_p10, %p4528_p4 }
 0x74a   : > { %4536 = shalt.err (!%p4533_p1)
}
 0x74b   : > { %s4726_s30 = smov 128   ;;  %s4727_s15 = smov 256  }
 0x74c   : > { %s4728_s21 = smov 8   ;;  %s7791_s9 = scalar_lea.vmem [#allocation11], %s4882_s8 }
 0x74d   : > { %4236 = dma.vmem_to_hbm [thread:$0]  (%p7789_p0), %s6915_s24, 768, %s6881_s26, %s3940_s27, %s4726_s30, %s4727_s15, %s4728_s21  }
 0x74e   : > { %s3996_s10 = sshll.u32 %s7791_s9, 4  ;;  %s4729_s16 = smov [#allocation11]   ;;  %s3997_s10 = int_to_ptr.vmem [resolvable:$true] %s3996_s10 }
 0x74f   : > { %s4537_s13 = scalar_lea.vmem %s3997_s10, 768  ;;  %s4541_s19 = sshll.u32 %s4729_s16, 4  ;;  %s4542_s19 = int_to_ptr.vmem [resolvable:$false] %s4541_s19 }
 0x750   : > { %p4538_p5 = scmp.ne.s32.totalorder %s3997_s10, %s4537_s13  ;;  %s4543_s18 = scalar_lea.vmem %s4542_s19, 1536 }
 0x751   : > { %p4544_p11 = scmp.lt.s32.totalorder %s3997_s10, %s4542_s19  ;;  %p4545_p13 = scmp.lt.s32.totalorder %s4543_s18, %s4537_s13 }
 0x752   : > { %p4539_p7 = pnand %p4538_p5, %p7789_p0 }
 0x753   : > { %p4546_p3 = por %p4545_p13, %p4544_p11 }
 0x754   : > { %p4540_p9 = pneg %p4539_p7 }
 0x756   : > { %p4547_p12 = pnand %p4546_p3, %p4540_p9 }
 0x758   : > { %4550 = shalt.err (!%p4547_p12)
}
 0x759   : > { %s4551_s28 = scalar_lea.hbm %s6892_s11, 768  ;;  %s4555_s24 = scalar_lea.hbm %s7788_s29, 1536 }
 0x75a   : > { %p4552_p2 = scmp.ne.s32.totalorder %s6892_s11, %s4551_s28  ;;  %p4556_p8 = scmp.lt.s32.totalorder %s6892_s11, %s7788_s29 }
 0x75b   : > { %p4557_p10 = scmp.lt.s32.totalorder %s4555_s24, %s4551_s28 }
 0x75c   : > { %p4553_p4 = pnand %p4552_p2, %p7789_p0 }
 0x75d   : > { %p4558_p1 = por %p4557_p10, %p4556_p8 }
 0x75e   : > { %p4554_p6 = pneg %p4553_p4 }
 0x760   : > { %p4559_p5 = pnand %p4558_p1, %p4554_p6 }
 0x762   : > { %4562 = shalt.err (!%p4559_p5)
}
 0x763   : > { %4238 = dma.vmem_to_hbm [thread:$0]  (%p7789_p0), %s3997_s10, 768, %s6892_s11, %s6894_s12, %s4726_s30, %s4727_s15, %s4728_s21  }
 0x764 PF: > { %s7792_s17 = sld [smem:[#allocation16_spill]] }
 0x765   : > { %s7793_s9 = sld [smem:[#allocation18_spill]] }
 0x766   : > { %s7794_s13 = sld [smem:[#allocation17_spill]] }
 0x76a   : > { %s4011_s16 = sand.u32 1, %s7792_s17  }
 0x76b   : > { %p7795_p7 = scmp.ne.s32.totalorder %s7793_s9, 0  ;;  %s4012_s19 = scalar_lea.sflag [#allocation5], %s4011_s16 }
 0x76c   : > { %p7796_p9 = scmp.ge.s32.totalorder %s7794_s13, 2 }
 0x76e   : > { %p4251_p11 = pnand %p7796_p9, %p7795_p7 }
 0x770   : > { %p4252_p13 = pneg %p4251_p11 }
 0x772   : > { %4640 = dma.done.wait (%p4252_p13), %s4012_s19, 768  }
 0x773   : > { %4642 = vsyncadd (%p4252_p13), %s4012_s19, 4294966528  ;;  %s7797_s7 = sadd.s32 4294967294, %s7794_s13  }
 0x774   : > { %s4020_s18 = sand.u32 1, %s7797_s7  }
 0x775   : > { %s4021_s28 = scalar_lea.sflag [#allocation10], %s4020_s18 }
 0x776   : > { %4644 = dma.done.wait (%p4252_p13), %s4021_s28, 896  }
 0x777   : > { %4646 = vsyncadd (%p4252_p13), %s4021_s28, 4294966400  ;;  %s27_s26 = sadd.s32 1, %s7794_s13   ;;  %s7798_s21 = smov %s4653_s22 }
 0x778   : > { %p24_p0 = scmp.ge.s32.totalorder %s27_s26, 4   ;;  %s7799_s22 = smov %s4657_s23 }
 0x779   : > { %s7800_s23 = smov %s4869_s5  ;;  %s7801_s24 = smov %s4665_s25 }
 0x77a   : > { %s7802_s25 = smov %s7804_s14  ;;  %26 = sbr.rel (!%p24_p0) target bundleno = 12 (0xc), region = 160 }
 0x77f   :  { %4035 = vsyncpa [#allocation4], 1 }
 0x780   :  { %4037 = vsyncpa [#allocation4 + $0x1], 1 }
 0x781   :  { %4038 = vsyncpa [#allocation7], 1 }
 0x782   :  { %4039 = vsyncpa [#allocation5], 1 }
 0x783   :  { %4041 = vsyncpa [#allocation5 + $0x1], 1 }
 0x784   :  { %4042 = vsyncpa [#allocation10], 1 }
 0x785   :  { %4044 = vsyncpa [#allocation10 + $0x1], 1 }

</bundles_post_ra>
